<compile_context>
chip_gen: v5e
topology: v5e:2x2
jax: 0.10.0
libtpu: 0.0.40
codegen_flags: <defaults>
</compile_context>

<pallas_src>
import math
import functools

import jax
import jax.numpy as jnp
from jax.experimental import pallas as pl
from jax.experimental.pallas import tpu as pltpu


# --------------------------------------------------------------------------
# Fused forward kernel
# --------------------------------------------------------------------------

def _fused_forward_kernel(*refs, B, S, R, E, FF, H, nhead, n_enc, n_lstm, n_classes):
    n_in = 4 + 12 * n_enc + 3 * n_lstm + 2
    in_refs = refs[:n_in]
    out_ref = refs[n_in]          # (B, n_classes)
    seq_ref = refs[n_in + 1]      # VMEM scratch (B, S, H) for inter-LSTM-layer sequence

    it = iter(in_refs)
    x_ref = next(it)              # (B, S, R)
    pos_ref = next(it)            # (1, S, R)
    w1_ref = next(it)             # (R, E)
    b1_ref = next(it)             # (1, E)
    enc_keys = ("wqkv", "bqkv", "wo", "bo", "ln1_g", "ln1_b",
                "wf1", "bf1", "wf2", "bf2", "ln2_g", "ln2_b")
    enc = [{k: next(it) for k in enc_keys} for _ in range(n_enc)]
    lstm = [{k: next(it) for k in ("wih", "whh", "b")} for _ in range(n_lstm)]
    fc_w = next(it)               # (H, n_classes)
    fc_b = next(it)               # (1, n_classes)

    M = B * S
    Dh = E // nhead
    f32 = jnp.float32

    # ---- positional embedding + upstream linear (fused prologue) ----
    xe = x_ref[...] * math.sqrt(R) + pos_ref[...]                     # (B, S, R)
    h = jnp.dot(xe.reshape(M, R), w1_ref[...],
                preferred_element_type=f32) + b1_ref[...]             # (M, E)

    def layernorm(v, g_ref, b_ref):
        mu = jnp.mean(v, axis=-1, keepdims=True)
        var = jnp.mean((v - mu) ** 2, axis=-1, keepdims=True)
        return (v - mu) * jax.lax.rsqrt(var + 1e-5) * g_ref[...] + b_ref[...]

    # ---- transformer encoder stack (post-norm, relu FFN, eval mode) ----
    inv_sqrt_dh = 1.0 / math.sqrt(Dh)
    for p in enc:
        qkv = jnp.dot(h, p["wqkv"][...], preferred_element_type=f32) + p["bqkv"][...]  # (M, 3E)
        wo = p["wo"][...]                                                               # (E, E)
        attn = jnp.zeros((M, E), f32)
        for hd in range(nhead):
            lo = hd * Dh
            q = qkv[:, lo:lo + Dh].reshape(B, S, Dh)
            k = qkv[:, E + lo:E + lo + Dh].reshape(B, S, Dh)
            v = qkv[:, 2 * E + lo:2 * E + lo + Dh].reshape(B, S, Dh)
            s = jnp.einsum("bqd,bkd->bqk", q, k, preferred_element_type=f32) * inv_sqrt_dh
            s = s - jnp.max(s, axis=-1, keepdims=True)
            pr = jnp.exp(s)
            pr = pr * pl.reciprocal(jnp.sum(pr, axis=-1, keepdims=True), approx=True)
            o = jnp.einsum("bqk,bkd->bqd", pr, v, preferred_element_type=f32)           # (B, S, Dh)
            # concat(heads) @ Wo  ==  sum_h head_h @ Wo[h*Dh:(h+1)*Dh, :]
            attn = attn + jnp.dot(o.reshape(M, Dh), wo[lo:lo + Dh, :],
                                  preferred_element_type=f32)
        attn = attn + p["bo"][...]
        h = layernorm(h + attn, p["ln1_g"], p["ln1_b"])               # residual folded into LN
        ff = jnp.maximum(jnp.dot(h, p["wf1"][...], preferred_element_type=f32)
                         + p["bf1"][...], 0.0)
        ff = jnp.dot(ff, p["wf2"][...], preferred_element_type=f32) + p["bf2"][...]
        h = layernorm(h + ff, p["ln2_g"], p["ln2_b"])

    # ---- LSTM classifier head (fused recurrence, hoisted input projection) ----
    # TODO(synk): LSTMClassifier source not provided; assumed standard
    #             nn.LSTM(batch_first) -> Linear(hidden -> num_classes) on last step.
    inp_flat = h                                                      # (M, E)
    last_h = None
    for li, p in enumerate(lstm):
        # hoisted: all timesteps' input-gate contributions in one MXU matmul
        gates_x = jnp.dot(inp_flat, p["wih"][...],
                          preferred_element_type=f32) + p["b"][...]   # (M, 4H)
        gates_x = gates_x.reshape(B, S, 4 * H)
        whh = p["whh"][...]                                           # (H, 4H)
        hh = jnp.zeros((B, H), f32)
        cc = jnp.zeros((B, H), f32)
        is_last = (li == n_lstm - 1)
        for t in range(S):  # static unroll; only h @ Whh is serial
            g = gates_x[:, t, :] + jnp.dot(hh, whh, preferred_element_type=f32)  # (B, 4H)
            i_g = jax.nn.sigmoid(g[:, 0:H])            # PyTorch gate order i, f, g, o
            f_g = jax.nn.sigmoid(g[:, H:2 * H])
            g_g = jnp.tanh(g[:, 2 * H:3 * H])
            o_g = jax.nn.sigmoid(g[:, 3 * H:4 * H])
            cc = f_g * cc + i_g * g_g
            hh = o_g * jnp.tanh(cc)
            if not is_last:
                seq_ref[:, t, :] = hh                  # VMEM scratch, never hits HBM
        if not is_last:
            inp_flat = seq_ref[...].reshape(M, H)
        last_h = hh

    out_ref[...] = jnp.dot(last_h, fc_w[...], preferred_element_type=f32) + fc_b[...]


# --------------------------------------------------------------------------
# Wrapper: flatten params, one pallas_call for the whole forward pass
# --------------------------------------------------------------------------

def transformer_lstm_forward(x, params, *, nhead):
    B, S, R = x.shape
    E = params["linear1_w"].shape[1]
    FF = params["enc_layers"][0]["wf1"].shape[1]
    H = params["lstm_layers"][0]["whh"].shape[0]
    n_classes = params["fc_w"].shape[1]
    n_enc = len(params["enc_layers"])
    n_lstm = len(params["lstm_layers"])

    inputs = [x,
              params["pos"].reshape(1, S, R),
              params["linear1_w"],
              params["linear1_b"].reshape(1, E)]
    for p in params["enc_layers"]:
        inputs += [p["wqkv"], p["bqkv"].reshape(1, 3 * E),
                   p["wo"], p["bo"].reshape(1, E),
                   p["ln1_g"].reshape(1, E), p["ln1_b"].reshape(1, E),
                   p["wf1"], p["bf1"].reshape(1, FF),
                   p["wf2"], p["bf2"].reshape(1, E),
                   p["ln2_g"].reshape(1, E), p["ln2_b"].reshape(1, E)]
    for p in params["lstm_layers"]:
        inputs += [p["wih"], p["whh"], p["b"].reshape(1, 4 * H)]
    inputs += [params["fc_w"], params["fc_b"].reshape(1, n_classes)]

    kernel = functools.partial(
        _fused_forward_kernel,
        B=B, S=S, R=R, E=E, FF=FF, H=H,
        nhead=nhead, n_enc=n_enc, n_lstm=n_lstm, n_classes=n_classes)

    return pl.pallas_call(
        kernel,
        out_shape=jax.ShapeDtypeStruct((B, n_classes), jnp.float32),
        scratch_shapes=[pltpu.VMEM((B, S, H), jnp.float32)],
    )(*inputs)


# --------------------------------------------------------------------------
# Deterministic parameter construction
# --------------------------------------------------------------------------

def make_positional_embedding(seq_len, embed_dim):
    # exact formula from the reference PositionalEmbedding (base 100)
    pe = [[0.0] * embed_dim for _ in range(seq_len)]
    for pos in range(seq_len):
        for i in range(0, embed_dim, 2):
            pe[pos][i] = math.sin(pos / 100 ** (2 * (i + 1) / embed_dim))
            if i + 1 < embed_dim:
                pe[pos][i + 1] = math.cos(pos / 100 ** (2 * (i + 2) / embed_dim))
    return jnp.asarray(pe, dtype=jnp.float32)


def init_params(key, *, R, S, E, FF, n_layers, H, lstm_layers, n_classes):
    ks = iter(jax.random.split(key, 256))
    w = lambda shape: 0.05 * jax.random.normal(next(ks), shape, jnp.float32)
    z = lambda shape: jnp.zeros(shape, jnp.float32)
    o = lambda shape: jnp.ones(shape, jnp.float32)

    params = {
        "pos": make_positional_embedding(S, R),
        "linear1_w": w((R, E)), "linear1_b": z((E,)),
        "enc_layers": [],
        "lstm_layers": [],
        "fc_w": w((H, n_classes)), "fc_b": z((n_classes,)),
    }
    for _ in range(n_layers):
        params["enc_layers"].append({
            "wqkv": w((E, 3 * E)), "bqkv": z((3 * E,)),   # fused Q|K|V projection
            "wo": w((E, E)), "bo": z((E,)),
            "ln1_g": o((E,)), "ln1_b": z((E,)),
            "wf1": w((E, FF)), "bf1": z((FF,)),
            "wf2": w((FF, E)), "bf2": z((E,)),
            "ln2_g": o((E,)), "ln2_b": z((E,)),
        })
    in_sz = E
    for _ in range(lstm_layers):
        params["lstm_layers"].append({
            "wih": w((in_sz, 4 * H)),
            "whh": w((H, 4 * H)),
            "b": z((4 * H,)),          # b_ih + b_hh combined
        })
        in_sz = H
    return params


# --------------------------------------------------------------------------
# Demo
# --------------------------------------------------------------------------

if __name__ == "__main__":
    # small config consistent with the module's constructor arguments
    B, S, R = 2, 8, 16            # batch, sequence_length, raw_embedding_len
    E, NHEAD, FF = 32, 4, 64      # target_embedding_len, transformer_num_head, dim_feedforward
    N_ENC_LAYERS = 2              # transformer_num_layers
    H, N_LSTM = 32, 2             # lstm_hidden_size, lstm_num_layers
    N_CLASSES = 5

    key = jax.random.PRNGKey(0)
    k_x, k_p = jax.random.split(key)
    x = jax.random.normal(k_x, (B, S, R), jnp.float32)
    params = init_params(k_p, R=R, S=S, E=E, FF=FF, n_layers=N_ENC_LAYERS,
                         H=H, lstm_layers=N_LSTM, n_classes=N_CLASSES)

    fwd = jax.jit(functools.partial(transformer_lstm_forward, nhead=NHEAD))
    logits = fwd(x, params)
    jax.block_until_ready(logits)

    assert logits.shape == (B, N_CLASSES)
    assert bool(jnp.all(jnp.isfinite(logits)))
    print("KERNEL_OK")
</pallas_src>

<mosaic_0001>
module attributes {stable_mosaic.version = 11 : i64} {
  func.func @_fused_forward_kernel(%arg0: memref<2x8x16xf32, #tpu.memory_space<vmem>>, %arg1: memref<1x8x16xf32, #tpu.memory_space<vmem>>, %arg2: memref<16x32xf32, #tpu.memory_space<vmem>>, %arg3: memref<1x32xf32, #tpu.memory_space<vmem>>, %arg4: memref<32x96xf32, #tpu.memory_space<vmem>>, %arg5: memref<1x96xf32, #tpu.memory_space<vmem>>, %arg6: memref<32x32xf32, #tpu.memory_space<vmem>>, %arg7: memref<1x32xf32, #tpu.memory_space<vmem>>, %arg8: memref<1x32xf32, #tpu.memory_space<vmem>>, %arg9: memref<1x32xf32, #tpu.memory_space<vmem>>, %arg10: memref<32x64xf32, #tpu.memory_space<vmem>>, %arg11: memref<1x64xf32, #tpu.memory_space<vmem>>, %arg12: memref<64x32xf32, #tpu.memory_space<vmem>>, %arg13: memref<1x32xf32, #tpu.memory_space<vmem>>, %arg14: memref<1x32xf32, #tpu.memory_space<vmem>>, %arg15: memref<1x32xf32, #tpu.memory_space<vmem>>, %arg16: memref<32x96xf32, #tpu.memory_space<vmem>>, %arg17: memref<1x96xf32, #tpu.memory_space<vmem>>, %arg18: memref<32x32xf32, #tpu.memory_space<vmem>>, %arg19: memref<1x32xf32, #tpu.memory_space<vmem>>, %arg20: memref<1x32xf32, #tpu.memory_space<vmem>>, %arg21: memref<1x32xf32, #tpu.memory_space<vmem>>, %arg22: memref<32x64xf32, #tpu.memory_space<vmem>>, %arg23: memref<1x64xf32, #tpu.memory_space<vmem>>, %arg24: memref<64x32xf32, #tpu.memory_space<vmem>>, %arg25: memref<1x32xf32, #tpu.memory_space<vmem>>, %arg26: memref<1x32xf32, #tpu.memory_space<vmem>>, %arg27: memref<1x32xf32, #tpu.memory_space<vmem>>, %arg28: memref<32x128xf32, #tpu.memory_space<vmem>>, %arg29: memref<32x128xf32, #tpu.memory_space<vmem>>, %arg30: memref<1x128xf32, #tpu.memory_space<vmem>>, %arg31: memref<32x128xf32, #tpu.memory_space<vmem>>, %arg32: memref<32x128xf32, #tpu.memory_space<vmem>>, %arg33: memref<1x128xf32, #tpu.memory_space<vmem>>, %arg34: memref<32x5xf32, #tpu.memory_space<vmem>>, %arg35: memref<1x5xf32, #tpu.memory_space<vmem>>, %arg36: memref<2x5xf32, #tpu.memory_space<vmem>>, %arg37: memref<2x8x32xf32, #tpu.memory_space<vmem>>) attributes {dimension_semantics = [], scalar_prefetch = 0 : i64, scratch_operands = 1 : i64, tpu.core_type = #tpu.core_type<tc>} {
    %c0 = arith.constant 0 : index
    %c0_0 = arith.constant 0 : index
    %c0_1 = arith.constant 0 : index
    %0 = vector.load %arg0[%c0, %c0_0, %c0_1] : memref<2x8x16xf32, #tpu.memory_space<vmem>>, vector<2x8x16xf32>
    %cst = arith.constant 4.000000e+00 : f32
    %1 = vector.broadcast %cst : f32 to vector<2x8x16xf32>
    %2 = arith.mulf %0, %1 : vector<2x8x16xf32>
    %c0_2 = arith.constant 0 : index
    %c0_3 = arith.constant 0 : index
    %c0_4 = arith.constant 0 : index
    %3 = vector.load %arg1[%c0_2, %c0_3, %c0_4] : memref<1x8x16xf32, #tpu.memory_space<vmem>>, vector<1x8x16xf32>
    %4 = vector.broadcast %3 : vector<1x8x16xf32> to vector<2x8x16xf32>
    %5 = arith.addf %2, %4 : vector<2x8x16xf32>
    %6 = vector.shape_cast %5 : vector<2x8x16xf32> to vector<16x16xf32>
    %c0_5 = arith.constant 0 : index
    %c0_6 = arith.constant 0 : index
    %7 = vector.load %arg2[%c0_5, %c0_6] : memref<16x32xf32, #tpu.memory_space<vmem>>, vector<16x32xf32>
    %cst_7 = arith.constant dense<0.000000e+00> : vector<16x32xf32>
    %8 = tpu.matmul %6, %7, %cst_7 {dimension_numbers = #tpu.dot_dimension_numbers<[1], [0], [0], [1], [0, 0, 1, 1], [], []>} : vector<16x16xf32>, vector<16x32xf32>, vector<16x32xf32> -> vector<16x32xf32>
    %c0_8 = arith.constant 0 : index
    %c0_9 = arith.constant 0 : index
    %9 = vector.load %arg3[%c0_8, %c0_9] : memref<1x32xf32, #tpu.memory_space<vmem>>, vector<1x32xf32>
    %10 = vector.broadcast %9 : vector<1x32xf32> to vector<16x32xf32>
    %11 = arith.addf %8, %10 : vector<16x32xf32>
    %c0_10 = arith.constant 0 : index
    %c0_11 = arith.constant 0 : index
    %12 = vector.load %arg4[%c0_10, %c0_11] : memref<32x96xf32, #tpu.memory_space<vmem>>, vector<32x96xf32>
    %cst_12 = arith.constant dense<0.000000e+00> : vector<16x96xf32>
    %13 = tpu.matmul %11, %12, %cst_12 {dimension_numbers = #tpu.dot_dimension_numbers<[1], [0], [0], [1], [0, 0, 1, 1], [], []>} : vector<16x32xf32>, vector<32x96xf32>, vector<16x96xf32> -> vector<16x96xf32>
    %c0_13 = arith.constant 0 : index
    %c0_14 = arith.constant 0 : index
    %14 = vector.load %arg5[%c0_13, %c0_14] : memref<1x96xf32, #tpu.memory_space<vmem>>, vector<1x96xf32>
    %15 = vector.broadcast %14 : vector<1x96xf32> to vector<16x96xf32>
    %16 = arith.addf %13, %15 : vector<16x96xf32>
    %c0_15 = arith.constant 0 : index
    %c0_16 = arith.constant 0 : index
    %17 = vector.load %arg6[%c0_15, %c0_16] : memref<32x32xf32, #tpu.memory_space<vmem>>, vector<32x32xf32>
    %cst_17 = arith.constant 0.000000e+00 : f32
    %18 = vector.broadcast %cst_17 : f32 to vector<16x32xf32>
    %19 = vector.extract_strided_slice %16 {offsets = [0, 0], sizes = [16, 8], strides = [1, 1]} : vector<16x96xf32> to vector<16x8xf32>
    %20 = vector.shape_cast %19 : vector<16x8xf32> to vector<2x8x8xf32>
    %21 = vector.extract_strided_slice %16 {offsets = [0, 32], sizes = [16, 8], strides = [1, 1]} : vector<16x96xf32> to vector<16x8xf32>
    %22 = vector.shape_cast %21 : vector<16x8xf32> to vector<2x8x8xf32>
    %23 = vector.extract_strided_slice %16 {offsets = [0, 64], sizes = [16, 8], strides = [1, 1]} : vector<16x96xf32> to vector<16x8xf32>
    %24 = vector.shape_cast %23 : vector<16x8xf32> to vector<2x8x8xf32>
    "tpu.trace_start"() <{level = 10 : i32, message = "bqd,bkd->bqk"}> : () -> ()
    %cst_18 = arith.constant dense<0.000000e+00> : vector<2x8x8xf32>
    %25 = tpu.matmul %20, %22, %cst_18 {dimension_numbers = #tpu.dot_dimension_numbers<[2], [2], [1], [1], [0, 0, 0, 1, 1, 1], [0], [0]>} : vector<2x8x8xf32>, vector<2x8x8xf32>, vector<2x8x8xf32> -> vector<2x8x8xf32>
    "tpu.trace_stop"() : () -> ()
    %cst_19 = arith.constant 0.353553385 : f32
    %26 = vector.broadcast %cst_19 : f32 to vector<2x8x8xf32>
    %27 = arith.mulf %25, %26 : vector<2x8x8xf32>
    %cst_20 = arith.constant dense<0xFF800000> : vector<2x8xf32>
    %28 = vector.multi_reduction <maximumf>, %27, %cst_20 [2] : vector<2x8x8xf32> to vector<2x8xf32>
    %29 = vector.shape_cast %28 : vector<2x8xf32> to vector<2x8x1xf32>
    %30 = vector.broadcast %29 : vector<2x8x1xf32> to vector<2x8x8xf32>
    %31 = arith.subf %27, %30 : vector<2x8x8xf32>
    %32 = math.exp %31 : vector<2x8x8xf32>
    %cst_21 = arith.constant dense<0.000000e+00> : vector<2x8xf32>
    %33 = vector.multi_reduction <add>, %32, %cst_21 [2] : vector<2x8x8xf32> to vector<2x8xf32>
    %34 = vector.shape_cast %33 : vector<2x8xf32> to vector<2x8x1xf32>
    %35 = tpu.reciprocal %34 {approx = true} : vector<2x8x1xf32> -> vector<2x8x1xf32>
    %36 = vector.broadcast %35 : vector<2x8x1xf32> to vector<2x8x8xf32>
    %37 = arith.mulf %32, %36 : vector<2x8x8xf32>
    "tpu.trace_start"() <{level = 10 : i32, message = "bqk,bkd->bqd"}> : () -> ()
    %cst_22 = arith.constant dense<0.000000e+00> : vector<2x8x8xf32>
    %38 = tpu.matmul %37, %24, %cst_22 {dimension_numbers = #tpu.dot_dimension_numbers<[2], [1], [1], [2], [0, 0, 0, 1, 1, 2], [0], [0]>} : vector<2x8x8xf32>, vector<2x8x8xf32>, vector<2x8x8xf32> -> vector<2x8x8xf32>
    "tpu.trace_stop"() : () -> ()
    %39 = vector.shape_cast %38 : vector<2x8x8xf32> to vector<16x8xf32>
    %40 = vector.extract_strided_slice %17 {offsets = [0, 0], sizes = [8, 32], strides = [1, 1]} : vector<32x32xf32> to vector<8x32xf32>
    %cst_23 = arith.constant dense<0.000000e+00> : vector<16x32xf32>
    %41 = tpu.matmul %39, %40, %cst_23 {dimension_numbers = #tpu.dot_dimension_numbers<[1], [0], [0], [1], [0, 0, 1, 1], [], []>} : vector<16x8xf32>, vector<8x32xf32>, vector<16x32xf32> -> vector<16x32xf32>
    %42 = arith.addf %18, %41 : vector<16x32xf32>
    %43 = vector.extract_strided_slice %16 {offsets = [0, 8], sizes = [16, 8], strides = [1, 1]} : vector<16x96xf32> to vector<16x8xf32>
    %44 = vector.shape_cast %43 : vector<16x8xf32> to vector<2x8x8xf32>
    %45 = vector.extract_strided_slice %16 {offsets = [0, 40], sizes = [16, 8], strides = [1, 1]} : vector<16x96xf32> to vector<16x8xf32>
    %46 = vector.shape_cast %45 : vector<16x8xf32> to vector<2x8x8xf32>
    %47 = vector.extract_strided_slice %16 {offsets = [0, 72], sizes = [16, 8], strides = [1, 1]} : vector<16x96xf32> to vector<16x8xf32>
    %48 = vector.shape_cast %47 : vector<16x8xf32> to vector<2x8x8xf32>
    "tpu.trace_start"() <{level = 10 : i32, message = "bqd,bkd->bqk"}> : () -> ()
    %cst_24 = arith.constant dense<0.000000e+00> : vector<2x8x8xf32>
    %49 = tpu.matmul %44, %46, %cst_24 {dimension_numbers = #tpu.dot_dimension_numbers<[2], [2], [1], [1], [0, 0, 0, 1, 1, 1], [0], [0]>} : vector<2x8x8xf32>, vector<2x8x8xf32>, vector<2x8x8xf32> -> vector<2x8x8xf32>
    "tpu.trace_stop"() : () -> ()
    %cst_25 = arith.constant 0.353553385 : f32
    %50 = vector.broadcast %cst_25 : f32 to vector<2x8x8xf32>
    %51 = arith.mulf %49, %50 : vector<2x8x8xf32>
    %cst_26 = arith.constant dense<0xFF800000> : vector<2x8xf32>
    %52 = vector.multi_reduction <maximumf>, %51, %cst_26 [2] : vector<2x8x8xf32> to vector<2x8xf32>
    %53 = vector.shape_cast %52 : vector<2x8xf32> to vector<2x8x1xf32>
    %54 = vector.broadcast %53 : vector<2x8x1xf32> to vector<2x8x8xf32>
    %55 = arith.subf %51, %54 : vector<2x8x8xf32>
    %56 = math.exp %55 : vector<2x8x8xf32>
    %cst_27 = arith.constant dense<0.000000e+00> : vector<2x8xf32>
    %57 = vector.multi_reduction <add>, %56, %cst_27 [2] : vector<2x8x8xf32> to vector<2x8xf32>
    %58 = vector.shape_cast %57 : vector<2x8xf32> to vector<2x8x1xf32>
    %59 = tpu.reciprocal %58 {approx = true} : vector<2x8x1xf32> -> vector<2x8x1xf32>
    %60 = vector.broadcast %59 : vector<2x8x1xf32> to vector<2x8x8xf32>
    %61 = arith.mulf %56, %60 : vector<2x8x8xf32>
    "tpu.trace_start"() <{level = 10 : i32, message = "bqk,bkd->bqd"}> : () -> ()
    %cst_28 = arith.constant dense<0.000000e+00> : vector<2x8x8xf32>
    %62 = tpu.matmul %61, %48, %cst_28 {dimension_numbers = #tpu.dot_dimension_numbers<[2], [1], [1], [2], [0, 0, 0, 1, 1, 2], [0], [0]>} : vector<2x8x8xf32>, vector<2x8x8xf32>, vector<2x8x8xf32> -> vector<2x8x8xf32>
    "tpu.trace_stop"() : () -> ()
    %63 = vector.shape_cast %62 : vector<2x8x8xf32> to vector<16x8xf32>
    %64 = vector.extract_strided_slice %17 {offsets = [8, 0], sizes = [8, 32], strides = [1, 1]} : vector<32x32xf32> to vector<8x32xf32>
    %cst_29 = arith.constant dense<0.000000e+00> : vector<16x32xf32>
    %65 = tpu.matmul %63, %64, %cst_29 {dimension_numbers = #tpu.dot_dimension_numbers<[1], [0], [0], [1], [0, 0, 1, 1], [], []>} : vector<16x8xf32>, vector<8x32xf32>, vector<16x32xf32> -> vector<16x32xf32>
    %66 = arith.addf %42, %65 : vector<16x32xf32>
    %67 = vector.extract_strided_slice %16 {offsets = [0, 16], sizes = [16, 8], strides = [1, 1]} : vector<16x96xf32> to vector<16x8xf32>
    %68 = vector.shape_cast %67 : vector<16x8xf32> to vector<2x8x8xf32>
    %69 = vector.extract_strided_slice %16 {offsets = [0, 48], sizes = [16, 8], strides = [1, 1]} : vector<16x96xf32> to vector<16x8xf32>
    %70 = vector.shape_cast %69 : vector<16x8xf32> to vector<2x8x8xf32>
    %71 = vector.extract_strided_slice %16 {offsets = [0, 80], sizes = [16, 8], strides = [1, 1]} : vector<16x96xf32> to vector<16x8xf32>
    %72 = vector.shape_cast %71 : vector<16x8xf32> to vector<2x8x8xf32>
    "tpu.trace_start"() <{level = 10 : i32, message = "bqd,bkd->bqk"}> : () -> ()
    %cst_30 = arith.constant dense<0.000000e+00> : vector<2x8x8xf32>
    %73 = tpu.matmul %68, %70, %cst_30 {dimension_numbers = #tpu.dot_dimension_numbers<[2], [2], [1], [1], [0, 0, 0, 1, 1, 1], [0], [0]>} : vector<2x8x8xf32>, vector<2x8x8xf32>, vector<2x8x8xf32> -> vector<2x8x8xf32>
    "tpu.trace_stop"() : () -> ()
    %cst_31 = arith.constant 0.353553385 : f32
    %74 = vector.broadcast %cst_31 : f32 to vector<2x8x8xf32>
    %75 = arith.mulf %73, %74 : vector<2x8x8xf32>
    %cst_32 = arith.constant dense<0xFF800000> : vector<2x8xf32>
    %76 = vector.multi_reduction <maximumf>, %75, %cst_32 [2] : vector<2x8x8xf32> to vector<2x8xf32>
    %77 = vector.shape_cast %76 : vector<2x8xf32> to vector<2x8x1xf32>
    %78 = vector.broadcast %77 : vector<2x8x1xf32> to vector<2x8x8xf32>
    %79 = arith.subf %75, %78 : vector<2x8x8xf32>
    %80 = math.exp %79 : vector<2x8x8xf32>
    %cst_33 = arith.constant dense<0.000000e+00> : vector<2x8xf32>
    %81 = vector.multi_reduction <add>, %80, %cst_33 [2] : vector<2x8x8xf32> to vector<2x8xf32>
    %82 = vector.shape_cast %81 : vector<2x8xf32> to vector<2x8x1xf32>
    %83 = tpu.reciprocal %82 {approx = true} : vector<2x8x1xf32> -> vector<2x8x1xf32>
    %84 = vector.broadcast %83 : vector<2x8x1xf32> to vector<2x8x8xf32>
    %85 = arith.mulf %80, %84 : vector<2x8x8xf32>
    "tpu.trace_start"() <{level = 10 : i32, message = "bqk,bkd->bqd"}> : () -> ()
    %cst_34 = arith.constant dense<0.000000e+00> : vector<2x8x8xf32>
    %86 = tpu.matmul %85, %72, %cst_34 {dimension_numbers = #tpu.dot_dimension_numbers<[2], [1], [1], [2], [0, 0, 0, 1, 1, 2], [0], [0]>} : vector<2x8x8xf32>, vector<2x8x8xf32>, vector<2x8x8xf32> -> vector<2x8x8xf32>
    "tpu.trace_stop"() : () -> ()
    %87 = vector.shape_cast %86 : vector<2x8x8xf32> to vector<16x8xf32>
    %88 = vector.extract_strided_slice %17 {offsets = [16, 0], sizes = [8, 32], strides = [1, 1]} : vector<32x32xf32> to vector<8x32xf32>
    %cst_35 = arith.constant dense<0.000000e+00> : vector<16x32xf32>
    %89 = tpu.matmul %87, %88, %cst_35 {dimension_numbers = #tpu.dot_dimension_numbers<[1], [0], [0], [1], [0, 0, 1, 1], [], []>} : vector<16x8xf32>, vector<8x32xf32>, vector<16x32xf32> -> vector<16x32xf32>
    %90 = arith.addf %66, %89 : vector<16x32xf32>
    %91 = vector.extract_strided_slice %16 {offsets = [0, 24], sizes = [16, 8], strides = [1, 1]} : vector<16x96xf32> to vector<16x8xf32>
    %92 = vector.shape_cast %91 : vector<16x8xf32> to vector<2x8x8xf32>
    %93 = vector.extract_strided_slice %16 {offsets = [0, 56], sizes = [16, 8], strides = [1, 1]} : vector<16x96xf32> to vector<16x8xf32>
    %94 = vector.shape_cast %93 : vector<16x8xf32> to vector<2x8x8xf32>
    %95 = vector.extract_strided_slice %16 {offsets = [0, 88], sizes = [16, 8], strides = [1, 1]} : vector<16x96xf32> to vector<16x8xf32>
    %96 = vector.shape_cast %95 : vector<16x8xf32> to vector<2x8x8xf32>
    "tpu.trace_start"() <{level = 10 : i32, message = "bqd,bkd->bqk"}> : () -> ()
    %cst_36 = arith.constant dense<0.000000e+00> : vector<2x8x8xf32>
    %97 = tpu.matmul %92, %94, %cst_36 {dimension_numbers = #tpu.dot_dimension_numbers<[2], [2], [1], [1], [0, 0, 0, 1, 1, 1], [0], [0]>} : vector<2x8x8xf32>, vector<2x8x8xf32>, vector<2x8x8xf32> -> vector<2x8x8xf32>
    "tpu.trace_stop"() : () -> ()
    %cst_37 = arith.constant 0.353553385 : f32
    %98 = vector.broadcast %cst_37 : f32 to vector<2x8x8xf32>
    %99 = arith.mulf %97, %98 : vector<2x8x8xf32>
    %cst_38 = arith.constant dense<0xFF800000> : vector<2x8xf32>
    %100 = vector.multi_reduction <maximumf>, %99, %cst_38 [2] : vector<2x8x8xf32> to vector<2x8xf32>
    %101 = vector.shape_cast %100 : vector<2x8xf32> to vector<2x8x1xf32>
    %102 = vector.broadcast %101 : vector<2x8x1xf32> to vector<2x8x8xf32>
    %103 = arith.subf %99, %102 : vector<2x8x8xf32>
    %104 = math.exp %103 : vector<2x8x8xf32>
    %cst_39 = arith.constant dense<0.000000e+00> : vector<2x8xf32>
    %105 = vector.multi_reduction <add>, %104, %cst_39 [2] : vector<2x8x8xf32> to vector<2x8xf32>
    %106 = vector.shape_cast %105 : vector<2x8xf32> to vector<2x8x1xf32>
    %107 = tpu.reciprocal %106 {approx = true} : vector<2x8x1xf32> -> vector<2x8x1xf32>
    %108 = vector.broadcast %107 : vector<2x8x1xf32> to vector<2x8x8xf32>
    %109 = arith.mulf %104, %108 : vector<2x8x8xf32>
    "tpu.trace_start"() <{level = 10 : i32, message = "bqk,bkd->bqd"}> : () -> ()
    %cst_40 = arith.constant dense<0.000000e+00> : vector<2x8x8xf32>
    %110 = tpu.matmul %109, %96, %cst_40 {dimension_numbers = #tpu.dot_dimension_numbers<[2], [1], [1], [2], [0, 0, 0, 1, 1, 2], [0], [0]>} : vector<2x8x8xf32>, vector<2x8x8xf32>, vector<2x8x8xf32> -> vector<2x8x8xf32>
    "tpu.trace_stop"() : () -> ()
    %111 = vector.shape_cast %110 : vector<2x8x8xf32> to vector<16x8xf32>
    %112 = vector.extract_strided_slice %17 {offsets = [24, 0], sizes = [8, 32], strides = [1, 1]} : vector<32x32xf32> to vector<8x32xf32>
    %cst_41 = arith.constant dense<0.000000e+00> : vector<16x32xf32>
    %113 = tpu.matmul %111, %112, %cst_41 {dimension_numbers = #tpu.dot_dimension_numbers<[1], [0], [0], [1], [0, 0, 1, 1], [], []>} : vector<16x8xf32>, vector<8x32xf32>, vector<16x32xf32> -> vector<16x32xf32>
    %114 = arith.addf %90, %113 : vector<16x32xf32>
    %c0_42 = arith.constant 0 : index
    %c0_43 = arith.constant 0 : index
    %115 = vector.load %arg7[%c0_42, %c0_43] : memref<1x32xf32, #tpu.memory_space<vmem>>, vector<1x32xf32>
    %116 = vector.broadcast %115 : vector<1x32xf32> to vector<16x32xf32>
    %117 = arith.addf %114, %116 : vector<16x32xf32>
    %118 = arith.addf %11, %117 : vector<16x32xf32>
    %cst_44 = arith.constant dense<0.000000e+00> : vector<16xf32>
    %119 = vector.multi_reduction <add>, %118, %cst_44 [1] : vector<16x32xf32> to vector<16xf32>
    %120 = vector.shape_cast %119 : vector<16xf32> to vector<16x1xf32>
    %cst_45 = arith.constant 3.200000e+01 : f32
    %121 = vector.broadcast %cst_45 : f32 to vector<16x1xf32>
    %122 = arith.divf %120, %121 : vector<16x1xf32>
    %123 = vector.broadcast %122 : vector<16x1xf32> to vector<16x32xf32>
    %124 = arith.subf %118, %123 : vector<16x32xf32>
    %125 = arith.mulf %124, %124 : vector<16x32xf32>
    %cst_46 = arith.constant dense<0.000000e+00> : vector<16xf32>
    %126 = vector.multi_reduction <add>, %125, %cst_46 [1] : vector<16x32xf32> to vector<16xf32>
    %127 = vector.shape_cast %126 : vector<16xf32> to vector<16x1xf32>
    %cst_47 = arith.constant 3.200000e+01 : f32
    %128 = vector.broadcast %cst_47 : f32 to vector<16x1xf32>
    %129 = arith.divf %127, %128 : vector<16x1xf32>
    %130 = vector.broadcast %122 : vector<16x1xf32> to vector<16x32xf32>
    %131 = arith.subf %118, %130 : vector<16x32xf32>
    %cst_48 = arith.constant 9.99999974E-6 : f32
    %132 = vector.broadcast %cst_48 : f32 to vector<16x1xf32>
    %133 = arith.addf %129, %132 : vector<16x1xf32>
    %134 = math.rsqrt %133 : vector<16x1xf32>
    %135 = vector.broadcast %134 : vector<16x1xf32> to vector<16x32xf32>
    %136 = arith.mulf %131, %135 : vector<16x32xf32>
    %c0_49 = arith.constant 0 : index
    %c0_50 = arith.constant 0 : index
    %137 = vector.load %arg8[%c0_49, %c0_50] : memref<1x32xf32, #tpu.memory_space<vmem>>, vector<1x32xf32>
    %138 = vector.broadcast %137 : vector<1x32xf32> to vector<16x32xf32>
    %139 = arith.mulf %136, %138 : vector<16x32xf32>
    %c0_51 = arith.constant 0 : index
    %c0_52 = arith.constant 0 : index
    %140 = vector.load %arg9[%c0_51, %c0_52] : memref<1x32xf32, #tpu.memory_space<vmem>>, vector<1x32xf32>
    %141 = vector.broadcast %140 : vector<1x32xf32> to vector<16x32xf32>
    %142 = arith.addf %139, %141 : vector<16x32xf32>
    %c0_53 = arith.constant 0 : index
    %c0_54 = arith.constant 0 : index
    %143 = vector.load %arg10[%c0_53, %c0_54] : memref<32x64xf32, #tpu.memory_space<vmem>>, vector<32x64xf32>
    %cst_55 = arith.constant dense<0.000000e+00> : vector<16x64xf32>
    %144 = tpu.matmul %142, %143, %cst_55 {dimension_numbers = #tpu.dot_dimension_numbers<[1], [0], [0], [1], [0, 0, 1, 1], [], []>} : vector<16x32xf32>, vector<32x64xf32>, vector<16x64xf32> -> vector<16x64xf32>
    %c0_56 = arith.constant 0 : index
    %c0_57 = arith.constant 0 : index
    %145 = vector.load %arg11[%c0_56, %c0_57] : memref<1x64xf32, #tpu.memory_space<vmem>>, vector<1x64xf32>
    %146 = vector.broadcast %145 : vector<1x64xf32> to vector<16x64xf32>
    %147 = arith.addf %144, %146 : vector<16x64xf32>
    %cst_58 = arith.constant 0.000000e+00 : f32
    %148 = vector.broadcast %cst_58 : f32 to vector<16x64xf32>
    %149 = arith.maximumf %147, %148 : vector<16x64xf32>
    %c0_59 = arith.constant 0 : index
    %c0_60 = arith.constant 0 : index
    %150 = vector.load %arg12[%c0_59, %c0_60] : memref<64x32xf32, #tpu.memory_space<vmem>>, vector<64x32xf32>
    %cst_61 = arith.constant dense<0.000000e+00> : vector<16x32xf32>
    %151 = tpu.matmul %149, %150, %cst_61 {dimension_numbers = #tpu.dot_dimension_numbers<[1], [0], [0], [1], [0, 0, 1, 1], [], []>} : vector<16x64xf32>, vector<64x32xf32>, vector<16x32xf32> -> vector<16x32xf32>
    %c0_62 = arith.constant 0 : index
    %c0_63 = arith.constant 0 : index
    %152 = vector.load %arg13[%c0_62, %c0_63] : memref<1x32xf32, #tpu.memory_space<vmem>>, vector<1x32xf32>
    %153 = vector.broadcast %152 : vector<1x32xf32> to vector<16x32xf32>
    %154 = arith.addf %151, %153 : vector<16x32xf32>
    %155 = arith.addf %142, %154 : vector<16x32xf32>
    %cst_64 = arith.constant dense<0.000000e+00> : vector<16xf32>
    %156 = vector.multi_reduction <add>, %155, %cst_64 [1] : vector<16x32xf32> to vector<16xf32>
    %157 = vector.shape_cast %156 : vector<16xf32> to vector<16x1xf32>
    %cst_65 = arith.constant 3.200000e+01 : f32
    %158 = vector.broadcast %cst_65 : f32 to vector<16x1xf32>
    %159 = arith.divf %157, %158 : vector<16x1xf32>
    %160 = vector.broadcast %159 : vector<16x1xf32> to vector<16x32xf32>
    %161 = arith.subf %155, %160 : vector<16x32xf32>
    %162 = arith.mulf %161, %161 : vector<16x32xf32>
    %cst_66 = arith.constant dense<0.000000e+00> : vector<16xf32>
    %163 = vector.multi_reduction <add>, %162, %cst_66 [1] : vector<16x32xf32> to vector<16xf32>
    %164 = vector.shape_cast %163 : vector<16xf32> to vector<16x1xf32>
    %cst_67 = arith.constant 3.200000e+01 : f32
    %165 = vector.broadcast %cst_67 : f32 to vector<16x1xf32>
    %166 = arith.divf %164, %165 : vector<16x1xf32>
    %167 = vector.broadcast %159 : vector<16x1xf32> to vector<16x32xf32>
    %168 = arith.subf %155, %167 : vector<16x32xf32>
    %cst_68 = arith.constant 9.99999974E-6 : f32
    %169 = vector.broadcast %cst_68 : f32 to vector<16x1xf32>
    %170 = arith.addf %166, %169 : vector<16x1xf32>
    %171 = math.rsqrt %170 : vector<16x1xf32>
    %172 = vector.broadcast %171 : vector<16x1xf32> to vector<16x32xf32>
    %173 = arith.mulf %168, %172 : vector<16x32xf32>
    %c0_69 = arith.constant 0 : index
    %c0_70 = arith.constant 0 : index
    %174 = vector.load %arg14[%c0_69, %c0_70] : memref<1x32xf32, #tpu.memory_space<vmem>>, vector<1x32xf32>
    %175 = vector.broadcast %174 : vector<1x32xf32> to vector<16x32xf32>
    %176 = arith.mulf %173, %175 : vector<16x32xf32>
    %c0_71 = arith.constant 0 : index
    %c0_72 = arith.constant 0 : index
    %177 = vector.load %arg15[%c0_71, %c0_72] : memref<1x32xf32, #tpu.memory_space<vmem>>, vector<1x32xf32>
    %178 = vector.broadcast %177 : vector<1x32xf32> to vector<16x32xf32>
    %179 = arith.addf %176, %178 : vector<16x32xf32>
    %c0_73 = arith.constant 0 : index
    %c0_74 = arith.constant 0 : index
    %180 = vector.load %arg16[%c0_73, %c0_74] : memref<32x96xf32, #tpu.memory_space<vmem>>, vector<32x96xf32>
    %cst_75 = arith.constant dense<0.000000e+00> : vector<16x96xf32>
    %181 = tpu.matmul %179, %180, %cst_75 {dimension_numbers = #tpu.dot_dimension_numbers<[1], [0], [0], [1], [0, 0, 1, 1], [], []>} : vector<16x32xf32>, vector<32x96xf32>, vector<16x96xf32> -> vector<16x96xf32>
    %c0_76 = arith.constant 0 : index
    %c0_77 = arith.constant 0 : index
    %182 = vector.load %arg17[%c0_76, %c0_77] : memref<1x96xf32, #tpu.memory_space<vmem>>, vector<1x96xf32>
    %183 = vector.broadcast %182 : vector<1x96xf32> to vector<16x96xf32>
    %184 = arith.addf %181, %183 : vector<16x96xf32>
    %c0_78 = arith.constant 0 : index
    %c0_79 = arith.constant 0 : index
    %185 = vector.load %arg18[%c0_78, %c0_79] : memref<32x32xf32, #tpu.memory_space<vmem>>, vector<32x32xf32>
    %cst_80 = arith.constant 0.000000e+00 : f32
    %186 = vector.broadcast %cst_80 : f32 to vector<16x32xf32>
    %187 = vector.extract_strided_slice %184 {offsets = [0, 0], sizes = [16, 8], strides = [1, 1]} : vector<16x96xf32> to vector<16x8xf32>
    %188 = vector.shape_cast %187 : vector<16x8xf32> to vector<2x8x8xf32>
    %189 = vector.extract_strided_slice %184 {offsets = [0, 32], sizes = [16, 8], strides = [1, 1]} : vector<16x96xf32> to vector<16x8xf32>
    %190 = vector.shape_cast %189 : vector<16x8xf32> to vector<2x8x8xf32>
    %191 = vector.extract_strided_slice %184 {offsets = [0, 64], sizes = [16, 8], strides = [1, 1]} : vector<16x96xf32> to vector<16x8xf32>
    %192 = vector.shape_cast %191 : vector<16x8xf32> to vector<2x8x8xf32>
    "tpu.trace_start"() <{level = 10 : i32, message = "bqd,bkd->bqk"}> : () -> ()
    %cst_81 = arith.constant dense<0.000000e+00> : vector<2x8x8xf32>
    %193 = tpu.matmul %188, %190, %cst_81 {dimension_numbers = #tpu.dot_dimension_numbers<[2], [2], [1], [1], [0, 0, 0, 1, 1, 1], [0], [0]>} : vector<2x8x8xf32>, vector<2x8x8xf32>, vector<2x8x8xf32> -> vector<2x8x8xf32>
    "tpu.trace_stop"() : () -> ()
    %cst_82 = arith.constant 0.353553385 : f32
    %194 = vector.broadcast %cst_82 : f32 to vector<2x8x8xf32>
    %195 = arith.mulf %193, %194 : vector<2x8x8xf32>
    %cst_83 = arith.constant dense<0xFF800000> : vector<2x8xf32>
    %196 = vector.multi_reduction <maximumf>, %195, %cst_83 [2] : vector<2x8x8xf32> to vector<2x8xf32>
    %197 = vector.shape_cast %196 : vector<2x8xf32> to vector<2x8x1xf32>
    %198 = vector.broadcast %197 : vector<2x8x1xf32> to vector<2x8x8xf32>
    %199 = arith.subf %195, %198 : vector<2x8x8xf32>
    %200 = math.exp %199 : vector<2x8x8xf32>
    %cst_84 = arith.constant dense<0.000000e+00> : vector<2x8xf32>
    %201 = vector.multi_reduction <add>, %200, %cst_84 [2] : vector<2x8x8xf32> to vector<2x8xf32>
    %202 = vector.shape_cast %201 : vector<2x8xf32> to vector<2x8x1xf32>
    %203 = tpu.reciprocal %202 {approx = true} : vector<2x8x1xf32> -> vector<2x8x1xf32>
    %204 = vector.broadcast %203 : vector<2x8x1xf32> to vector<2x8x8xf32>
    %205 = arith.mulf %200, %204 : vector<2x8x8xf32>
    "tpu.trace_start"() <{level = 10 : i32, message = "bqk,bkd->bqd"}> : () -> ()
    %cst_85 = arith.constant dense<0.000000e+00> : vector<2x8x8xf32>
    %206 = tpu.matmul %205, %192, %cst_85 {dimension_numbers = #tpu.dot_dimension_numbers<[2], [1], [1], [2], [0, 0, 0, 1, 1, 2], [0], [0]>} : vector<2x8x8xf32>, vector<2x8x8xf32>, vector<2x8x8xf32> -> vector<2x8x8xf32>
    "tpu.trace_stop"() : () -> ()
    %207 = vector.shape_cast %206 : vector<2x8x8xf32> to vector<16x8xf32>
    %208 = vector.extract_strided_slice %185 {offsets = [0, 0], sizes = [8, 32], strides = [1, 1]} : vector<32x32xf32> to vector<8x32xf32>
    %cst_86 = arith.constant dense<0.000000e+00> : vector<16x32xf32>
    %209 = tpu.matmul %207, %208, %cst_86 {dimension_numbers = #tpu.dot_dimension_numbers<[1], [0], [0], [1], [0, 0, 1, 1], [], []>} : vector<16x8xf32>, vector<8x32xf32>, vector<16x32xf32> -> vector<16x32xf32>
    %210 = arith.addf %186, %209 : vector<16x32xf32>
    %211 = vector.extract_strided_slice %184 {offsets = [0, 8], sizes = [16, 8], strides = [1, 1]} : vector<16x96xf32> to vector<16x8xf32>
    %212 = vector.shape_cast %211 : vector<16x8xf32> to vector<2x8x8xf32>
    %213 = vector.extract_strided_slice %184 {offsets = [0, 40], sizes = [16, 8], strides = [1, 1]} : vector<16x96xf32> to vector<16x8xf32>
    %214 = vector.shape_cast %213 : vector<16x8xf32> to vector<2x8x8xf32>
    %215 = vector.extract_strided_slice %184 {offsets = [0, 72], sizes = [16, 8], strides = [1, 1]} : vector<16x96xf32> to vector<16x8xf32>
    %216 = vector.shape_cast %215 : vector<16x8xf32> to vector<2x8x8xf32>
    "tpu.trace_start"() <{level = 10 : i32, message = "bqd,bkd->bqk"}> : () -> ()
    %cst_87 = arith.constant dense<0.000000e+00> : vector<2x8x8xf32>
    %217 = tpu.matmul %212, %214, %cst_87 {dimension_numbers = #tpu.dot_dimension_numbers<[2], [2], [1], [1], [0, 0, 0, 1, 1, 1], [0], [0]>} : vector<2x8x8xf32>, vector<2x8x8xf32>, vector<2x8x8xf32> -> vector<2x8x8xf32>
    "tpu.trace_stop"() : () -> ()
    %cst_88 = arith.constant 0.353553385 : f32
    %218 = vector.broadcast %cst_88 : f32 to vector<2x8x8xf32>
    %219 = arith.mulf %217, %218 : vector<2x8x8xf32>
    %cst_89 = arith.constant dense<0xFF800000> : vector<2x8xf32>
    %220 = vector.multi_reduction <maximumf>, %219, %cst_89 [2] : vector<2x8x8xf32> to vector<2x8xf32>
    %221 = vector.shape_cast %220 : vector<2x8xf32> to vector<2x8x1xf32>
    %222 = vector.broadcast %221 : vector<2x8x1xf32> to vector<2x8x8xf32>
    %223 = arith.subf %219, %222 : vector<2x8x8xf32>
    %224 = math.exp %223 : vector<2x8x8xf32>
    %cst_90 = arith.constant dense<0.000000e+00> : vector<2x8xf32>
    %225 = vector.multi_reduction <add>, %224, %cst_90 [2] : vector<2x8x8xf32> to vector<2x8xf32>
    %226 = vector.shape_cast %225 : vector<2x8xf32> to vector<2x8x1xf32>
    %227 = tpu.reciprocal %226 {approx = true} : vector<2x8x1xf32> -> vector<2x8x1xf32>
    %228 = vector.broadcast %227 : vector<2x8x1xf32> to vector<2x8x8xf32>
    %229 = arith.mulf %224, %228 : vector<2x8x8xf32>
    "tpu.trace_start"() <{level = 10 : i32, message = "bqk,bkd->bqd"}> : () -> ()
    %cst_91 = arith.constant dense<0.000000e+00> : vector<2x8x8xf32>
    %230 = tpu.matmul %229, %216, %cst_91 {dimension_numbers = #tpu.dot_dimension_numbers<[2], [1], [1], [2], [0, 0, 0, 1, 1, 2], [0], [0]>} : vector<2x8x8xf32>, vector<2x8x8xf32>, vector<2x8x8xf32> -> vector<2x8x8xf32>
    "tpu.trace_stop"() : () -> ()
    %231 = vector.shape_cast %230 : vector<2x8x8xf32> to vector<16x8xf32>
    %232 = vector.extract_strided_slice %185 {offsets = [8, 0], sizes = [8, 32], strides = [1, 1]} : vector<32x32xf32> to vector<8x32xf32>
    %cst_92 = arith.constant dense<0.000000e+00> : vector<16x32xf32>
    %233 = tpu.matmul %231, %232, %cst_92 {dimension_numbers = #tpu.dot_dimension_numbers<[1], [0], [0], [1], [0, 0, 1, 1], [], []>} : vector<16x8xf32>, vector<8x32xf32>, vector<16x32xf32> -> vector<16x32xf32>
    %234 = arith.addf %210, %233 : vector<16x32xf32>
    %235 = vector.extract_strided_slice %184 {offsets = [0, 16], sizes = [16, 8], strides = [1, 1]} : vector<16x96xf32> to vector<16x8xf32>
    %236 = vector.shape_cast %235 : vector<16x8xf32> to vector<2x8x8xf32>
    %237 = vector.extract_strided_slice %184 {offsets = [0, 48], sizes = [16, 8], strides = [1, 1]} : vector<16x96xf32> to vector<16x8xf32>
    %238 = vector.shape_cast %237 : vector<16x8xf32> to vector<2x8x8xf32>
    %239 = vector.extract_strided_slice %184 {offsets = [0, 80], sizes = [16, 8], strides = [1, 1]} : vector<16x96xf32> to vector<16x8xf32>
    %240 = vector.shape_cast %239 : vector<16x8xf32> to vector<2x8x8xf32>
    "tpu.trace_start"() <{level = 10 : i32, message = "bqd,bkd->bqk"}> : () -> ()
    %cst_93 = arith.constant dense<0.000000e+00> : vector<2x8x8xf32>
    %241 = tpu.matmul %236, %238, %cst_93 {dimension_numbers = #tpu.dot_dimension_numbers<[2], [2], [1], [1], [0, 0, 0, 1, 1, 1], [0], [0]>} : vector<2x8x8xf32>, vector<2x8x8xf32>, vector<2x8x8xf32> -> vector<2x8x8xf32>
    "tpu.trace_stop"() : () -> ()
    %cst_94 = arith.constant 0.353553385 : f32
    %242 = vector.broadcast %cst_94 : f32 to vector<2x8x8xf32>
    %243 = arith.mulf %241, %242 : vector<2x8x8xf32>
    %cst_95 = arith.constant dense<0xFF800000> : vector<2x8xf32>
    %244 = vector.multi_reduction <maximumf>, %243, %cst_95 [2] : vector<2x8x8xf32> to vector<2x8xf32>
    %245 = vector.shape_cast %244 : vector<2x8xf32> to vector<2x8x1xf32>
    %246 = vector.broadcast %245 : vector<2x8x1xf32> to vector<2x8x8xf32>
    %247 = arith.subf %243, %246 : vector<2x8x8xf32>
    %248 = math.exp %247 : vector<2x8x8xf32>
    %cst_96 = arith.constant dense<0.000000e+00> : vector<2x8xf32>
    %249 = vector.multi_reduction <add>, %248, %cst_96 [2] : vector<2x8x8xf32> to vector<2x8xf32>
    %250 = vector.shape_cast %249 : vector<2x8xf32> to vector<2x8x1xf32>
    %251 = tpu.reciprocal %250 {approx = true} : vector<2x8x1xf32> -> vector<2x8x1xf32>
    %252 = vector.broadcast %251 : vector<2x8x1xf32> to vector<2x8x8xf32>
    %253 = arith.mulf %248, %252 : vector<2x8x8xf32>
    "tpu.trace_start"() <{level = 10 : i32, message = "bqk,bkd->bqd"}> : () -> ()
    %cst_97 = arith.constant dense<0.000000e+00> : vector<2x8x8xf32>
    %254 = tpu.matmul %253, %240, %cst_97 {dimension_numbers = #tpu.dot_dimension_numbers<[2], [1], [1], [2], [0, 0, 0, 1, 1, 2], [0], [0]>} : vector<2x8x8xf32>, vector<2x8x8xf32>, vector<2x8x8xf32> -> vector<2x8x8xf32>
    "tpu.trace_stop"() : () -> ()
    %255 = vector.shape_cast %254 : vector<2x8x8xf32> to vector<16x8xf32>
    %256 = vector.extract_strided_slice %185 {offsets = [16, 0], sizes = [8, 32], strides = [1, 1]} : vector<32x32xf32> to vector<8x32xf32>
    %cst_98 = arith.constant dense<0.000000e+00> : vector<16x32xf32>
    %257 = tpu.matmul %255, %256, %cst_98 {dimension_numbers = #tpu.dot_dimension_numbers<[1], [0], [0], [1], [0, 0, 1, 1], [], []>} : vector<16x8xf32>, vector<8x32xf32>, vector<16x32xf32> -> vector<16x32xf32>
    %258 = arith.addf %234, %257 : vector<16x32xf32>
    %259 = vector.extract_strided_slice %184 {offsets = [0, 24], sizes = [16, 8], strides = [1, 1]} : vector<16x96xf32> to vector<16x8xf32>
    %260 = vector.shape_cast %259 : vector<16x8xf32> to vector<2x8x8xf32>
    %261 = vector.extract_strided_slice %184 {offsets = [0, 56], sizes = [16, 8], strides = [1, 1]} : vector<16x96xf32> to vector<16x8xf32>
    %262 = vector.shape_cast %261 : vector<16x8xf32> to vector<2x8x8xf32>
    %263 = vector.extract_strided_slice %184 {offsets = [0, 88], sizes = [16, 8], strides = [1, 1]} : vector<16x96xf32> to vector<16x8xf32>
    %264 = vector.shape_cast %263 : vector<16x8xf32> to vector<2x8x8xf32>
    "tpu.trace_start"() <{level = 10 : i32, message = "bqd,bkd->bqk"}> : () -> ()
    %cst_99 = arith.constant dense<0.000000e+00> : vector<2x8x8xf32>
    %265 = tpu.matmul %260, %262, %cst_99 {dimension_numbers = #tpu.dot_dimension_numbers<[2], [2], [1], [1], [0, 0, 0, 1, 1, 1], [0], [0]>} : vector<2x8x8xf32>, vector<2x8x8xf32>, vector<2x8x8xf32> -> vector<2x8x8xf32>
    "tpu.trace_stop"() : () -> ()
    %cst_100 = arith.constant 0.353553385 : f32
    %266 = vector.broadcast %cst_100 : f32 to vector<2x8x8xf32>
    %267 = arith.mulf %265, %266 : vector<2x8x8xf32>
    %cst_101 = arith.constant dense<0xFF800000> : vector<2x8xf32>
    %268 = vector.multi_reduction <maximumf>, %267, %cst_101 [2] : vector<2x8x8xf32> to vector<2x8xf32>
    %269 = vector.shape_cast %268 : vector<2x8xf32> to vector<2x8x1xf32>
    %270 = vector.broadcast %269 : vector<2x8x1xf32> to vector<2x8x8xf32>
    %271 = arith.subf %267, %270 : vector<2x8x8xf32>
    %272 = math.exp %271 : vector<2x8x8xf32>
    %cst_102 = arith.constant dense<0.000000e+00> : vector<2x8xf32>
    %273 = vector.multi_reduction <add>, %272, %cst_102 [2] : vector<2x8x8xf32> to vector<2x8xf32>
    %274 = vector.shape_cast %273 : vector<2x8xf32> to vector<2x8x1xf32>
    %275 = tpu.reciprocal %274 {approx = true} : vector<2x8x1xf32> -> vector<2x8x1xf32>
    %276 = vector.broadcast %275 : vector<2x8x1xf32> to vector<2x8x8xf32>
    %277 = arith.mulf %272, %276 : vector<2x8x8xf32>
    "tpu.trace_start"() <{level = 10 : i32, message = "bqk,bkd->bqd"}> : () -> ()
    %cst_103 = arith.constant dense<0.000000e+00> : vector<2x8x8xf32>
    %278 = tpu.matmul %277, %264, %cst_103 {dimension_numbers = #tpu.dot_dimension_numbers<[2], [1], [1], [2], [0, 0, 0, 1, 1, 2], [0], [0]>} : vector<2x8x8xf32>, vector<2x8x8xf32>, vector<2x8x8xf32> -> vector<2x8x8xf32>
    "tpu.trace_stop"() : () -> ()
    %279 = vector.shape_cast %278 : vector<2x8x8xf32> to vector<16x8xf32>
    %280 = vector.extract_strided_slice %185 {offsets = [24, 0], sizes = [8, 32], strides = [1, 1]} : vector<32x32xf32> to vector<8x32xf32>
    %cst_104 = arith.constant dense<0.000000e+00> : vector<16x32xf32>
    %281 = tpu.matmul %279, %280, %cst_104 {dimension_numbers = #tpu.dot_dimension_numbers<[1], [0], [0], [1], [0, 0, 1, 1], [], []>} : vector<16x8xf32>, vector<8x32xf32>, vector<16x32xf32> -> vector<16x32xf32>
    %282 = arith.addf %258, %281 : vector<16x32xf32>
    %c0_105 = arith.constant 0 : index
    %c0_106 = arith.constant 0 : index
    %283 = vector.load %arg19[%c0_105, %c0_106] : memref<1x32xf32, #tpu.memory_space<vmem>>, vector<1x32xf32>
    %284 = vector.broadcast %283 : vector<1x32xf32> to vector<16x32xf32>
    %285 = arith.addf %282, %284 : vector<16x32xf32>
    %286 = arith.addf %179, %285 : vector<16x32xf32>
    %cst_107 = arith.constant dense<0.000000e+00> : vector<16xf32>
    %287 = vector.multi_reduction <add>, %286, %cst_107 [1] : vector<16x32xf32> to vector<16xf32>
    %288 = vector.shape_cast %287 : vector<16xf32> to vector<16x1xf32>
    %cst_108 = arith.constant 3.200000e+01 : f32
    %289 = vector.broadcast %cst_108 : f32 to vector<16x1xf32>
    %290 = arith.divf %288, %289 : vector<16x1xf32>
    %291 = vector.broadcast %290 : vector<16x1xf32> to vector<16x32xf32>
    %292 = arith.subf %286, %291 : vector<16x32xf32>
    %293 = arith.mulf %292, %292 : vector<16x32xf32>
    %cst_109 = arith.constant dense<0.000000e+00> : vector<16xf32>
    %294 = vector.multi_reduction <add>, %293, %cst_109 [1] : vector<16x32xf32> to vector<16xf32>
    %295 = vector.shape_cast %294 : vector<16xf32> to vector<16x1xf32>
    %cst_110 = arith.constant 3.200000e+01 : f32
    %296 = vector.broadcast %cst_110 : f32 to vector<16x1xf32>
    %297 = arith.divf %295, %296 : vector<16x1xf32>
    %298 = vector.broadcast %290 : vector<16x1xf32> to vector<16x32xf32>
    %299 = arith.subf %286, %298 : vector<16x32xf32>
    %cst_111 = arith.constant 9.99999974E-6 : f32
    %300 = vector.broadcast %cst_111 : f32 to vector<16x1xf32>
    %301 = arith.addf %297, %300 : vector<16x1xf32>
    %302 = math.rsqrt %301 : vector<16x1xf32>
    %303 = vector.broadcast %302 : vector<16x1xf32> to vector<16x32xf32>
    %304 = arith.mulf %299, %303 : vector<16x32xf32>
    %c0_112 = arith.constant 0 : index
    %c0_113 = arith.constant 0 : index
    %305 = vector.load %arg20[%c0_112, %c0_113] : memref<1x32xf32, #tpu.memory_space<vmem>>, vector<1x32xf32>
    %306 = vector.broadcast %305 : vector<1x32xf32> to vector<16x32xf32>
    %307 = arith.mulf %304, %306 : vector<16x32xf32>
    %c0_114 = arith.constant 0 : index
    %c0_115 = arith.constant 0 : index
    %308 = vector.load %arg21[%c0_114, %c0_115] : memref<1x32xf32, #tpu.memory_space<vmem>>, vector<1x32xf32>
    %309 = vector.broadcast %308 : vector<1x32xf32> to vector<16x32xf32>
    %310 = arith.addf %307, %309 : vector<16x32xf32>
    %c0_116 = arith.constant 0 : index
    %c0_117 = arith.constant 0 : index
    %311 = vector.load %arg22[%c0_116, %c0_117] : memref<32x64xf32, #tpu.memory_space<vmem>>, vector<32x64xf32>
    %cst_118 = arith.constant dense<0.000000e+00> : vector<16x64xf32>
    %312 = tpu.matmul %310, %311, %cst_118 {dimension_numbers = #tpu.dot_dimension_numbers<[1], [0], [0], [1], [0, 0, 1, 1], [], []>} : vector<16x32xf32>, vector<32x64xf32>, vector<16x64xf32> -> vector<16x64xf32>
    %c0_119 = arith.constant 0 : index
    %c0_120 = arith.constant 0 : index
    %313 = vector.load %arg23[%c0_119, %c0_120] : memref<1x64xf32, #tpu.memory_space<vmem>>, vector<1x64xf32>
    %314 = vector.broadcast %313 : vector<1x64xf32> to vector<16x64xf32>
    %315 = arith.addf %312, %314 : vector<16x64xf32>
    %cst_121 = arith.constant 0.000000e+00 : f32
    %316 = vector.broadcast %cst_121 : f32 to vector<16x64xf32>
    %317 = arith.maximumf %315, %316 : vector<16x64xf32>
    %c0_122 = arith.constant 0 : index
    %c0_123 = arith.constant 0 : index
    %318 = vector.load %arg24[%c0_122, %c0_123] : memref<64x32xf32, #tpu.memory_space<vmem>>, vector<64x32xf32>
    %cst_124 = arith.constant dense<0.000000e+00> : vector<16x32xf32>
    %319 = tpu.matmul %317, %318, %cst_124 {dimension_numbers = #tpu.dot_dimension_numbers<[1], [0], [0], [1], [0, 0, 1, 1], [], []>} : vector<16x64xf32>, vector<64x32xf32>, vector<16x32xf32> -> vector<16x32xf32>
    %c0_125 = arith.constant 0 : index
    %c0_126 = arith.constant 0 : index
    %320 = vector.load %arg25[%c0_125, %c0_126] : memref<1x32xf32, #tpu.memory_space<vmem>>, vector<1x32xf32>
    %321 = vector.broadcast %320 : vector<1x32xf32> to vector<16x32xf32>
    %322 = arith.addf %319, %321 : vector<16x32xf32>
    %323 = arith.addf %310, %322 : vector<16x32xf32>
    %cst_127 = arith.constant dense<0.000000e+00> : vector<16xf32>
    %324 = vector.multi_reduction <add>, %323, %cst_127 [1] : vector<16x32xf32> to vector<16xf32>
    %325 = vector.shape_cast %324 : vector<16xf32> to vector<16x1xf32>
    %cst_128 = arith.constant 3.200000e+01 : f32
    %326 = vector.broadcast %cst_128 : f32 to vector<16x1xf32>
    %327 = arith.divf %325, %326 : vector<16x1xf32>
    %328 = vector.broadcast %327 : vector<16x1xf32> to vector<16x32xf32>
    %329 = arith.subf %323, %328 : vector<16x32xf32>
    %330 = arith.mulf %329, %329 : vector<16x32xf32>
    %cst_129 = arith.constant dense<0.000000e+00> : vector<16xf32>
    %331 = vector.multi_reduction <add>, %330, %cst_129 [1] : vector<16x32xf32> to vector<16xf32>
    %332 = vector.shape_cast %331 : vector<16xf32> to vector<16x1xf32>
    %cst_130 = arith.constant 3.200000e+01 : f32
    %333 = vector.broadcast %cst_130 : f32 to vector<16x1xf32>
    %334 = arith.divf %332, %333 : vector<16x1xf32>
    %335 = vector.broadcast %327 : vector<16x1xf32> to vector<16x32xf32>
    %336 = arith.subf %323, %335 : vector<16x32xf32>
    %cst_131 = arith.constant 9.99999974E-6 : f32
    %337 = vector.broadcast %cst_131 : f32 to vector<16x1xf32>
    %338 = arith.addf %334, %337 : vector<16x1xf32>
    %339 = math.rsqrt %338 : vector<16x1xf32>
    %340 = vector.broadcast %339 : vector<16x1xf32> to vector<16x32xf32>
    %341 = arith.mulf %336, %340 : vector<16x32xf32>
    %c0_132 = arith.constant 0 : index
    %c0_133 = arith.constant 0 : index
    %342 = vector.load %arg26[%c0_132, %c0_133] : memref<1x32xf32, #tpu.memory_space<vmem>>, vector<1x32xf32>
    %343 = vector.broadcast %342 : vector<1x32xf32> to vector<16x32xf32>
    %344 = arith.mulf %341, %343 : vector<16x32xf32>
    %c0_134 = arith.constant 0 : index
    %c0_135 = arith.constant 0 : index
    %345 = vector.load %arg27[%c0_134, %c0_135] : memref<1x32xf32, #tpu.memory_space<vmem>>, vector<1x32xf32>
    %346 = vector.broadcast %345 : vector<1x32xf32> to vector<16x32xf32>
    %347 = arith.addf %344, %346 : vector<16x32xf32>
    %c0_136 = arith.constant 0 : index
    %c0_137 = arith.constant 0 : index
    %348 = vector.load %arg28[%c0_136, %c0_137] : memref<32x128xf32, #tpu.memory_space<vmem>>, vector<32x128xf32>
    %cst_138 = arith.constant dense<0.000000e+00> : vector<16x128xf32>
    %349 = tpu.matmul %347, %348, %cst_138 {dimension_numbers = #tpu.dot_dimension_numbers<[1], [0], [0], [1], [0, 0, 1, 1], [], []>} : vector<16x32xf32>, vector<32x128xf32>, vector<16x128xf32> -> vector<16x128xf32>
    %c0_139 = arith.constant 0 : index
    %c0_140 = arith.constant 0 : index
    %350 = vector.load %arg30[%c0_139, %c0_140] : memref<1x128xf32, #tpu.memory_space<vmem>>, vector<1x128xf32>
    %351 = vector.broadcast %350 : vector<1x128xf32> to vector<16x128xf32>
    %352 = arith.addf %349, %351 : vector<16x128xf32>
    %353 = vector.shape_cast %352 : vector<16x128xf32> to vector<2x8x128xf32>
    %c0_141 = arith.constant 0 : index
    %c0_142 = arith.constant 0 : index
    %354 = vector.load %arg29[%c0_141, %c0_142] : memref<32x128xf32, #tpu.memory_space<vmem>>, vector<32x128xf32>
    %cst_143 = arith.constant 0.000000e+00 : f32
    %355 = vector.broadcast %cst_143 : f32 to vector<2x32xf32>
    %cst_144 = arith.constant 0.000000e+00 : f32
    %356 = vector.broadcast %cst_144 : f32 to vector<2x32xf32>
    %357 = vector.extract_strided_slice %353 {offsets = [0, 0, 0], sizes = [2, 1, 128], strides = [1, 1, 1]} : vector<2x8x128xf32> to vector<2x1x128xf32>
    %358 = vector.shape_cast %357 : vector<2x1x128xf32> to vector<2x128xf32>
    %cst_145 = arith.constant dense<0.000000e+00> : vector<2x128xf32>
    %359 = tpu.matmul %355, %354, %cst_145 {dimension_numbers = #tpu.dot_dimension_numbers<[1], [0], [0], [1], [0, 0, 1, 1], [], []>} : vector<2x32xf32>, vector<32x128xf32>, vector<2x128xf32> -> vector<2x128xf32>
    %360 = arith.addf %358, %359 : vector<2x128xf32>
    %361 = vector.extract_strided_slice %360 {offsets = [0, 0], sizes = [2, 32], strides = [1, 1]} : vector<2x128xf32> to vector<2x32xf32>
    %362 = arith.negf %361 : vector<2x32xf32>
    %363 = math.exp %362 : vector<2x32xf32>
    %cst_146 = arith.constant 1.000000e+00 : f32
    %364 = vector.broadcast %cst_146 : f32 to vector<2x32xf32>
    %365 = arith.addf %364, %363 : vector<2x32xf32>
    %366 = arith.divf %364, %365 : vector<2x32xf32>
    %367 = vector.extract_strided_slice %360 {offsets = [0, 32], sizes = [2, 32], strides = [1, 1]} : vector<2x128xf32> to vector<2x32xf32>
    %368 = arith.negf %367 : vector<2x32xf32>
    %369 = math.exp %368 : vector<2x32xf32>
    %cst_147 = arith.constant 1.000000e+00 : f32
    %370 = vector.broadcast %cst_147 : f32 to vector<2x32xf32>
    %371 = arith.addf %370, %369 : vector<2x32xf32>
    %372 = arith.divf %370, %371 : vector<2x32xf32>
    %373 = vector.extract_strided_slice %360 {offsets = [0, 64], sizes = [2, 32], strides = [1, 1]} : vector<2x128xf32> to vector<2x32xf32>
    %374 = math.tanh %373 : vector<2x32xf32>
    %375 = vector.extract_strided_slice %360 {offsets = [0, 96], sizes = [2, 32], strides = [1, 1]} : vector<2x128xf32> to vector<2x32xf32>
    %376 = arith.negf %375 : vector<2x32xf32>
    %377 = math.exp %376 : vector<2x32xf32>
    %cst_148 = arith.constant 1.000000e+00 : f32
    %378 = vector.broadcast %cst_148 : f32 to vector<2x32xf32>
    %379 = arith.addf %378, %377 : vector<2x32xf32>
    %380 = arith.divf %378, %379 : vector<2x32xf32>
    %381 = arith.mulf %372, %356 : vector<2x32xf32>
    %382 = arith.mulf %366, %374 : vector<2x32xf32>
    %383 = arith.addf %381, %382 : vector<2x32xf32>
    %384 = math.tanh %383 : vector<2x32xf32>
    %385 = arith.mulf %380, %384 : vector<2x32xf32>
    %c0_149 = arith.constant 0 : index
    %c0_150 = arith.constant 0 : index
    %c0_151 = arith.constant 0 : index
    %386 = vector.load %arg37[%c0_149, %c0_150, %c0_151] : memref<2x8x32xf32, #tpu.memory_space<vmem>>, vector<2x1x32xf32>
    %387 = vector.shape_cast %386 : vector<2x1x32xf32> to vector<2x32xf32>
    %388 = vector.shape_cast %385 : vector<2x32xf32> to vector<2x1x32xf32>
    tpu.vector_store %arg37[%c0_149, %c0_150, %c0_151], %388 {strides = array<i32>} : memref<2x8x32xf32, #tpu.memory_space<vmem>>, vector<2x1x32xf32>,
    %389 = vector.extract_strided_slice %353 {offsets = [0, 1, 0], sizes = [2, 1, 128], strides = [1, 1, 1]} : vector<2x8x128xf32> to vector<2x1x128xf32>
    %390 = vector.shape_cast %389 : vector<2x1x128xf32> to vector<2x128xf32>
    %cst_152 = arith.constant dense<0.000000e+00> : vector<2x128xf32>
    %391 = tpu.matmul %385, %354, %cst_152 {dimension_numbers = #tpu.dot_dimension_numbers<[1], [0], [0], [1], [0, 0, 1, 1], [], []>} : vector<2x32xf32>, vector<32x128xf32>, vector<2x128xf32> -> vector<2x128xf32>
    %392 = arith.addf %390, %391 : vector<2x128xf32>
    %393 = vector.extract_strided_slice %392 {offsets = [0, 0], sizes = [2, 32], strides = [1, 1]} : vector<2x128xf32> to vector<2x32xf32>
    %394 = arith.negf %393 : vector<2x32xf32>
    %395 = math.exp %394 : vector<2x32xf32>
    %cst_153 = arith.constant 1.000000e+00 : f32
    %396 = vector.broadcast %cst_153 : f32 to vector<2x32xf32>
    %397 = arith.addf %396, %395 : vector<2x32xf32>
    %398 = arith.divf %396, %397 : vector<2x32xf32>
    %399 = vector.extract_strided_slice %392 {offsets = [0, 32], sizes = [2, 32], strides = [1, 1]} : vector<2x128xf32> to vector<2x32xf32>
    %400 = arith.negf %399 : vector<2x32xf32>
    %401 = math.exp %400 : vector<2x32xf32>
    %cst_154 = arith.constant 1.000000e+00 : f32
    %402 = vector.broadcast %cst_154 : f32 to vector<2x32xf32>
    %403 = arith.addf %402, %401 : vector<2x32xf32>
    %404 = arith.divf %402, %403 : vector<2x32xf32>
    %405 = vector.extract_strided_slice %392 {offsets = [0, 64], sizes = [2, 32], strides = [1, 1]} : vector<2x128xf32> to vector<2x32xf32>
    %406 = math.tanh %405 : vector<2x32xf32>
    %407 = vector.extract_strided_slice %392 {offsets = [0, 96], sizes = [2, 32], strides = [1, 1]} : vector<2x128xf32> to vector<2x32xf32>
    %408 = arith.negf %407 : vector<2x32xf32>
    %409 = math.exp %408 : vector<2x32xf32>
    %cst_155 = arith.constant 1.000000e+00 : f32
    %410 = vector.broadcast %cst_155 : f32 to vector<2x32xf32>
    %411 = arith.addf %410, %409 : vector<2x32xf32>
    %412 = arith.divf %410, %411 : vector<2x32xf32>
    %413 = arith.mulf %404, %383 : vector<2x32xf32>
    %414 = arith.mulf %398, %406 : vector<2x32xf32>
    %415 = arith.addf %413, %414 : vector<2x32xf32>
    %416 = math.tanh %415 : vector<2x32xf32>
    %417 = arith.mulf %412, %416 : vector<2x32xf32>
    %c0_156 = arith.constant 0 : index
    %c1 = arith.constant 1 : index
    %c0_157 = arith.constant 0 : index
    %418 = vector.load %arg37[%c0_156, %c1, %c0_157] : memref<2x8x32xf32, #tpu.memory_space<vmem>>, vector<2x1x32xf32>
    %419 = vector.shape_cast %418 : vector<2x1x32xf32> to vector<2x32xf32>
    %420 = vector.shape_cast %417 : vector<2x32xf32> to vector<2x1x32xf32>
    tpu.vector_store %arg37[%c0_156, %c1, %c0_157], %420 {strides = array<i32>} : memref<2x8x32xf32, #tpu.memory_space<vmem>>, vector<2x1x32xf32>,
    %421 = vector.extract_strided_slice %353 {offsets = [0, 2, 0], sizes = [2, 1, 128], strides = [1, 1, 1]} : vector<2x8x128xf32> to vector<2x1x128xf32>
    %422 = vector.shape_cast %421 : vector<2x1x128xf32> to vector<2x128xf32>
    %cst_158 = arith.constant dense<0.000000e+00> : vector<2x128xf32>
    %423 = tpu.matmul %417, %354, %cst_158 {dimension_numbers = #tpu.dot_dimension_numbers<[1], [0], [0], [1], [0, 0, 1, 1], [], []>} : vector<2x32xf32>, vector<32x128xf32>, vector<2x128xf32> -> vector<2x128xf32>
    %424 = arith.addf %422, %423 : vector<2x128xf32>
    %425 = vector.extract_strided_slice %424 {offsets = [0, 0], sizes = [2, 32], strides = [1, 1]} : vector<2x128xf32> to vector<2x32xf32>
    %426 = arith.negf %425 : vector<2x32xf32>
    %427 = math.exp %426 : vector<2x32xf32>
    %cst_159 = arith.constant 1.000000e+00 : f32
    %428 = vector.broadcast %cst_159 : f32 to vector<2x32xf32>
    %429 = arith.addf %428, %427 : vector<2x32xf32>
    %430 = arith.divf %428, %429 : vector<2x32xf32>
    %431 = vector.extract_strided_slice %424 {offsets = [0, 32], sizes = [2, 32], strides = [1, 1]} : vector<2x128xf32> to vector<2x32xf32>
    %432 = arith.negf %431 : vector<2x32xf32>
    %433 = math.exp %432 : vector<2x32xf32>
    %cst_160 = arith.constant 1.000000e+00 : f32
    %434 = vector.broadcast %cst_160 : f32 to vector<2x32xf32>
    %435 = arith.addf %434, %433 : vector<2x32xf32>
    %436 = arith.divf %434, %435 : vector<2x32xf32>
    %437 = vector.extract_strided_slice %424 {offsets = [0, 64], sizes = [2, 32], strides = [1, 1]} : vector<2x128xf32> to vector<2x32xf32>
    %438 = math.tanh %437 : vector<2x32xf32>
    %439 = vector.extract_strided_slice %424 {offsets = [0, 96], sizes = [2, 32], strides = [1, 1]} : vector<2x128xf32> to vector<2x32xf32>
    %440 = arith.negf %439 : vector<2x32xf32>
    %441 = math.exp %440 : vector<2x32xf32>
    %cst_161 = arith.constant 1.000000e+00 : f32
    %442 = vector.broadcast %cst_161 : f32 to vector<2x32xf32>
    %443 = arith.addf %442, %441 : vector<2x32xf32>
    %444 = arith.divf %442, %443 : vector<2x32xf32>
    %445 = arith.mulf %436, %415 : vector<2x32xf32>
    %446 = arith.mulf %430, %438 : vector<2x32xf32>
    %447 = arith.addf %445, %446 : vector<2x32xf32>
    %448 = math.tanh %447 : vector<2x32xf32>
    %449 = arith.mulf %444, %448 : vector<2x32xf32>
    %c0_162 = arith.constant 0 : index
    %c2 = arith.constant 2 : index
    %c0_163 = arith.constant 0 : index
    %450 = vector.load %arg37[%c0_162, %c2, %c0_163] : memref<2x8x32xf32, #tpu.memory_space<vmem>>, vector<2x1x32xf32>
    %451 = vector.shape_cast %450 : vector<2x1x32xf32> to vector<2x32xf32>
    %452 = vector.shape_cast %449 : vector<2x32xf32> to vector<2x1x32xf32>
    tpu.vector_store %arg37[%c0_162, %c2, %c0_163], %452 {strides = array<i32>} : memref<2x8x32xf32, #tpu.memory_space<vmem>>, vector<2x1x32xf32>,
    %453 = vector.extract_strided_slice %353 {offsets = [0, 3, 0], sizes = [2, 1, 128], strides = [1, 1, 1]} : vector<2x8x128xf32> to vector<2x1x128xf32>
    %454 = vector.shape_cast %453 : vector<2x1x128xf32> to vector<2x128xf32>
    %cst_164 = arith.constant dense<0.000000e+00> : vector<2x128xf32>
    %455 = tpu.matmul %449, %354, %cst_164 {dimension_numbers = #tpu.dot_dimension_numbers<[1], [0], [0], [1], [0, 0, 1, 1], [], []>} : vector<2x32xf32>, vector<32x128xf32>, vector<2x128xf32> -> vector<2x128xf32>
    %456 = arith.addf %454, %455 : vector<2x128xf32>
    %457 = vector.extract_strided_slice %456 {offsets = [0, 0], sizes = [2, 32], strides = [1, 1]} : vector<2x128xf32> to vector<2x32xf32>
    %458 = arith.negf %457 : vector<2x32xf32>
    %459 = math.exp %458 : vector<2x32xf32>
    %cst_165 = arith.constant 1.000000e+00 : f32
    %460 = vector.broadcast %cst_165 : f32 to vector<2x32xf32>
    %461 = arith.addf %460, %459 : vector<2x32xf32>
    %462 = arith.divf %460, %461 : vector<2x32xf32>
    %463 = vector.extract_strided_slice %456 {offsets = [0, 32], sizes = [2, 32], strides = [1, 1]} : vector<2x128xf32> to vector<2x32xf32>
    %464 = arith.negf %463 : vector<2x32xf32>
    %465 = math.exp %464 : vector<2x32xf32>
    %cst_166 = arith.constant 1.000000e+00 : f32
    %466 = vector.broadcast %cst_166 : f32 to vector<2x32xf32>
    %467 = arith.addf %466, %465 : vector<2x32xf32>
    %468 = arith.divf %466, %467 : vector<2x32xf32>
    %469 = vector.extract_strided_slice %456 {offsets = [0, 64], sizes = [2, 32], strides = [1, 1]} : vector<2x128xf32> to vector<2x32xf32>
    %470 = math.tanh %469 : vector<2x32xf32>
    %471 = vector.extract_strided_slice %456 {offsets = [0, 96], sizes = [2, 32], strides = [1, 1]} : vector<2x128xf32> to vector<2x32xf32>
    %472 = arith.negf %471 : vector<2x32xf32>
    %473 = math.exp %472 : vector<2x32xf32>
    %cst_167 = arith.constant 1.000000e+00 : f32
    %474 = vector.broadcast %cst_167 : f32 to vector<2x32xf32>
    %475 = arith.addf %474, %473 : vector<2x32xf32>
    %476 = arith.divf %474, %475 : vector<2x32xf32>
    %477 = arith.mulf %468, %447 : vector<2x32xf32>
    %478 = arith.mulf %462, %470 : vector<2x32xf32>
    %479 = arith.addf %477, %478 : vector<2x32xf32>
    %480 = math.tanh %479 : vector<2x32xf32>
    %481 = arith.mulf %476, %480 : vector<2x32xf32>
    %c0_168 = arith.constant 0 : index
    %c3 = arith.constant 3 : index
    %c0_169 = arith.constant 0 : index
    %482 = vector.load %arg37[%c0_168, %c3, %c0_169] : memref<2x8x32xf32, #tpu.memory_space<vmem>>, vector<2x1x32xf32>
    %483 = vector.shape_cast %482 : vector<2x1x32xf32> to vector<2x32xf32>
    %484 = vector.shape_cast %481 : vector<2x32xf32> to vector<2x1x32xf32>
    tpu.vector_store %arg37[%c0_168, %c3, %c0_169], %484 {strides = array<i32>} : memref<2x8x32xf32, #tpu.memory_space<vmem>>, vector<2x1x32xf32>,
    %485 = vector.extract_strided_slice %353 {offsets = [0, 4, 0], sizes = [2, 1, 128], strides = [1, 1, 1]} : vector<2x8x128xf32> to vector<2x1x128xf32>
    %486 = vector.shape_cast %485 : vector<2x1x128xf32> to vector<2x128xf32>
    %cst_170 = arith.constant dense<0.000000e+00> : vector<2x128xf32>
    %487 = tpu.matmul %481, %354, %cst_170 {dimension_numbers = #tpu.dot_dimension_numbers<[1], [0], [0], [1], [0, 0, 1, 1], [], []>} : vector<2x32xf32>, vector<32x128xf32>, vector<2x128xf32> -> vector<2x128xf32>
    %488 = arith.addf %486, %487 : vector<2x128xf32>
    %489 = vector.extract_strided_slice %488 {offsets = [0, 0], sizes = [2, 32], strides = [1, 1]} : vector<2x128xf32> to vector<2x32xf32>
    %490 = arith.negf %489 : vector<2x32xf32>
    %491 = math.exp %490 : vector<2x32xf32>
    %cst_171 = arith.constant 1.000000e+00 : f32
    %492 = vector.broadcast %cst_171 : f32 to vector<2x32xf32>
    %493 = arith.addf %492, %491 : vector<2x32xf32>
    %494 = arith.divf %492, %493 : vector<2x32xf32>
    %495 = vector.extract_strided_slice %488 {offsets = [0, 32], sizes = [2, 32], strides = [1, 1]} : vector<2x128xf32> to vector<2x32xf32>
    %496 = arith.negf %495 : vector<2x32xf32>
    %497 = math.exp %496 : vector<2x32xf32>
    %cst_172 = arith.constant 1.000000e+00 : f32
    %498 = vector.broadcast %cst_172 : f32 to vector<2x32xf32>
    %499 = arith.addf %498, %497 : vector<2x32xf32>
    %500 = arith.divf %498, %499 : vector<2x32xf32>
    %501 = vector.extract_strided_slice %488 {offsets = [0, 64], sizes = [2, 32], strides = [1, 1]} : vector<2x128xf32> to vector<2x32xf32>
    %502 = math.tanh %501 : vector<2x32xf32>
    %503 = vector.extract_strided_slice %488 {offsets = [0, 96], sizes = [2, 32], strides = [1, 1]} : vector<2x128xf32> to vector<2x32xf32>
    %504 = arith.negf %503 : vector<2x32xf32>
    %505 = math.exp %504 : vector<2x32xf32>
    %cst_173 = arith.constant 1.000000e+00 : f32
    %506 = vector.broadcast %cst_173 : f32 to vector<2x32xf32>
    %507 = arith.addf %506, %505 : vector<2x32xf32>
    %508 = arith.divf %506, %507 : vector<2x32xf32>
    %509 = arith.mulf %500, %479 : vector<2x32xf32>
    %510 = arith.mulf %494, %502 : vector<2x32xf32>
    %511 = arith.addf %509, %510 : vector<2x32xf32>
    %512 = math.tanh %511 : vector<2x32xf32>
    %513 = arith.mulf %508, %512 : vector<2x32xf32>
    %c0_174 = arith.constant 0 : index
    %c4 = arith.constant 4 : index
    %c0_175 = arith.constant 0 : index
    %514 = vector.load %arg37[%c0_174, %c4, %c0_175] : memref<2x8x32xf32, #tpu.memory_space<vmem>>, vector<2x1x32xf32>
    %515 = vector.shape_cast %514 : vector<2x1x32xf32> to vector<2x32xf32>
    %516 = vector.shape_cast %513 : vector<2x32xf32> to vector<2x1x32xf32>
    tpu.vector_store %arg37[%c0_174, %c4, %c0_175], %516 {strides = array<i32>} : memref<2x8x32xf32, #tpu.memory_space<vmem>>, vector<2x1x32xf32>,
    %517 = vector.extract_strided_slice %353 {offsets = [0, 5, 0], sizes = [2, 1, 128], strides = [1, 1, 1]} : vector<2x8x128xf32> to vector<2x1x128xf32>
    %518 = vector.shape_cast %517 : vector<2x1x128xf32> to vector<2x128xf32>
    %cst_176 = arith.constant dense<0.000000e+00> : vector<2x128xf32>
    %519 = tpu.matmul %513, %354, %cst_176 {dimension_numbers = #tpu.dot_dimension_numbers<[1], [0], [0], [1], [0, 0, 1, 1], [], []>} : vector<2x32xf32>, vector<32x128xf32>, vector<2x128xf32> -> vector<2x128xf32>
    %520 = arith.addf %518, %519 : vector<2x128xf32>
    %521 = vector.extract_strided_slice %520 {offsets = [0, 0], sizes = [2, 32], strides = [1, 1]} : vector<2x128xf32> to vector<2x32xf32>
    %522 = arith.negf %521 : vector<2x32xf32>
    %523 = math.exp %522 : vector<2x32xf32>
    %cst_177 = arith.constant 1.000000e+00 : f32
    %524 = vector.broadcast %cst_177 : f32 to vector<2x32xf32>
    %525 = arith.addf %524, %523 : vector<2x32xf32>
    %526 = arith.divf %524, %525 : vector<2x32xf32>
    %527 = vector.extract_strided_slice %520 {offsets = [0, 32], sizes = [2, 32], strides = [1, 1]} : vector<2x128xf32> to vector<2x32xf32>
    %528 = arith.negf %527 : vector<2x32xf32>
    %529 = math.exp %528 : vector<2x32xf32>
    %cst_178 = arith.constant 1.000000e+00 : f32
    %530 = vector.broadcast %cst_178 : f32 to vector<2x32xf32>
    %531 = arith.addf %530, %529 : vector<2x32xf32>
    %532 = arith.divf %530, %531 : vector<2x32xf32>
    %533 = vector.extract_strided_slice %520 {offsets = [0, 64], sizes = [2, 32], strides = [1, 1]} : vector<2x128xf32> to vector<2x32xf32>
    %534 = math.tanh %533 : vector<2x32xf32>
    %535 = vector.extract_strided_slice %520 {offsets = [0, 96], sizes = [2, 32], strides = [1, 1]} : vector<2x128xf32> to vector<2x32xf32>
    %536 = arith.negf %535 : vector<2x32xf32>
    %537 = math.exp %536 : vector<2x32xf32>
    %cst_179 = arith.constant 1.000000e+00 : f32
    %538 = vector.broadcast %cst_179 : f32 to vector<2x32xf32>
    %539 = arith.addf %538, %537 : vector<2x32xf32>
    %540 = arith.divf %538, %539 : vector<2x32xf32>
    %541 = arith.mulf %532, %511 : vector<2x32xf32>
    %542 = arith.mulf %526, %534 : vector<2x32xf32>
    %543 = arith.addf %541, %542 : vector<2x32xf32>
    %544 = math.tanh %543 : vector<2x32xf32>
    %545 = arith.mulf %540, %544 : vector<2x32xf32>
    %c0_180 = arith.constant 0 : index
    %c5 = arith.constant 5 : index
    %c0_181 = arith.constant 0 : index
    %546 = vector.load %arg37[%c0_180, %c5, %c0_181] : memref<2x8x32xf32, #tpu.memory_space<vmem>>, vector<2x1x32xf32>
    %547 = vector.shape_cast %546 : vector<2x1x32xf32> to vector<2x32xf32>
    %548 = vector.shape_cast %545 : vector<2x32xf32> to vector<2x1x32xf32>
    tpu.vector_store %arg37[%c0_180, %c5, %c0_181], %548 {strides = array<i32>} : memref<2x8x32xf32, #tpu.memory_space<vmem>>, vector<2x1x32xf32>,
    %549 = vector.extract_strided_slice %353 {offsets = [0, 6, 0], sizes = [2, 1, 128], strides = [1, 1, 1]} : vector<2x8x128xf32> to vector<2x1x128xf32>
    %550 = vector.shape_cast %549 : vector<2x1x128xf32> to vector<2x128xf32>
    %cst_182 = arith.constant dense<0.000000e+00> : vector<2x128xf32>
    %551 = tpu.matmul %545, %354, %cst_182 {dimension_numbers = #tpu.dot_dimension_numbers<[1], [0], [0], [1], [0, 0, 1, 1], [], []>} : vector<2x32xf32>, vector<32x128xf32>, vector<2x128xf32> -> vector<2x128xf32>
    %552 = arith.addf %550, %551 : vector<2x128xf32>
    %553 = vector.extract_strided_slice %552 {offsets = [0, 0], sizes = [2, 32], strides = [1, 1]} : vector<2x128xf32> to vector<2x32xf32>
    %554 = arith.negf %553 : vector<2x32xf32>
    %555 = math.exp %554 : vector<2x32xf32>
    %cst_183 = arith.constant 1.000000e+00 : f32
    %556 = vector.broadcast %cst_183 : f32 to vector<2x32xf32>
    %557 = arith.addf %556, %555 : vector<2x32xf32>
    %558 = arith.divf %556, %557 : vector<2x32xf32>
    %559 = vector.extract_strided_slice %552 {offsets = [0, 32], sizes = [2, 32], strides = [1, 1]} : vector<2x128xf32> to vector<2x32xf32>
    %560 = arith.negf %559 : vector<2x32xf32>
    %561 = math.exp %560 : vector<2x32xf32>
    %cst_184 = arith.constant 1.000000e+00 : f32
    %562 = vector.broadcast %cst_184 : f32 to vector<2x32xf32>
    %563 = arith.addf %562, %561 : vector<2x32xf32>
    %564 = arith.divf %562, %563 : vector<2x32xf32>
    %565 = vector.extract_strided_slice %552 {offsets = [0, 64], sizes = [2, 32], strides = [1, 1]} : vector<2x128xf32> to vector<2x32xf32>
    %566 = math.tanh %565 : vector<2x32xf32>
    %567 = vector.extract_strided_slice %552 {offsets = [0, 96], sizes = [2, 32], strides = [1, 1]} : vector<2x128xf32> to vector<2x32xf32>
    %568 = arith.negf %567 : vector<2x32xf32>
    %569 = math.exp %568 : vector<2x32xf32>
    %cst_185 = arith.constant 1.000000e+00 : f32
    %570 = vector.broadcast %cst_185 : f32 to vector<2x32xf32>
    %571 = arith.addf %570, %569 : vector<2x32xf32>
    %572 = arith.divf %570, %571 : vector<2x32xf32>
    %573 = arith.mulf %564, %543 : vector<2x32xf32>
    %574 = arith.mulf %558, %566 : vector<2x32xf32>
    %575 = arith.addf %573, %574 : vector<2x32xf32>
    %576 = math.tanh %575 : vector<2x32xf32>
    %577 = arith.mulf %572, %576 : vector<2x32xf32>
    %c0_186 = arith.constant 0 : index
    %c6 = arith.constant 6 : index
    %c0_187 = arith.constant 0 : index
    %578 = vector.load %arg37[%c0_186, %c6, %c0_187] : memref<2x8x32xf32, #tpu.memory_space<vmem>>, vector<2x1x32xf32>
    %579 = vector.shape_cast %578 : vector<2x1x32xf32> to vector<2x32xf32>
    %580 = vector.shape_cast %577 : vector<2x32xf32> to vector<2x1x32xf32>
    tpu.vector_store %arg37[%c0_186, %c6, %c0_187], %580 {strides = array<i32>} : memref<2x8x32xf32, #tpu.memory_space<vmem>>, vector<2x1x32xf32>,
    %581 = vector.extract_strided_slice %353 {offsets = [0, 7, 0], sizes = [2, 1, 128], strides = [1, 1, 1]} : vector<2x8x128xf32> to vector<2x1x128xf32>
    %582 = vector.shape_cast %581 : vector<2x1x128xf32> to vector<2x128xf32>
    %cst_188 = arith.constant dense<0.000000e+00> : vector<2x128xf32>
    %583 = tpu.matmul %577, %354, %cst_188 {dimension_numbers = #tpu.dot_dimension_numbers<[1], [0], [0], [1], [0, 0, 1, 1], [], []>} : vector<2x32xf32>, vector<32x128xf32>, vector<2x128xf32> -> vector<2x128xf32>
    %584 = arith.addf %582, %583 : vector<2x128xf32>
    %585 = vector.extract_strided_slice %584 {offsets = [0, 0], sizes = [2, 32], strides = [1, 1]} : vector<2x128xf32> to vector<2x32xf32>
    %586 = arith.negf %585 : vector<2x32xf32>
    %587 = math.exp %586 : vector<2x32xf32>
    %cst_189 = arith.constant 1.000000e+00 : f32
    %588 = vector.broadcast %cst_189 : f32 to vector<2x32xf32>
    %589 = arith.addf %588, %587 : vector<2x32xf32>
    %590 = arith.divf %588, %589 : vector<2x32xf32>
    %591 = vector.extract_strided_slice %584 {offsets = [0, 32], sizes = [2, 32], strides = [1, 1]} : vector<2x128xf32> to vector<2x32xf32>
    %592 = arith.negf %591 : vector<2x32xf32>
    %593 = math.exp %592 : vector<2x32xf32>
    %cst_190 = arith.constant 1.000000e+00 : f32
    %594 = vector.broadcast %cst_190 : f32 to vector<2x32xf32>
    %595 = arith.addf %594, %593 : vector<2x32xf32>
    %596 = arith.divf %594, %595 : vector<2x32xf32>
    %597 = vector.extract_strided_slice %584 {offsets = [0, 64], sizes = [2, 32], strides = [1, 1]} : vector<2x128xf32> to vector<2x32xf32>
    %598 = math.tanh %597 : vector<2x32xf32>
    %599 = vector.extract_strided_slice %584 {offsets = [0, 96], sizes = [2, 32], strides = [1, 1]} : vector<2x128xf32> to vector<2x32xf32>
    %600 = arith.negf %599 : vector<2x32xf32>
    %601 = math.exp %600 : vector<2x32xf32>
    %cst_191 = arith.constant 1.000000e+00 : f32
    %602 = vector.broadcast %cst_191 : f32 to vector<2x32xf32>
    %603 = arith.addf %602, %601 : vector<2x32xf32>
    %604 = arith.divf %602, %603 : vector<2x32xf32>
    %605 = arith.mulf %596, %575 : vector<2x32xf32>
    %606 = arith.mulf %590, %598 : vector<2x32xf32>
    %607 = arith.addf %605, %606 : vector<2x32xf32>
    %608 = math.tanh %607 : vector<2x32xf32>
    %609 = arith.mulf %604, %608 : vector<2x32xf32>
    %c0_192 = arith.constant 0 : index
    %c7 = arith.constant 7 : index
    %c0_193 = arith.constant 0 : index
    %610 = vector.load %arg37[%c0_192, %c7, %c0_193] : memref<2x8x32xf32, #tpu.memory_space<vmem>>, vector<2x1x32xf32>
    %611 = vector.shape_cast %610 : vector<2x1x32xf32> to vector<2x32xf32>
    %612 = vector.shape_cast %609 : vector<2x32xf32> to vector<2x1x32xf32>
    tpu.vector_store %arg37[%c0_192, %c7, %c0_193], %612 {strides = array<i32>} : memref<2x8x32xf32, #tpu.memory_space<vmem>>, vector<2x1x32xf32>,
    %c0_194 = arith.constant 0 : index
    %c0_195 = arith.constant 0 : index
    %c0_196 = arith.constant 0 : index
    %613 = vector.load %arg37[%c0_194, %c0_195, %c0_196] : memref<2x8x32xf32, #tpu.memory_space<vmem>>, vector<2x8x32xf32>
    %614 = vector.shape_cast %613 : vector<2x8x32xf32> to vector<16x32xf32>
    %c0_197 = arith.constant 0 : index
    %c0_198 = arith.constant 0 : index
    %615 = vector.load %arg31[%c0_197, %c0_198] : memref<32x128xf32, #tpu.memory_space<vmem>>, vector<32x128xf32>
    %cst_199 = arith.constant dense<0.000000e+00> : vector<16x128xf32>
    %616 = tpu.matmul %614, %615, %cst_199 {dimension_numbers = #tpu.dot_dimension_numbers<[1], [0], [0], [1], [0, 0, 1, 1], [], []>} : vector<16x32xf32>, vector<32x128xf32>, vector<16x128xf32> -> vector<16x128xf32>
    %c0_200 = arith.constant 0 : index
    %c0_201 = arith.constant 0 : index
    %617 = vector.load %arg33[%c0_200, %c0_201] : memref<1x128xf32, #tpu.memory_space<vmem>>, vector<1x128xf32>
    %618 = vector.broadcast %617 : vector<1x128xf32> to vector<16x128xf32>
    %619 = arith.addf %616, %618 : vector<16x128xf32>
    %620 = vector.shape_cast %619 : vector<16x128xf32> to vector<2x8x128xf32>
    %c0_202 = arith.constant 0 : index
    %c0_203 = arith.constant 0 : index
    %621 = vector.load %arg32[%c0_202, %c0_203] : memref<32x128xf32, #tpu.memory_space<vmem>>, vector<32x128xf32>
    %cst_204 = arith.constant 0.000000e+00 : f32
    %622 = vector.broadcast %cst_204 : f32 to vector<2x32xf32>
    %cst_205 = arith.constant 0.000000e+00 : f32
    %623 = vector.broadcast %cst_205 : f32 to vector<2x32xf32>
    %624 = vector.extract_strided_slice %620 {offsets = [0, 0, 0], sizes = [2, 1, 128], strides = [1, 1, 1]} : vector<2x8x128xf32> to vector<2x1x128xf32>
    %625 = vector.shape_cast %624 : vector<2x1x128xf32> to vector<2x128xf32>
    %cst_206 = arith.constant dense<0.000000e+00> : vector<2x128xf32>
    %626 = tpu.matmul %622, %621, %cst_206 {dimension_numbers = #tpu.dot_dimension_numbers<[1], [0], [0], [1], [0, 0, 1, 1], [], []>} : vector<2x32xf32>, vector<32x128xf32>, vector<2x128xf32> -> vector<2x128xf32>
    %627 = arith.addf %625, %626 : vector<2x128xf32>
    %628 = vector.extract_strided_slice %627 {offsets = [0, 0], sizes = [2, 32], strides = [1, 1]} : vector<2x128xf32> to vector<2x32xf32>
    %629 = arith.negf %628 : vector<2x32xf32>
    %630 = math.exp %629 : vector<2x32xf32>
    %cst_207 = arith.constant 1.000000e+00 : f32
    %631 = vector.broadcast %cst_207 : f32 to vector<2x32xf32>
    %632 = arith.addf %631, %630 : vector<2x32xf32>
    %633 = arith.divf %631, %632 : vector<2x32xf32>
    %634 = vector.extract_strided_slice %627 {offsets = [0, 32], sizes = [2, 32], strides = [1, 1]} : vector<2x128xf32> to vector<2x32xf32>
    %635 = arith.negf %634 : vector<2x32xf32>
    %636 = math.exp %635 : vector<2x32xf32>
    %cst_208 = arith.constant 1.000000e+00 : f32
    %637 = vector.broadcast %cst_208 : f32 to vector<2x32xf32>
    %638 = arith.addf %637, %636 : vector<2x32xf32>
    %639 = arith.divf %637, %638 : vector<2x32xf32>
    %640 = vector.extract_strided_slice %627 {offsets = [0, 64], sizes = [2, 32], strides = [1, 1]} : vector<2x128xf32> to vector<2x32xf32>
    %641 = math.tanh %640 : vector<2x32xf32>
    %642 = vector.extract_strided_slice %627 {offsets = [0, 96], sizes = [2, 32], strides = [1, 1]} : vector<2x128xf32> to vector<2x32xf32>
    %643 = arith.negf %642 : vector<2x32xf32>
    %644 = math.exp %643 : vector<2x32xf32>
    %cst_209 = arith.constant 1.000000e+00 : f32
    %645 = vector.broadcast %cst_209 : f32 to vector<2x32xf32>
    %646 = arith.addf %645, %644 : vector<2x32xf32>
    %647 = arith.divf %645, %646 : vector<2x32xf32>
    %648 = arith.mulf %639, %623 : vector<2x32xf32>
    %649 = arith.mulf %633, %641 : vector<2x32xf32>
    %650 = arith.addf %648, %649 : vector<2x32xf32>
    %651 = math.tanh %650 : vector<2x32xf32>
    %652 = arith.mulf %647, %651 : vector<2x32xf32>
    %653 = vector.extract_strided_slice %620 {offsets = [0, 1, 0], sizes = [2, 1, 128], strides = [1, 1, 1]} : vector<2x8x128xf32> to vector<2x1x128xf32>
    %654 = vector.shape_cast %653 : vector<2x1x128xf32> to vector<2x128xf32>
    %cst_210 = arith.constant dense<0.000000e+00> : vector<2x128xf32>
    %655 = tpu.matmul %652, %621, %cst_210 {dimension_numbers = #tpu.dot_dimension_numbers<[1], [0], [0], [1], [0, 0, 1, 1], [], []>} : vector<2x32xf32>, vector<32x128xf32>, vector<2x128xf32> -> vector<2x128xf32>
    %656 = arith.addf %654, %655 : vector<2x128xf32>
    %657 = vector.extract_strided_slice %656 {offsets = [0, 0], sizes = [2, 32], strides = [1, 1]} : vector<2x128xf32> to vector<2x32xf32>
    %658 = arith.negf %657 : vector<2x32xf32>
    %659 = math.exp %658 : vector<2x32xf32>
    %cst_211 = arith.constant 1.000000e+00 : f32
    %660 = vector.broadcast %cst_211 : f32 to vector<2x32xf32>
    %661 = arith.addf %660, %659 : vector<2x32xf32>
    %662 = arith.divf %660, %661 : vector<2x32xf32>
    %663 = vector.extract_strided_slice %656 {offsets = [0, 32], sizes = [2, 32], strides = [1, 1]} : vector<2x128xf32> to vector<2x32xf32>
    %664 = arith.negf %663 : vector<2x32xf32>
    %665 = math.exp %664 : vector<2x32xf32>
    %cst_212 = arith.constant 1.000000e+00 : f32
    %666 = vector.broadcast %cst_212 : f32 to vector<2x32xf32>
    %667 = arith.addf %666, %665 : vector<2x32xf32>
    %668 = arith.divf %666, %667 : vector<2x32xf32>
    %669 = vector.extract_strided_slice %656 {offsets = [0, 64], sizes = [2, 32], strides = [1, 1]} : vector<2x128xf32> to vector<2x32xf32>
    %670 = math.tanh %669 : vector<2x32xf32>
    %671 = vector.extract_strided_slice %656 {offsets = [0, 96], sizes = [2, 32], strides = [1, 1]} : vector<2x128xf32> to vector<2x32xf32>
    %672 = arith.negf %671 : vector<2x32xf32>
    %673 = math.exp %672 : vector<2x32xf32>
    %cst_213 = arith.constant 1.000000e+00 : f32
    %674 = vector.broadcast %cst_213 : f32 to vector<2x32xf32>
    %675 = arith.addf %674, %673 : vector<2x32xf32>
    %676 = arith.divf %674, %675 : vector<2x32xf32>
    %677 = arith.mulf %668, %650 : vector<2x32xf32>
    %678 = arith.mulf %662, %670 : vector<2x32xf32>
    %679 = arith.addf %677, %678 : vector<2x32xf32>
    %680 = math.tanh %679 : vector<2x32xf32>
    %681 = arith.mulf %676, %680 : vector<2x32xf32>
    %682 = vector.extract_strided_slice %620 {offsets = [0, 2, 0], sizes = [2, 1, 128], strides = [1, 1, 1]} : vector<2x8x128xf32> to vector<2x1x128xf32>
    %683 = vector.shape_cast %682 : vector<2x1x128xf32> to vector<2x128xf32>
    %cst_214 = arith.constant dense<0.000000e+00> : vector<2x128xf32>
    %684 = tpu.matmul %681, %621, %cst_214 {dimension_numbers = #tpu.dot_dimension_numbers<[1], [0], [0], [1], [0, 0, 1, 1], [], []>} : vector<2x32xf32>, vector<32x128xf32>, vector<2x128xf32> -> vector<2x128xf32>
    %685 = arith.addf %683, %684 : vector<2x128xf32>
    %686 = vector.extract_strided_slice %685 {offsets = [0, 0], sizes = [2, 32], strides = [1, 1]} : vector<2x128xf32> to vector<2x32xf32>
    %687 = arith.negf %686 : vector<2x32xf32>
    %688 = math.exp %687 : vector<2x32xf32>
    %cst_215 = arith.constant 1.000000e+00 : f32
    %689 = vector.broadcast %cst_215 : f32 to vector<2x32xf32>
    %690 = arith.addf %689, %688 : vector<2x32xf32>
    %691 = arith.divf %689, %690 : vector<2x32xf32>
    %692 = vector.extract_strided_slice %685 {offsets = [0, 32], sizes = [2, 32], strides = [1, 1]} : vector<2x128xf32> to vector<2x32xf32>
    %693 = arith.negf %692 : vector<2x32xf32>
    %694 = math.exp %693 : vector<2x32xf32>
    %cst_216 = arith.constant 1.000000e+00 : f32
    %695 = vector.broadcast %cst_216 : f32 to vector<2x32xf32>
    %696 = arith.addf %695, %694 : vector<2x32xf32>
    %697 = arith.divf %695, %696 : vector<2x32xf32>
    %698 = vector.extract_strided_slice %685 {offsets = [0, 64], sizes = [2, 32], strides = [1, 1]} : vector<2x128xf32> to vector<2x32xf32>
    %699 = math.tanh %698 : vector<2x32xf32>
    %700 = vector.extract_strided_slice %685 {offsets = [0, 96], sizes = [2, 32], strides = [1, 1]} : vector<2x128xf32> to vector<2x32xf32>
    %701 = arith.negf %700 : vector<2x32xf32>
    %702 = math.exp %701 : vector<2x32xf32>
    %cst_217 = arith.constant 1.000000e+00 : f32
    %703 = vector.broadcast %cst_217 : f32 to vector<2x32xf32>
    %704 = arith.addf %703, %702 : vector<2x32xf32>
    %705 = arith.divf %703, %704 : vector<2x32xf32>
    %706 = arith.mulf %697, %679 : vector<2x32xf32>
    %707 = arith.mulf %691, %699 : vector<2x32xf32>
    %708 = arith.addf %706, %707 : vector<2x32xf32>
    %709 = math.tanh %708 : vector<2x32xf32>
    %710 = arith.mulf %705, %709 : vector<2x32xf32>
    %711 = vector.extract_strided_slice %620 {offsets = [0, 3, 0], sizes = [2, 1, 128], strides = [1, 1, 1]} : vector<2x8x128xf32> to vector<2x1x128xf32>
    %712 = vector.shape_cast %711 : vector<2x1x128xf32> to vector<2x128xf32>
    %cst_218 = arith.constant dense<0.000000e+00> : vector<2x128xf32>
    %713 = tpu.matmul %710, %621, %cst_218 {dimension_numbers = #tpu.dot_dimension_numbers<[1], [0], [0], [1], [0, 0, 1, 1], [], []>} : vector<2x32xf32>, vector<32x128xf32>, vector<2x128xf32> -> vector<2x128xf32>
    %714 = arith.addf %712, %713 : vector<2x128xf32>
    %715 = vector.extract_strided_slice %714 {offsets = [0, 0], sizes = [2, 32], strides = [1, 1]} : vector<2x128xf32> to vector<2x32xf32>
    %716 = arith.negf %715 : vector<2x32xf32>
    %717 = math.exp %716 : vector<2x32xf32>
    %cst_219 = arith.constant 1.000000e+00 : f32
    %718 = vector.broadcast %cst_219 : f32 to vector<2x32xf32>
    %719 = arith.addf %718, %717 : vector<2x32xf32>
    %720 = arith.divf %718, %719 : vector<2x32xf32>
    %721 = vector.extract_strided_slice %714 {offsets = [0, 32], sizes = [2, 32], strides = [1, 1]} : vector<2x128xf32> to vector<2x32xf32>
    %722 = arith.negf %721 : vector<2x32xf32>
    %723 = math.exp %722 : vector<2x32xf32>
    %cst_220 = arith.constant 1.000000e+00 : f32
    %724 = vector.broadcast %cst_220 : f32 to vector<2x32xf32>
    %725 = arith.addf %724, %723 : vector<2x32xf32>
    %726 = arith.divf %724, %725 : vector<2x32xf32>
    %727 = vector.extract_strided_slice %714 {offsets = [0, 64], sizes = [2, 32], strides = [1, 1]} : vector<2x128xf32> to vector<2x32xf32>
    %728 = math.tanh %727 : vector<2x32xf32>
    %729 = vector.extract_strided_slice %714 {offsets = [0, 96], sizes = [2, 32], strides = [1, 1]} : vector<2x128xf32> to vector<2x32xf32>
    %730 = arith.negf %729 : vector<2x32xf32>
    %731 = math.exp %730 : vector<2x32xf32>
    %cst_221 = arith.constant 1.000000e+00 : f32
    %732 = vector.broadcast %cst_221 : f32 to vector<2x32xf32>
    %733 = arith.addf %732, %731 : vector<2x32xf32>
    %734 = arith.divf %732, %733 : vector<2x32xf32>
    %735 = arith.mulf %726, %708 : vector<2x32xf32>
    %736 = arith.mulf %720, %728 : vector<2x32xf32>
    %737 = arith.addf %735, %736 : vector<2x32xf32>
    %738 = math.tanh %737 : vector<2x32xf32>
    %739 = arith.mulf %734, %738 : vector<2x32xf32>
    %740 = vector.extract_strided_slice %620 {offsets = [0, 4, 0], sizes = [2, 1, 128], strides = [1, 1, 1]} : vector<2x8x128xf32> to vector<2x1x128xf32>
    %741 = vector.shape_cast %740 : vector<2x1x128xf32> to vector<2x128xf32>
    %cst_222 = arith.constant dense<0.000000e+00> : vector<2x128xf32>
    %742 = tpu.matmul %739, %621, %cst_222 {dimension_numbers = #tpu.dot_dimension_numbers<[1], [0], [0], [1], [0, 0, 1, 1], [], []>} : vector<2x32xf32>, vector<32x128xf32>, vector<2x128xf32> -> vector<2x128xf32>
    %743 = arith.addf %741, %742 : vector<2x128xf32>
    %744 = vector.extract_strided_slice %743 {offsets = [0, 0], sizes = [2, 32], strides = [1, 1]} : vector<2x128xf32> to vector<2x32xf32>
    %745 = arith.negf %744 : vector<2x32xf32>
    %746 = math.exp %745 : vector<2x32xf32>
    %cst_223 = arith.constant 1.000000e+00 : f32
    %747 = vector.broadcast %cst_223 : f32 to vector<2x32xf32>
    %748 = arith.addf %747, %746 : vector<2x32xf32>
    %749 = arith.divf %747, %748 : vector<2x32xf32>
    %750 = vector.extract_strided_slice %743 {offsets = [0, 32], sizes = [2, 32], strides = [1, 1]} : vector<2x128xf32> to vector<2x32xf32>
    %751 = arith.negf %750 : vector<2x32xf32>
    %752 = math.exp %751 : vector<2x32xf32>
    %cst_224 = arith.constant 1.000000e+00 : f32
    %753 = vector.broadcast %cst_224 : f32 to vector<2x32xf32>
    %754 = arith.addf %753, %752 : vector<2x32xf32>
    %755 = arith.divf %753, %754 : vector<2x32xf32>
    %756 = vector.extract_strided_slice %743 {offsets = [0, 64], sizes = [2, 32], strides = [1, 1]} : vector<2x128xf32> to vector<2x32xf32>
    %757 = math.tanh %756 : vector<2x32xf32>
    %758 = vector.extract_strided_slice %743 {offsets = [0, 96], sizes = [2, 32], strides = [1, 1]} : vector<2x128xf32> to vector<2x32xf32>
    %759 = arith.negf %758 : vector<2x32xf32>
    %760 = math.exp %759 : vector<2x32xf32>
    %cst_225 = arith.constant 1.000000e+00 : f32
    %761 = vector.broadcast %cst_225 : f32 to vector<2x32xf32>
    %762 = arith.addf %761, %760 : vector<2x32xf32>
    %763 = arith.divf %761, %762 : vector<2x32xf32>
    %764 = arith.mulf %755, %737 : vector<2x32xf32>
    %765 = arith.mulf %749, %757 : vector<2x32xf32>
    %766 = arith.addf %764, %765 : vector<2x32xf32>
    %767 = math.tanh %766 : vector<2x32xf32>
    %768 = arith.mulf %763, %767 : vector<2x32xf32>
    %769 = vector.extract_strided_slice %620 {offsets = [0, 5, 0], sizes = [2, 1, 128], strides = [1, 1, 1]} : vector<2x8x128xf32> to vector<2x1x128xf32>
    %770 = vector.shape_cast %769 : vector<2x1x128xf32> to vector<2x128xf32>
    %cst_226 = arith.constant dense<0.000000e+00> : vector<2x128xf32>
    %771 = tpu.matmul %768, %621, %cst_226 {dimension_numbers = #tpu.dot_dimension_numbers<[1], [0], [0], [1], [0, 0, 1, 1], [], []>} : vector<2x32xf32>, vector<32x128xf32>, vector<2x128xf32> -> vector<2x128xf32>
    %772 = arith.addf %770, %771 : vector<2x128xf32>
    %773 = vector.extract_strided_slice %772 {offsets = [0, 0], sizes = [2, 32], strides = [1, 1]} : vector<2x128xf32> to vector<2x32xf32>
    %774 = arith.negf %773 : vector<2x32xf32>
    %775 = math.exp %774 : vector<2x32xf32>
    %cst_227 = arith.constant 1.000000e+00 : f32
    %776 = vector.broadcast %cst_227 : f32 to vector<2x32xf32>
    %777 = arith.addf %776, %775 : vector<2x32xf32>
    %778 = arith.divf %776, %777 : vector<2x32xf32>
    %779 = vector.extract_strided_slice %772 {offsets = [0, 32], sizes = [2, 32], strides = [1, 1]} : vector<2x128xf32> to vector<2x32xf32>
    %780 = arith.negf %779 : vector<2x32xf32>
    %781 = math.exp %780 : vector<2x32xf32>
    %cst_228 = arith.constant 1.000000e+00 : f32
    %782 = vector.broadcast %cst_228 : f32 to vector<2x32xf32>
    %783 = arith.addf %782, %781 : vector<2x32xf32>
    %784 = arith.divf %782, %783 : vector<2x32xf32>
    %785 = vector.extract_strided_slice %772 {offsets = [0, 64], sizes = [2, 32], strides = [1, 1]} : vector<2x128xf32> to vector<2x32xf32>
    %786 = math.tanh %785 : vector<2x32xf32>
    %787 = vector.extract_strided_slice %772 {offsets = [0, 96], sizes = [2, 32], strides = [1, 1]} : vector<2x128xf32> to vector<2x32xf32>
    %788 = arith.negf %787 : vector<2x32xf32>
    %789 = math.exp %788 : vector<2x32xf32>
    %cst_229 = arith.constant 1.000000e+00 : f32
    %790 = vector.broadcast %cst_229 : f32 to vector<2x32xf32>
    %791 = arith.addf %790, %789 : vector<2x32xf32>
    %792 = arith.divf %790, %791 : vector<2x32xf32>
    %793 = arith.mulf %784, %766 : vector<2x32xf32>
    %794 = arith.mulf %778, %786 : vector<2x32xf32>
    %795 = arith.addf %793, %794 : vector<2x32xf32>
    %796 = math.tanh %795 : vector<2x32xf32>
    %797 = arith.mulf %792, %796 : vector<2x32xf32>
    %798 = vector.extract_strided_slice %620 {offsets = [0, 6, 0], sizes = [2, 1, 128], strides = [1, 1, 1]} : vector<2x8x128xf32> to vector<2x1x128xf32>
    %799 = vector.shape_cast %798 : vector<2x1x128xf32> to vector<2x128xf32>
    %cst_230 = arith.constant dense<0.000000e+00> : vector<2x128xf32>
    %800 = tpu.matmul %797, %621, %cst_230 {dimension_numbers = #tpu.dot_dimension_numbers<[1], [0], [0], [1], [0, 0, 1, 1], [], []>} : vector<2x32xf32>, vector<32x128xf32>, vector<2x128xf32> -> vector<2x128xf32>
    %801 = arith.addf %799, %800 : vector<2x128xf32>
    %802 = vector.extract_strided_slice %801 {offsets = [0, 0], sizes = [2, 32], strides = [1, 1]} : vector<2x128xf32> to vector<2x32xf32>
    %803 = arith.negf %802 : vector<2x32xf32>
    %804 = math.exp %803 : vector<2x32xf32>
    %cst_231 = arith.constant 1.000000e+00 : f32
    %805 = vector.broadcast %cst_231 : f32 to vector<2x32xf32>
    %806 = arith.addf %805, %804 : vector<2x32xf32>
    %807 = arith.divf %805, %806 : vector<2x32xf32>
    %808 = vector.extract_strided_slice %801 {offsets = [0, 32], sizes = [2, 32], strides = [1, 1]} : vector<2x128xf32> to vector<2x32xf32>
    %809 = arith.negf %808 : vector<2x32xf32>
    %810 = math.exp %809 : vector<2x32xf32>
    %cst_232 = arith.constant 1.000000e+00 : f32
    %811 = vector.broadcast %cst_232 : f32 to vector<2x32xf32>
    %812 = arith.addf %811, %810 : vector<2x32xf32>
    %813 = arith.divf %811, %812 : vector<2x32xf32>
    %814 = vector.extract_strided_slice %801 {offsets = [0, 64], sizes = [2, 32], strides = [1, 1]} : vector<2x128xf32> to vector<2x32xf32>
    %815 = math.tanh %814 : vector<2x32xf32>
    %816 = vector.extract_strided_slice %801 {offsets = [0, 96], sizes = [2, 32], strides = [1, 1]} : vector<2x128xf32> to vector<2x32xf32>
    %817 = arith.negf %816 : vector<2x32xf32>
    %818 = math.exp %817 : vector<2x32xf32>
    %cst_233 = arith.constant 1.000000e+00 : f32
    %819 = vector.broadcast %cst_233 : f32 to vector<2x32xf32>
    %820 = arith.addf %819, %818 : vector<2x32xf32>
    %821 = arith.divf %819, %820 : vector<2x32xf32>
    %822 = arith.mulf %813, %795 : vector<2x32xf32>
    %823 = arith.mulf %807, %815 : vector<2x32xf32>
    %824 = arith.addf %822, %823 : vector<2x32xf32>
    %825 = math.tanh %824 : vector<2x32xf32>
    %826 = arith.mulf %821, %825 : vector<2x32xf32>
    %827 = vector.extract_strided_slice %620 {offsets = [0, 7, 0], sizes = [2, 1, 128], strides = [1, 1, 1]} : vector<2x8x128xf32> to vector<2x1x128xf32>
    %828 = vector.shape_cast %827 : vector<2x1x128xf32> to vector<2x128xf32>
    %cst_234 = arith.constant dense<0.000000e+00> : vector<2x128xf32>
    %829 = tpu.matmul %826, %621, %cst_234 {dimension_numbers = #tpu.dot_dimension_numbers<[1], [0], [0], [1], [0, 0, 1, 1], [], []>} : vector<2x32xf32>, vector<32x128xf32>, vector<2x128xf32> -> vector<2x128xf32>
    %830 = arith.addf %828, %829 : vector<2x128xf32>
    %831 = vector.extract_strided_slice %830 {offsets = [0, 0], sizes = [2, 32], strides = [1, 1]} : vector<2x128xf32> to vector<2x32xf32>
    %832 = arith.negf %831 : vector<2x32xf32>
    %833 = math.exp %832 : vector<2x32xf32>
    %cst_235 = arith.constant 1.000000e+00 : f32
    %834 = vector.broadcast %cst_235 : f32 to vector<2x32xf32>
    %835 = arith.addf %834, %833 : vector<2x32xf32>
    %836 = arith.divf %834, %835 : vector<2x32xf32>
    %837 = vector.extract_strided_slice %830 {offsets = [0, 32], sizes = [2, 32], strides = [1, 1]} : vector<2x128xf32> to vector<2x32xf32>
    %838 = arith.negf %837 : vector<2x32xf32>
    %839 = math.exp %838 : vector<2x32xf32>
    %cst_236 = arith.constant 1.000000e+00 : f32
    %840 = vector.broadcast %cst_236 : f32 to vector<2x32xf32>
    %841 = arith.addf %840, %839 : vector<2x32xf32>
    %842 = arith.divf %840, %841 : vector<2x32xf32>
    %843 = vector.extract_strided_slice %830 {offsets = [0, 64], sizes = [2, 32], strides = [1, 1]} : vector<2x128xf32> to vector<2x32xf32>
    %844 = math.tanh %843 : vector<2x32xf32>
    %845 = vector.extract_strided_slice %830 {offsets = [0, 96], sizes = [2, 32], strides = [1, 1]} : vector<2x128xf32> to vector<2x32xf32>
    %846 = arith.negf %845 : vector<2x32xf32>
    %847 = math.exp %846 : vector<2x32xf32>
    %cst_237 = arith.constant 1.000000e+00 : f32
    %848 = vector.broadcast %cst_237 : f32 to vector<2x32xf32>
    %849 = arith.addf %848, %847 : vector<2x32xf32>
    %850 = arith.divf %848, %849 : vector<2x32xf32>
    %851 = arith.mulf %842, %824 : vector<2x32xf32>
    %852 = arith.mulf %836, %844 : vector<2x32xf32>
    %853 = arith.addf %851, %852 : vector<2x32xf32>
    %854 = math.tanh %853 : vector<2x32xf32>
    %855 = arith.mulf %850, %854 : vector<2x32xf32>
    %c0_238 = arith.constant 0 : index
    %c0_239 = arith.constant 0 : index
    %856 = vector.load %arg34[%c0_238, %c0_239] : memref<32x5xf32, #tpu.memory_space<vmem>>, vector<32x5xf32>
    %cst_240 = arith.constant dense<0.000000e+00> : vector<2x5xf32>
    %857 = tpu.matmul %855, %856, %cst_240 {dimension_numbers = #tpu.dot_dimension_numbers<[1], [0], [0], [1], [0, 0, 1, 1], [], []>} : vector<2x32xf32>, vector<32x5xf32>, vector<2x5xf32> -> vector<2x5xf32>
    %c0_241 = arith.constant 0 : index
    %c0_242 = arith.constant 0 : index
    %858 = vector.load %arg35[%c0_241, %c0_242] : memref<1x5xf32, #tpu.memory_space<vmem>>, vector<1x5xf32>
    %859 = vector.broadcast %858 : vector<1x5xf32> to vector<2x5xf32>
    %860 = arith.addf %857, %859 : vector<2x5xf32>
    %c0_243 = arith.constant 0 : index
    %c0_244 = arith.constant 0 : index
    %861 = vector.load %arg36[%c0_243, %c0_244] : memref<2x5xf32, #tpu.memory_space<vmem>>, vector<2x5xf32>
    tpu.vector_store %arg36[%c0_243, %c0_244], %860 {strides = array<i32>} : memref<2x5xf32, #tpu.memory_space<vmem>>, vector<2x5xf32>,
    return
  }
}

</mosaic_0001>

<bundles_post_ra>
// kernel: transformer_lstm_forward.1
= control target key start
LH: loop header
LB: loop body
LE: loop exit
PB: predicated region body
PF: predicated region fallthrough
CT: control target
= control target key end

     0   :  { %s5553_s6 = smov 1   ;;  %s5554_s10 = smov 2   ;;  %s6642_s0 = inlined_call_operand.smem [shape: u32[37], index: -1, kind: input, shape index: {}] }
   0x1   :  { %s5637_s5 = sld [smem:[%s6642_s0]]   ;;  %s5555_s14 = smov 3  }
   0x2   :  { %s5642_s9 = sld [smem:[%s6642_s0 + %s5553_s6]]   ;;  %s5556_s18 = smov 4  }
   0x3   :  { %s5647_s13 = sld [smem:[%s6642_s0 + %s5554_s10]]   ;;  %s5557_s22 = smov 5  }
   0x4   :  { %s5652_s17 = sld [smem:[%s6642_s0 + %s5555_s14]]   ;;  %s5558_s26 = smov 6  }
   0x5   :  { %s5657_s21 = sld [smem:[%s6642_s0 + %s5556_s18]]   ;;  %s5559_s30 = smov 7  }
   0x6   :  { %s5662_s25 = sld [smem:[%s6642_s0 + %s5557_s22]]   ;;  %s5560_s4 = smov 8  }
   0x7   :  { %s5667_s29 = sld [smem:[%s6642_s0 + %s5558_s26]]   ;;  %s5561_s10 = smov 9  }
   0x8   :  { %6659 = sst [smem:[#allocation53_spill]] %s5642_s9  ;;  %s5562_s15 = smov 10  }
   0x9   :  { %s5672_s3 = sld [smem:[%s6642_s0 + %s5559_s30]]   ;;  %s5563_s20 = smov 11  }
   0xa   :  { %6660 = sst [smem:[#allocation54_spill]] %s5652_s17  ;;  %s5564_s26 = smov 12  }
   0xb   :  { %6661 = sst [smem:[#allocation55_spill]] %s5657_s21  ;;  %s5565_s1 = smov 13  }
   0xc   :  { %s5677_s8 = sld [smem:[%s6642_s0 + %s5560_s4]]   ;;  %s5566_s7 = smov 14  }
   0xd   :  { %6662 = sst [smem:[#allocation56_spill]] %s5667_s29  ;;  %s5568_s22 = smov 16  }
   0xe   :  { %s5682_s14 = sld [smem:[%s6642_s0 + %s5561_s10]]   ;;  %s5569_s28 = smov 17  }
   0xf   :  { %s5687_s19 = sld [smem:[%s6642_s0 + %s5562_s15]]   ;;  %s5567_s15 = smov 15  }
  0x10   :  { %s5692_s24 = sld [smem:[%s6642_s0 + %s5563_s20]]  }
  0x11   :  { %s5697_s30 = sld [smem:[%s6642_s0 + %s5564_s26]]  }
  0x12   :  { %s5702_s6 = sld [smem:[%s6642_s0 + %s5565_s1]]  }
  0x13   :  { %s5707_s12 = sld [smem:[%s6642_s0 + %s5566_s7]]   ;;  %s5570_s7 = smov 18  }
  0x14   :  { %s5712_s20 = sld [smem:[%s6642_s0 + %s5567_s15]]   ;;  %s5571_s15 = smov 19  }
  0x15   :  { %6663 = sst [smem:[#allocation57_spill]] %s5687_s19 }
  0x16   :  { %6664 = sst [smem:[#allocation58_spill]] %s5692_s24 }
  0x17   :  { %6665 = sst [smem:[#allocation59_spill]] %s5697_s30 }
  0x18   :  { %s5717_s27 = sld [smem:[%s6642_s0 + %s5568_s22]]   ;;  %s5572_s22 = smov 20  }
  0x19   :  { %6666 = sst [smem:[#allocation60_spill]] %s5707_s12 }
  0x1a   :  { %s5722_s4 = sld [smem:[%s6642_s0 + %s5569_s28]]   ;;  %s5573_s28 = smov 21  }
  0x1b   :  { %s5727_s30 = sld [smem:[%s6642_s0 + %s5570_s7]]   ;;  %s5574_s7 = smov 22  }
  0x1c   :  { %s5732_s19 = sld [smem:[%s6642_s0 + %s5571_s15]]   ;;  %s5575_s15 = smov 23  }
  0x1d   :  { %s5742_s29 = sld [smem:[%s6642_s0 + %s5573_s28]]   ;;  %s5577_s28 = smov 25  }
  0x1e   :  { %6667 = sst [smem:[#allocation61_spill]] %s5717_s27 }
  0x1f   :  { %s5737_s27 = sld [smem:[%s6642_s0 + %s5572_s22]]   ;;  %s5576_s22 = smov 24  }
  0x20   :  { %6668 = sst [smem:[#allocation62_spill]] %s5722_s4 }
  0x21   :  { %6669 = sst [smem:[#allocation63_spill]] %s5727_s30 }
  0x22   :  { %s5747_s30 = sld [smem:[%s6642_s0 + %s5574_s7]]   ;;  %s5578_s7 = smov 26  }
  0x23   :  { %s5752_s17 = sld [smem:[%s6642_s0 + %s5575_s15]]   ;;  %s5579_s15 = smov 27  }
  0x24   :  { %s5757_s21 = sld [smem:[%s6642_s0 + %s5576_s22]]   ;;  %s5580_s22 = smov 28  }
  0x25   :  { %6670 = sst [smem:[#allocation64_spill]] %s5737_s27 }
  0x26   :  { %s5762_s9 = sld [smem:[%s6642_s0 + %s5577_s28]]   ;;  %s5581_s28 = smov 29  }
  0x27   :  { %s5782_s27 = sld [smem:[%s6642_s0 + %s5581_s28]]   ;;  %s5585_s28 = smov 33  }
  0x28   :  { %6671 = sst [smem:[#allocation65_spill]] %s5747_s30 }
  0x29   :  { %6672 = sst [smem:[#allocation66_spill]] %s5752_s17 }
  0x2a   :  { %6673 = sst [smem:[#allocation67_spill]] %s5757_s21 }
  0x2b   :  { %s5767_s30 = sld [smem:[%s6642_s0 + %s5578_s7]]   ;;  %s5582_s7 = smov 30  }
  0x2c   :  { %s5772_s17 = sld [smem:[%s6642_s0 + %s5579_s15]]   ;;  %s5583_s15 = smov 31  }
  0x2d   :  { %s5777_s21 = sld [smem:[%s6642_s0 + %s5580_s22]]   ;;  %s5584_s22 = smov 32  }
  0x2e   :  { %s5792_s4 = sld [smem:[%s6642_s0 + %s5583_s15]]   ;;  %s5587_s15 = smov 35  }
  0x2f   :  { %s5802_s12 = sld [smem:[%s6642_s0 + %s5585_s28]]  }
  0x31   :  { %6674 = sst [smem:[#allocation68_spill]] %s5767_s30 }
  0x32   :  { %s5787_s30 = sld [smem:[%s6642_s0 + %s5582_s7]]   ;;  %s5586_s7 = smov 34  }
  0x33   :  { %6675 = sst [smem:[#allocation69_spill]] %s5777_s21 }
  0x34   :  { %6677 = sst [smem:[#allocation71_spill]] %s5792_s4 }
  0x35   :  { %s5797_s21 = sld [smem:[%s6642_s0 + %s5584_s22]]   ;;  %s5588_s22 = smov 36  }
  0x36   :  { %s5812_s4 = sld [smem:[%s6642_s0 + %s5587_s15]]  }
  0x37   :  { %s5817_s24 = sld [smem:[%s6642_s0 + %s5588_s22]]  }
  0x38   :  { %6676 = sst [smem:[#allocation70_spill]] %s5787_s30 }
  0x39   :  { %s5807_s30 = sld [smem:[%s6642_s0 + %s5586_s7]]  }
  0x3a   :  { %78 = vsyncpa [#allocation4], 0 }
  0x3b   :  { %79 = vsyncpa [#allocation7], 0 }
  0x3c   :  { %80 = vsyncpa [#allocation10], 0 }
  0x3d   :  { %81 = vsyncpa [#allocation13], 0 }
  0x3e   :  { %82 = vsyncpa [#allocation16], 0 }
  0x3f   :  { %83 = vsyncpa [#allocation19], 0 }
  0x40   :  { %84 = vsyncpa [#allocation22], 0 }
  0x41   :  { %85 = vsyncpa [#allocation25], 0 }
  0x42   :  { %86 = vsyncpa [#allocation28], 0 }
  0x43   :  { %87 = vsyncpa [#allocation31], 0 }
  0x44   :  { %88 = vsyncpa [#allocation34], 0 }
  0x45   :  { %89 = vsyncpa [#allocation37], 0 }
  0x46   :  { %90 = vsyncpa [#allocation5], 0  ;;  %s110_s28 = sshll.u32 %s5647_s13, 4  ;;  %s5589_s0 = smov [#allocation6]   ;;  %s111_s28 = int_to_ptr.hbm [resolvable:$true] %s110_s28 }
  0x47   :  { %s112_s1 = sshll.u32 %s5589_s0, 4  ;;  %s141_s2 = sshll.u32 %s5672_s3, 4  ;;  %s113_s1 = int_to_ptr.vmem [resolvable:$true] %s112_s1  ;;  %s142_s2 = int_to_ptr.hbm [resolvable:$true] %s141_s2 }
  0x48   :  { %s4951_s7 = sshra.s32 %s111_s28, 4  ;;  %s4955_s11 = scalar_lea.hbm %s5647_s13, 16  ;;  %s4952_s7 = int_to_ptr.hbm [resolvable:$true] %s4951_s7 }
  0x49   :  { %s4953_s10 = scalar_lea.hbm %s4952_s7, 16  ;;  %p4956_p1 = scmp.lt.s32.totalorder %s4952_s7, %s5647_s13 }
  0x4a   :  { %p4954_p0 = scmp.ne.s32.totalorder %s4952_s7, %s4953_s10  ;;  %p4957_p2 = scmp.lt.s32.totalorder %s4955_s11, %s4953_s10 }
  0x4c   :  { %p4958_p3 = por %p4957_p2, %p4956_p1 }
  0x4e   :  { %p4959_p4 = pnand %p4958_p3, %p4954_p0 }
  0x50   :  { %4962 = shalt.err (!%p4959_p4)
}
  0x51   :  { %s5590_s15 = smov 128   ;;  %s5591_s16 = smov 8  }
  0x52   :  { %118 = dma.hbm_to_vmem [thread:$0]  %s111_s28, 256, %s113_s1, [#allocation7], %s5590_s15, %s5590_s15, %s5591_s16  }
  0x53   :  { %s5592_s18 = smov [#allocation9]   ;;  %s163_s23 = sshll.u32 %s5682_s14, 4  ;;  %s164_s23 = int_to_ptr.hbm [resolvable:$true] %s163_s23 }
  0x54   :  { %s143_s22 = sshll.u32 %s5592_s18, 4  ;;  %s4975_s13 = sshra.s32 %s142_s2, 4  ;;  %s144_s22 = int_to_ptr.vmem [resolvable:$true] %s143_s22  ;;  %s4976_s13 = int_to_ptr.hbm [resolvable:$true] %s4975_s13 }
  0x55   :  { %s4977_s26 = scalar_lea.hbm %s4976_s13, 1  ;;  %s4979_s0 = scalar_lea.hbm %s5672_s3, 1 }
  0x56   :  { %p4978_p5 = scmp.ne.s32.totalorder %s4976_s13, %s4977_s26  ;;  %p4980_p6 = scmp.lt.s32.totalorder %s4976_s13, %s5672_s3 }
  0x57   :  { %p4981_p7 = scmp.lt.s32.totalorder %s4979_s0, %s4977_s26 }
  0x59   :  { %p4982_p8 = por %p4981_p7, %p4980_p6 }
  0x5b   :  { %p4983_p9 = pnand %p4982_p8, %p4978_p5 }
  0x5d   :  { %4986 = shalt.err (!%p4983_p9)
}
  0x5e   :  { %146 = dma.hbm_to_vmem [thread:$0]  %s142_s2, 16, %s144_s22, [#allocation10]  }
  0x5f   :  { %s189_s28 = sshll.u32 %s5702_s6, 4  ;;  %s5593_s1 = smov [#allocation12]   ;;  %s190_s28 = int_to_ptr.hbm [resolvable:$true] %s189_s28 }
  0x60   :  { %s165_s7 = sshll.u32 %s5593_s1, 4  ;;  %s4999_s10 = sshra.s32 %s164_s23, 4  ;;  %s166_s7 = int_to_ptr.vmem [resolvable:$true] %s165_s7  ;;  %s5000_s10 = int_to_ptr.hbm [resolvable:$true] %s4999_s10 }
  0x61   :  { %s5001_s11 = scalar_lea.hbm %s5000_s10, 1  ;;  %s5003_s18 = scalar_lea.hbm %s5682_s14, 1 }
  0x62   :  { %p5002_p10 = scmp.ne.s32.totalorder %s5000_s10, %s5001_s11  ;;  %p5004_p11 = scmp.lt.s32.totalorder %s5000_s10, %s5682_s14 }
  0x63   :  { %p5005_p12 = scmp.lt.s32.totalorder %s5003_s18, %s5001_s11 }
  0x65   :  { %p5006_p13 = por %p5005_p12, %p5004_p11 }
  0x67   :  { %p5007_p0 = pnand %p5006_p13, %p5002_p10 }
  0x69   :  { %5010 = shalt.err (!%p5007_p0)
}
  0x6a   :  { %168 = dma.hbm_to_vmem [thread:$0]  %s164_s23, 16, %s166_s7, [#allocation13]  }
  0x6b   :  { %s5594_s3 = smov [#allocation15]   ;;  %s211_s22 = sshll.u32 %s5712_s20, 4  ;;  %s212_s22 = int_to_ptr.hbm [resolvable:$true] %s211_s22 }
  0x6c   :  { %s191_s2 = sshll.u32 %s5594_s3, 4  ;;  %s5023_s13 = sshra.s32 %s190_s28, 4  ;;  %s192_s2 = int_to_ptr.vmem [resolvable:$true] %s191_s2  ;;  %s5024_s13 = int_to_ptr.hbm [resolvable:$true] %s5023_s13 }
  0x6d   :  { %s5025_s26 = scalar_lea.hbm %s5024_s13, 1  ;;  %s5027_s0 = scalar_lea.hbm %s5702_s6, 1 }
  0x6e   :  { %p5026_p1 = scmp.ne.s32.totalorder %s5024_s13, %s5025_s26  ;;  %p5028_p2 = scmp.lt.s32.totalorder %s5024_s13, %s5702_s6 }
  0x6f   :  { %p5029_p3 = scmp.lt.s32.totalorder %s5027_s0, %s5025_s26 }
  0x71   :  { %p5030_p4 = por %p5029_p3, %p5028_p2 }
  0x73   :  { %p5031_p5 = pnand %p5030_p4, %p5026_p1 }
  0x75   :  { %5034 = shalt.err (!%p5031_p5)
}
  0x76   :  { %194 = dma.hbm_to_vmem [thread:$0]  %s190_s28, 16, %s192_s2, [#allocation16]  }
  0x77   :  { %s237_s14 = sshll.u32 %s5732_s19, 4  ;;  %s5595_s23 = smov [#allocation18]   ;;  %s238_s14 = int_to_ptr.hbm [resolvable:$true] %s237_s14 }
  0x78   :  { %s213_s1 = sshll.u32 %s5595_s23, 4  ;;  %s5047_s7 = sshra.s32 %s212_s22, 4  ;;  %s214_s1 = int_to_ptr.vmem [resolvable:$true] %s213_s1  ;;  %s5048_s7 = int_to_ptr.hbm [resolvable:$true] %s5047_s7 }
  0x79   :  { %s5049_s10 = scalar_lea.hbm %s5048_s7, 1  ;;  %s5051_s11 = scalar_lea.hbm %s5712_s20, 1 }
  0x7a   :  { %p5050_p6 = scmp.ne.s32.totalorder %s5048_s7, %s5049_s10  ;;  %p5052_p7 = scmp.lt.s32.totalorder %s5048_s7, %s5712_s20 }
  0x7b   :  { %p5053_p8 = scmp.lt.s32.totalorder %s5051_s11, %s5049_s10 }
  0x7d   :  { %p5054_p9 = por %p5053_p8, %p5052_p7 }
  0x7f   :  { %p5055_p10 = pnand %p5054_p9, %p5050_p6 }
  0x81   :  { %5058 = shalt.err (!%p5055_p10)
}
  0x82   :  { %216 = dma.hbm_to_vmem [thread:$0]  %s212_s22, 16, %s214_s1, [#allocation19]  }
  0x83   :  { %s5596_s6 = smov [#allocation21]   ;;  %s259_s18 = sshll.u32 %s5742_s29, 4  ;;  %s260_s18 = int_to_ptr.hbm [resolvable:$true] %s259_s18 }
  0x84   :  { %s239_s28 = sshll.u32 %s5596_s6, 4  ;;  %s5071_s3 = sshra.s32 %s238_s14, 4  ;;  %s240_s28 = int_to_ptr.vmem [resolvable:$true] %s239_s28  ;;  %s5072_s3 = int_to_ptr.hbm [resolvable:$true] %s5071_s3 }
  0x85   :  { %s5073_s2 = scalar_lea.hbm %s5072_s3, 1  ;;  %s5075_s13 = scalar_lea.hbm %s5732_s19, 1 }
  0x86   :  { %p5074_p11 = scmp.ne.s32.totalorder %s5072_s3, %s5073_s2  ;;  %p5076_p12 = scmp.lt.s32.totalorder %s5072_s3, %s5732_s19 }
  0x87   :  { %p5077_p13 = scmp.lt.s32.totalorder %s5075_s13, %s5073_s2 }
  0x89   :  { %p5078_p0 = por %p5077_p13, %p5076_p12 }
  0x8b   :  { %p5079_p1 = pnand %p5078_p0, %p5074_p11 }
  0x8d   :  { %5082 = shalt.err (!%p5079_p1)
}
  0x8e   :  { %242 = dma.hbm_to_vmem [thread:$0]  %s238_s14, 16, %s240_s28, [#allocation22]  }
  0x8f   :  { %s285_s20 = sshll.u32 %s5762_s9, 4  ;;  %s5597_s22 = smov [#allocation24]   ;;  %s286_s20 = int_to_ptr.hbm [resolvable:$true] %s285_s20 }
  0x90   :  { %s261_s26 = sshll.u32 %s5597_s22, 4  ;;  %s5095_s0 = sshra.s32 %s260_s18, 4  ;;  %s262_s26 = int_to_ptr.vmem [resolvable:$true] %s261_s26  ;;  %s5096_s0 = int_to_ptr.hbm [resolvable:$true] %s5095_s0 }
  0x91   :  { %s5097_s23 = scalar_lea.hbm %s5096_s0, 1  ;;  %s5099_s1 = scalar_lea.hbm %s5742_s29, 1 }
  0x92   :  { %p5098_p2 = scmp.ne.s32.totalorder %s5096_s0, %s5097_s23  ;;  %p5100_p3 = scmp.lt.s32.totalorder %s5096_s0, %s5742_s29 }
  0x93   :  { %p5101_p4 = scmp.lt.s32.totalorder %s5099_s1, %s5097_s23 }
  0x95   :  { %p5102_p5 = por %p5101_p4, %p5100_p3 }
  0x97   :  { %p5103_p6 = pnand %p5102_p5, %p5098_p2 }
  0x99   :  { %5106 = shalt.err (!%p5103_p6)
}
  0x9a   :  { %264 = dma.hbm_to_vmem [thread:$0]  %s260_s18, 16, %s262_s26, [#allocation25]  }
  0x9b   :  { %s5598_s19 = smov [#allocation27]   ;;  %s307_s7 = sshll.u32 %s5772_s17, 4  ;;  %s308_s7 = int_to_ptr.hbm [resolvable:$true] %s307_s7 }
  0x9c   :  { %s287_s14 = sshll.u32 %s5598_s19, 4  ;;  %s5119_s10 = sshra.s32 %s286_s20, 4  ;;  %s288_s14 = int_to_ptr.vmem [resolvable:$true] %s287_s14  ;;  %s5120_s10 = int_to_ptr.hbm [resolvable:$true] %s5119_s10 }
  0x9d   :  { %s5121_s11 = scalar_lea.hbm %s5120_s10, 1  ;;  %s5123_s6 = scalar_lea.hbm %s5762_s9, 1 }
  0x9e   :  { %p5122_p7 = scmp.ne.s32.totalorder %s5120_s10, %s5121_s11  ;;  %p5124_p8 = scmp.lt.s32.totalorder %s5120_s10, %s5762_s9 }
  0x9f   :  { %p5125_p9 = scmp.lt.s32.totalorder %s5123_s6, %s5121_s11 }
  0xa1   :  { %p5126_p10 = por %p5125_p9, %p5124_p8 }
  0xa3   :  { %p5127_p11 = pnand %p5126_p10, %p5122_p7 }
  0xa5   :  { %5130 = shalt.err (!%p5127_p11)
}
  0xa6   :  { %290 = dma.hbm_to_vmem [thread:$0]  %s286_s20, 16, %s288_s14, [#allocation28]  }
  0xa7   :  { %s330_s29 = sshll.u32 %s5782_s27, 4  ;;  %s5599_s28 = smov [#allocation30]   ;;  %s5848_s29 = int_to_ptr.hbm [resolvable:$true] %s330_s29 }
  0xa8   :  { %s309_s18 = sshll.u32 %s5599_s28, 4  ;;  %s5143_s3 = sshra.s32 %s308_s7, 4  ;;  %s310_s18 = int_to_ptr.vmem [resolvable:$true] %s309_s18  ;;  %s5144_s3 = int_to_ptr.hbm [resolvable:$true] %s5143_s3 }
  0xa9   :  { %s5145_s2 = scalar_lea.hbm %s5144_s3, 1  ;;  %s5147_s13 = scalar_lea.hbm %s5772_s17, 1 }
  0xaa   :  { %p5146_p12 = scmp.ne.s32.totalorder %s5144_s3, %s5145_s2  ;;  %p5148_p13 = scmp.lt.s32.totalorder %s5144_s3, %s5772_s17 }
  0xab   :  { %p5149_p0 = scmp.lt.s32.totalorder %s5147_s13, %s5145_s2 }
  0xad   :  { %p5150_p1 = por %p5149_p0, %p5148_p13 }
  0xaf   :  { %p5151_p2 = pnand %p5150_p1, %p5146_p12 }
  0xb1   :  { %5154 = shalt.err (!%p5151_p2)
}
  0xb2   :  { %312 = dma.hbm_to_vmem [thread:$0]  %s308_s7, 16, %s310_s18, [#allocation31]  }
  0xb3   :  { %s5600_s9 = smov [#allocation33]   ;;  %s358_s22 = sshll.u32 %s5797_s21, 4  ;;  %s5853_s22 = int_to_ptr.hbm [resolvable:$true] %s358_s22 }
  0xb4   :  { %s332_s20 = sshll.u32 %s5600_s9, 4  ;;  %s5167_s26 = sshra.s32 %s5848_s29, 4  ;;  %s333_s20 = int_to_ptr.vmem [resolvable:$true] %s332_s20  ;;  %s5168_s26 = int_to_ptr.hbm [resolvable:$true] %s5167_s26 }
  0xb5   :  { %s5169_s0 = scalar_lea.hbm %s5168_s26, 32  ;;  %s5171_s17 = scalar_lea.hbm %s5782_s27, 32 }
  0xb6   :  { %p5170_p3 = scmp.ne.s32.totalorder %s5168_s26, %s5169_s0  ;;  %p5172_p4 = scmp.lt.s32.totalorder %s5168_s26, %s5782_s27 }
  0xb7   :  { %p5173_p5 = scmp.lt.s32.totalorder %s5171_s17, %s5169_s0 }
  0xb9   :  { %p5174_p6 = por %p5173_p5, %p5172_p4 }
  0xbb   :  { %p5175_p7 = pnand %p5174_p6, %p5170_p3 }
  0xbd   :  { %5178 = shalt.err (!%p5175_p7)
}
  0xbe   :  { %338 = dma.hbm_to_vmem [thread:$0]  %s5848_s29, 512, %s333_s20, [#allocation34], %s5590_s15, %s5590_s15, %s5591_s16  }
  0xbf   :  { %s95_s23 = sshll.u32 %s5637_s5, 4  ;;  %s5601_s1 = smov [#allocation36]   ;;  %s5863_s23 = int_to_ptr.hbm [resolvable:$true] %s95_s23 }
  0xc0   :  { %s360_s19 = sshll.u32 %s5601_s1, 4  ;;  %s5191_s27 = sshra.s32 %s5853_s22, 4  ;;  %s361_s19 = int_to_ptr.vmem [resolvable:$true] %s360_s19  ;;  %s5192_s27 = int_to_ptr.hbm [resolvable:$true] %s5191_s27 }
  0xc1   :  { %s5193_s14 = scalar_lea.hbm %s5192_s27, 32  ;;  %s5195_s7 = scalar_lea.hbm %s5797_s21, 32 }
  0xc2   :  { %p5194_p8 = scmp.ne.s32.totalorder %s5192_s27, %s5193_s14  ;;  %p5196_p9 = scmp.lt.s32.totalorder %s5192_s27, %s5797_s21 }
  0xc3   :  { %p5197_p10 = scmp.lt.s32.totalorder %s5195_s7, %s5193_s14 }
  0xc5   :  { %p5198_p11 = por %p5197_p10, %p5196_p9 }
  0xc7   :  { %p5199_p12 = pnand %p5198_p11, %p5194_p8 }
  0xc9   :  { %5202 = shalt.err (!%p5199_p12)
}
  0xca   :  { %366 = dma.hbm_to_vmem [thread:$0]  %s5853_s22, 512, %s361_s19, [#allocation37], %s5590_s15, %s5590_s15, %s5591_s16  }
  0xcb   :  { %s5602_s10 = smov [#allocation3]   ;;  %s128_s6 = sshll.u32 %s5662_s25, 4  ;;  %s129_s6 = int_to_ptr.hbm [resolvable:$true] %s128_s6 }
  0xcc   :  { %s97_s11 = sshll.u32 %s5602_s10, 4  ;;  %s5215_s29 = sshra.s32 %s5863_s23, 4  ;;  %s98_s11 = int_to_ptr.vmem [resolvable:$true] %s97_s11  ;;  %s5216_s29 = int_to_ptr.hbm [resolvable:$true] %s5215_s29 }
  0xcd   :  { %s5217_s21 = scalar_lea.hbm %s5216_s29, 16  ;;  %s5219_s28 = scalar_lea.hbm %s5637_s5, 16 }
  0xce   :  { %p5218_p13 = scmp.ne.s32.totalorder %s5216_s29, %s5217_s21  ;;  %p5220_p0 = scmp.lt.s32.totalorder %s5216_s29, %s5637_s5 }
  0xcf   :  { %p5221_p1 = scmp.lt.s32.totalorder %s5219_s28, %s5217_s21 }
  0xd1   :  { %p5222_p2 = por %p5221_p1, %p5220_p0 }
  0xd3   :  { %p5223_p3 = pnand %p5222_p2, %p5218_p13 }
  0xd5   :  { %5226 = shalt.err (!%p5223_p3)
}
  0xd6   :  { %103 = dma.hbm_to_vmem [thread:$0]  %s5863_s23, 256, %s98_s11, [#allocation4], %s5590_s15, %s5590_s15, %s5591_s16  }
  0xd7   :  { %s152_s18 = sshll.u32 %s5677_s8, 4  ;;  %s5603_s3 = smov [#allocation8]   ;;  %s153_s18 = int_to_ptr.hbm [resolvable:$true] %s152_s18 }
  0xd8   :  { %s130_s2 = sshll.u32 %s5603_s3, 4  ;;  %s5239_s13 = sshra.s32 %s129_s6, 4  ;;  %s131_s2 = int_to_ptr.vmem [resolvable:$true] %s130_s2  ;;  %s5240_s13 = int_to_ptr.hbm [resolvable:$true] %s5239_s13 }
  0xd9   :  { %s5241_s5 = scalar_lea.hbm %s5240_s13, 1  ;;  %s5243_s9 = scalar_lea.hbm %s5662_s25, 1 }
  0xda   :  { %p5242_p4 = scmp.ne.s32.totalorder %s5240_s13, %s5241_s5  ;;  %p5244_p5 = scmp.lt.s32.totalorder %s5240_s13, %s5662_s25 }
  0xdb   :  { %p5245_p6 = scmp.lt.s32.totalorder %s5243_s9, %s5241_s5 }
  0xdd   :  { %p5246_p7 = por %p5245_p6, %p5244_p5 }
  0xdf   :  { %p5247_p8 = pnand %p5246_p7, %p5242_p4 }
  0xe1   :  { %5250 = shalt.err (!%p5247_p8)
}
  0xe2   :  { %133 = dma.hbm_to_vmem [thread:$0]  %s129_s6, 16, %s131_s2, [#allocation7]  }
  0xe3   :  { %s6678_s20 = sld [smem:[#allocation58_spill]]  ;;  %s5604_s22 = smov [#allocation11]  }
  0xe4   :  { %s154_s26 = sshll.u32 %s5604_s22, 4  ;;  %s5263_s17 = sshra.s32 %s153_s18, 4  ;;  %s155_s26 = int_to_ptr.vmem [resolvable:$true] %s154_s26  ;;  %s5264_s17 = int_to_ptr.hbm [resolvable:$true] %s5263_s17 }
  0xe5   :  { %s5265_s23 = scalar_lea.hbm %s5264_s17, 1  ;;  %s5267_s1 = scalar_lea.hbm %s5677_s8, 1 }
  0xe6   :  { %p5266_p9 = scmp.ne.s32.totalorder %s5264_s17, %s5265_s23  ;;  %p5268_p10 = scmp.lt.s32.totalorder %s5264_s17, %s5677_s8 }
  0xe7   :  { %p5269_p11 = scmp.lt.s32.totalorder %s5267_s1, %s5265_s23 }
  0xe9   :  { %s176_s0 = sshll.u32 %s6678_s20, 4  ;;  %p5270_p12 = por %p5269_p11, %p5268_p10  ;;  %s177_s0 = int_to_ptr.hbm [resolvable:$true] %s176_s0 }
  0xeb   :  { %p5271_p13 = pnand %p5270_p12, %p5266_p9 }
  0xed   :  { %5274 = shalt.err (!%p5271_p13)
}
  0xee   :  { %157 = dma.hbm_to_vmem [thread:$0]  %s153_s18, 16, %s155_s26, [#allocation10]  }
  0xef   :  { %s6679_s25 = sld [smem:[#allocation60_spill]]  ;;  %s5605_s27 = smov [#allocation14]  }
  0xf0   :  { %s178_s14 = sshll.u32 %s5605_s27, 4  ;;  %s5287_s7 = sshra.s32 %s177_s0, 4  ;;  %s179_s14 = int_to_ptr.vmem [resolvable:$true] %s178_s14  ;;  %s5288_s7 = int_to_ptr.hbm [resolvable:$true] %s5287_s7 }
  0xf1   :  { %s5289_s10 = scalar_lea.hbm %s5288_s7, 1  ;;  %s5291_s11 = scalar_lea.hbm %s6678_s20, 1 }
  0xf2   :  { %p5290_p0 = scmp.ne.s32.totalorder %s5288_s7, %s5289_s10  ;;  %p5292_p1 = scmp.lt.s32.totalorder %s5288_s7, %s6678_s20 }
  0xf3   :  { %p5293_p2 = scmp.lt.s32.totalorder %s5291_s11, %s5289_s10 }
  0xf5   :  { %s200_s19 = sshll.u32 %s6679_s25, 4  ;;  %p5294_p3 = por %p5293_p2, %p5292_p1  ;;  %s201_s19 = int_to_ptr.hbm [resolvable:$true] %s200_s19 }
  0xf7   :  { %p5295_p4 = pnand %p5294_p3, %p5290_p0 }
  0xf9   :  { %5298 = shalt.err (!%p5295_p4)
}
  0xfa   :  { %181 = dma.hbm_to_vmem [thread:$0]  %s177_s0, 16, %s179_s14, [#allocation13]  }
  0xfb   :  { %s6680_s8 = sld [smem:[#allocation62_spill]]  ;;  %s5606_s6 = smov [#allocation17]  }
  0xfc   :  { %s202_s29 = sshll.u32 %s5606_s6, 4  ;;  %s5311_s28 = sshra.s32 %s201_s19, 4  ;;  %s203_s29 = int_to_ptr.vmem [resolvable:$true] %s202_s29  ;;  %s5312_s28 = int_to_ptr.hbm [resolvable:$true] %s5311_s28 }
  0xfd   :  { %s5313_s18 = scalar_lea.hbm %s5312_s28, 1  ;;  %s5315_s3 = scalar_lea.hbm %s6679_s25, 1 }
  0xfe   :  { %p5314_p5 = scmp.ne.s32.totalorder %s5312_s28, %s5313_s18  ;;  %p5316_p6 = scmp.lt.s32.totalorder %s5312_s28, %s6679_s25 }
  0xff   :  { %p5317_p7 = scmp.lt.s32.totalorder %s5315_s3, %s5313_s18 }
 0x101   :  { %s224_s21 = sshll.u32 %s6680_s8, 4  ;;  %p5318_p8 = por %p5317_p7, %p5316_p6  ;;  %s225_s21 = int_to_ptr.hbm [resolvable:$true] %s224_s21 }
 0x103   :  { %p5319_p9 = pnand %p5318_p8, %p5314_p5 }
 0x105   :  { %5322 = shalt.err (!%p5319_p9)
}
 0x106   :  { %205 = dma.hbm_to_vmem [thread:$0]  %s201_s19, 16, %s203_s29, [#allocation16]  }
 0x107   :  { %s6681_s2 = sld [smem:[#allocation64_spill]]  ;;  %s5607_s5 = smov [#allocation20]  }
 0x108   :  { %s226_s9 = sshll.u32 %s5607_s5, 4  ;;  %s5335_s20 = sshra.s32 %s225_s21, 4  ;;  %s227_s9 = int_to_ptr.vmem [resolvable:$true] %s226_s9  ;;  %s5336_s20 = int_to_ptr.hbm [resolvable:$true] %s5335_s20 }
 0x109   :  { %s5337_s22 = scalar_lea.hbm %s5336_s20, 1  ;;  %s5339_s26 = scalar_lea.hbm %s6680_s8, 1 }
 0x10a   :  { %p5338_p10 = scmp.ne.s32.totalorder %s5336_s20, %s5337_s22  ;;  %p5340_p11 = scmp.lt.s32.totalorder %s5336_s20, %s6680_s8 }
 0x10b   :  { %p5341_p12 = scmp.lt.s32.totalorder %s5339_s26, %s5337_s22 }
 0x10d   :  { %s248_s13 = sshll.u32 %s6681_s2, 4  ;;  %p5342_p13 = por %p5341_p12, %p5340_p11  ;;  %s249_s13 = int_to_ptr.hbm [resolvable:$true] %s248_s13 }
 0x10f   :  { %p5343_p0 = pnand %p5342_p13, %p5338_p10 }
 0x111   :  { %5346 = shalt.err (!%p5343_p0)
}
 0x112   :  { %229 = dma.hbm_to_vmem [thread:$0]  %s225_s21, 16, %s227_s9, [#allocation19]  }
 0x113   :  { %s6682_s0 = sld [smem:[#allocation66_spill]]  ;;  %s5608_s17 = smov [#allocation23]  }
 0x114   :  { %s250_s23 = sshll.u32 %s5608_s17, 4  ;;  %s5359_s25 = sshra.s32 %s249_s13, 4  ;;  %s251_s23 = int_to_ptr.vmem [resolvable:$true] %s250_s23  ;;  %s5360_s25 = int_to_ptr.hbm [resolvable:$true] %s5359_s25 }
 0x115   :  { %s5361_s19 = scalar_lea.hbm %s5360_s25, 1  ;;  %s5363_s27 = scalar_lea.hbm %s6681_s2, 1 }
 0x116   :  { %p5362_p1 = scmp.ne.s32.totalorder %s5360_s25, %s5361_s19  ;;  %p5364_p2 = scmp.lt.s32.totalorder %s5360_s25, %s6681_s2 }
 0x117   :  { %p5365_p3 = scmp.lt.s32.totalorder %s5363_s27, %s5361_s19 }
 0x119   :  { %s272_s1 = sshll.u32 %s6682_s0, 4  ;;  %p5366_p4 = por %p5365_p3, %p5364_p2  ;;  %s273_s1 = int_to_ptr.hbm [resolvable:$true] %s272_s1 }
 0x11b   :  { %p5367_p5 = pnand %p5366_p4, %p5362_p1 }
 0x11d   :  { %5370 = shalt.err (!%p5367_p5)
}
 0x11e   :  { %253 = dma.hbm_to_vmem [thread:$0]  %s249_s13, 16, %s251_s23, [#allocation22]  }
 0x11f   :  { %s6683_s14 = sld [smem:[#allocation68_spill]]  ;;  %s5609_s10 = smov [#allocation26]  }
 0x120   :  { %s274_s11 = sshll.u32 %s5609_s10, 4  ;;  %s5383_s8 = sshra.s32 %s273_s1, 4  ;;  %s275_s11 = int_to_ptr.vmem [resolvable:$true] %s274_s11  ;;  %s5384_s8 = int_to_ptr.hbm [resolvable:$true] %s5383_s8 }
 0x121   :  { %s5385_s6 = scalar_lea.hbm %s5384_s8, 1  ;;  %s5387_s29 = scalar_lea.hbm %s6682_s0, 1 }
 0x122   :  { %p5386_p6 = scmp.ne.s32.totalorder %s5384_s8, %s5385_s6  ;;  %p5388_p7 = scmp.lt.s32.totalorder %s5384_s8, %s6682_s0 }
 0x123   :  { %p5389_p8 = scmp.lt.s32.totalorder %s5387_s29, %s5385_s6 }
 0x125   :  { %s296_s7 = sshll.u32 %s6683_s14, 4  ;;  %p5390_p9 = por %p5389_p8, %p5388_p7  ;;  %s297_s7 = int_to_ptr.hbm [resolvable:$true] %s296_s7 }
 0x127   :  { %p5391_p10 = pnand %p5390_p9, %p5386_p6 }
 0x129   :  { %5394 = shalt.err (!%p5391_p10)
}
 0x12a   :  { %277 = dma.hbm_to_vmem [thread:$0]  %s273_s1, 16, %s275_s11, [#allocation25]  }
 0x12b   :  { %s6684_s21 = sld [smem:[#allocation69_spill]]  ;;  %s5610_s28 = smov [#allocation29]  }
 0x12c   :  { %s298_s18 = sshll.u32 %s5610_s28, 4  ;;  %s5407_s2 = sshra.s32 %s297_s7, 4  ;;  %s299_s18 = int_to_ptr.vmem [resolvable:$true] %s298_s18  ;;  %s5408_s2 = int_to_ptr.hbm [resolvable:$true] %s5407_s2 }
 0x12d   :  { %s5409_s13 = scalar_lea.hbm %s5408_s2, 1  ;;  %s5411_s5 = scalar_lea.hbm %s6683_s14, 1 }
 0x12e   :  { %p5410_p11 = scmp.ne.s32.totalorder %s5408_s2, %s5409_s13  ;;  %p5412_p12 = scmp.lt.s32.totalorder %s5408_s2, %s6683_s14 }
 0x12f   :  { %p5413_p13 = scmp.lt.s32.totalorder %s5411_s5, %s5409_s13 }
 0x131   :  { %s317_s3 = sshll.u32 %s6684_s21, 4  ;;  %p5414_p0 = por %p5413_p13, %p5412_p12  ;;  %s5902_s3 = int_to_ptr.hbm [resolvable:$true] %s317_s3 }
 0x133   :  { %p5415_p1 = pnand %p5414_p0, %p5410_p11 }
 0x135   :  { %5418 = shalt.err (!%p5415_p1)
}
 0x136   :  { %301 = dma.hbm_to_vmem [thread:$0]  %s297_s7, 16, %s299_s18, [#allocation28]  }
 0x137   :  { %s6685_s9 = sld [smem:[#allocation71_spill]]  ;;  %s5611_s22 = smov [#allocation32]  }
 0x138   :  { %s319_s26 = sshll.u32 %s5611_s22, 4  ;;  %s5431_s0 = sshra.s32 %s5902_s3, 4  ;;  %s320_s26 = int_to_ptr.vmem [resolvable:$true] %s319_s26  ;;  %s5432_s0 = int_to_ptr.hbm [resolvable:$true] %s5431_s0 }
 0x139   :  { %s5433_s17 = scalar_lea.hbm %s5432_s0, 32  ;;  %s5435_s23 = scalar_lea.hbm %s6684_s21, 32 }
 0x13a   :  { %p5434_p2 = scmp.ne.s32.totalorder %s5432_s0, %s5433_s17  ;;  %p5436_p3 = scmp.lt.s32.totalorder %s5432_s0, %s6684_s21 }
 0x13b   :  { %p5437_p4 = scmp.lt.s32.totalorder %s5435_s23, %s5433_s17 }
 0x13d   :  { %s345_s20 = sshll.u32 %s6685_s9, 4  ;;  %p5438_p5 = por %p5437_p4, %p5436_p3  ;;  %s5907_s20 = int_to_ptr.hbm [resolvable:$true] %s345_s20 }
 0x13f   :  { %p5439_p6 = pnand %p5438_p5, %p5434_p2 }
 0x141   :  { %5442 = shalt.err (!%p5439_p6)
}
 0x142   :  { %325 = dma.hbm_to_vmem [thread:$0]  %s5902_s3, 512, %s320_s26, [#allocation31], %s5590_s15, %s5590_s15, %s5591_s16  }
 0x143   :  { %s5612_s1 = smov [#allocation35]   ;;  %s376_s19 = sshll.u32 %s5812_s4, 4  ;;  %s377_s19 = int_to_ptr.hbm [resolvable:$true] %s376_s19 }
 0x144   :  { %s347_s25 = sshll.u32 %s5612_s1, 4  ;;  %s5455_s27 = sshra.s32 %s5907_s20, 4  ;;  %s348_s25 = int_to_ptr.vmem [resolvable:$true] %s347_s25  ;;  %s5456_s27 = int_to_ptr.hbm [resolvable:$true] %s5455_s27 }
 0x145   :  { %s5457_s14 = scalar_lea.hbm %s5456_s27, 32  ;;  %s5459_s7 = scalar_lea.hbm %s6685_s9, 32 }
 0x146   :  { %p5458_p7 = scmp.ne.s32.totalorder %s5456_s27, %s5457_s14  ;;  %p5460_p8 = scmp.lt.s32.totalorder %s5456_s27, %s6685_s9 }
 0x147   :  { %p5461_p9 = scmp.lt.s32.totalorder %s5459_s7, %s5457_s14 }
 0x149   :  { %p5462_p10 = por %p5461_p9, %p5460_p8 }
 0x14b   :  { %p5463_p11 = pnand %p5462_p10, %p5458_p7 }
 0x14d   :  { %5466 = shalt.err (!%p5463_p11)
}
 0x14e   :  { %353 = dma.hbm_to_vmem [thread:$0]  %s5907_s20, 512, %s348_s25, [#allocation34], %s5590_s15, %s5590_s15, %s5591_s16  }
 0x14f   :  { %s5613_s10 = smov [#allocation38]   ;;  %s5479_s8 = sshra.s32 %s377_s19, 4  ;;  %s5480_s8 = int_to_ptr.hbm [resolvable:$true] %s5479_s8 }
 0x150   :  { %s378_s11 = sshll.u32 %s5613_s10, 4  ;;  %s5481_s6 = scalar_lea.hbm %s5480_s8, 1  ;;  %s379_s11 = int_to_ptr.vmem [resolvable:$true] %s378_s11 }
 0x151   :  { %p5482_p12 = scmp.ne.s32.totalorder %s5480_s8, %s5481_s6  ;;  %s5483_s29 = scalar_lea.hbm %s5812_s4, 1 }
 0x152   :  { %p5484_p13 = scmp.lt.s32.totalorder %s5480_s8, %s5812_s4  ;;  %p5485_p0 = scmp.lt.s32.totalorder %s5483_s29, %s5481_s6 }
 0x154   :  { %p5486_p1 = por %p5485_p0, %p5484_p13 }
 0x156   :  { %p5487_p2 = pnand %p5486_p1, %p5482_p12 }
 0x158   :  { %5490 = shalt.err (!%p5487_p2)
}
 0x159   :  { %381 = dma.hbm_to_vmem [thread:$0]  %s377_s19, 16, %s379_s11, [#allocation37]  }
 0x15a   :  { %5527 = dma.done.wait [#allocation4], 256  }
 0x15b   :  { %5528 = vsyncadd [#allocation4], 4294967040 }
 0x15c   :  { %5529 = dma.done.wait [#allocation7], 272  }
 0x15d   :  { %5530 = vsyncadd [#allocation7], 4294967024 }
 0x15e   :  { %5531 = dma.done.wait [#allocation10], 32  }
 0x15f   :  { %5532 = vsyncadd [#allocation10], 4294967264 }
 0x160   :  { %5533 = dma.done.wait [#allocation13], 32  }
 0x161   :  { %5534 = vsyncadd [#allocation13], 4294967264 }
 0x162   :  { %5535 = dma.done.wait [#allocation16], 32  }
 0x163   :  { %5536 = vsyncadd [#allocation16], 4294967264 }
 0x164   :  { %5537 = dma.done.wait [#allocation19], 32  }
 0x165   :  { %5538 = vsyncadd [#allocation19], 4294967264 }
 0x166   :  { %5539 = dma.done.wait [#allocation22], 32  }
 0x167   :  { %5540 = vsyncadd [#allocation22], 4294967264 }
 0x168   :  { %5541 = dma.done.wait [#allocation25], 32  }
 0x169   :  { %5542 = vsyncadd [#allocation25], 4294967264 }
 0x16a   :  { %5543 = dma.done.wait [#allocation28], 32  }
 0x16b   :  { %5544 = vsyncadd [#allocation28], 4294967264 }
 0x16c   :  { %5545 = dma.done.wait [#allocation31], 528  }
 0x16d   :  { %5546 = vsyncadd [#allocation31], 4294966768 }
 0x16e   :  { %5547 = dma.done.wait [#allocation34], 1024  }
 0x16f   :  { %5548 = vsyncadd [#allocation34], 4294966272 }
 0x170   :  { %5549 = dma.done.wait [#allocation37], 528  }
 0x171   :  { %5550 = vsyncadd [#allocation37], 4294966768  ;;  %s6686_s4 = sld [smem:[#allocation53_spill]]  ;;  %v482_v0 = vld [vmem:[#allocation6 + $0x8] sm:$0xff]  ;;  %v481_v1 = vld [vmem:[#allocation6] sm:$0xff]  ;;  %vm487_vm0 = vcmask 130048  }
 0x172   :  { %s6687_s15 = sld [smem:[#allocation55_spill]]  ;;  %v474_v2 = vld [vmem:[#allocation3] sm:$0xff]  ;;  %508 = vmatpush.msra.mxu0 %v482_v0  ;;  %v475_v5 = vld [vmem:[#allocation3 + $0x8] sm:$0xff]  ;;  %vm525_vm1 = vcmask 261120   ;;  %s5614_s21 = smov 88   ;;  %vm562_vm2 = vcmask 64512  }
 0x173   :  { %v476_v3 = vmul.f32 4.0, %v474_v2  ;;  %s6688_s16 = sld [smem:[#allocation54_spill]]  ;;  %v477_v7 = vmul.f32 4.0, %v475_v5  ;;  %v4594_v18 = vld [vmem:[#allocation8] ss:$0 sm:$0xff]  ;;  %s5615_s28 = smov 96  }
 0x174   :  { %509 = vmatpush.msra.mxu0 %v481_v1  ;;  %s5616_s18 = smov 120   ;;  %s5617_s3 = smov 64   ;;  %vm1328_vm10 = vcmask 523264  }
 0x175   :  { %s5618_s2 = smov 112   ;;  %s5619_s13 = smov 56  }
 0x176   :  { %s5620_s5 = smov 80   ;;  %s6689_s9 = sld [smem:[#allocation56_spill]] }
 0x177   :  { %v478_v4 = vld [vmem:[%s6686_s4] sm:$0xff]  ;;  %s5621_s20 = smov 72   ;;  %s5622_s22 = smov 104  }
 0x178   :  { %v520_v6 = vld [vmem:[%s6687_s15 + $0x18] sm:$0xff]  ;;  %v519_v8 = vld [vmem:[%s6687_s15 + $0x10] sm:$0xff]  ;;  %v479_v9 = vadd.f32 %v478_v4, %v476_v3  ;;  %v480_v10 = vadd.f32 %v478_v4, %v477_v7  ;;  %v518_v11 = vld [vmem:[%s6687_s15 + $0x8] sm:$0xff]  ;;  %s5623_s26 = smov 48   ;;  %s5624_s0 = smov 40  }
 0x179   :  { %544 = vmatpush.msra.mxu1 %v520_v6  ;;  %v517_v12 = vld [vmem:[%s6687_s15] sm:$0xff]  ;;  %s6690_s17 = sld [smem:[#allocation57_spill]]  ;;  %s5627_s7 = smov 32  }
 0x17a   :  { %4388 = vmatmul.msk.f32.vlgmr.msra.gmra.mxu0 %vm487_vm0, %v479_v9  ;;  %v4593_v13 = vld [vmem:[%s6688_s16] ss:$0 sm:$0xff]  ;;  %s6691_s23 = sld [smem:[#allocation59_spill]]  ;;  %s4331_s10 = sshll.u32 %s5817_s24, 4  ;;  %s4332_s10 = int_to_ptr.hbm [resolvable:$true] %s4331_s10 }
 0x17b   :  { %545 = vmatpush.msra.mxu1 %v519_v8  ;;  %s6692_s1 = sld [smem:[#allocation61_spill]]  ;;  %s5515_s11 = sshra.s32 %s4332_s10, 4  ;;  %s5516_s11 = int_to_ptr.hbm [resolvable:$true] %s5515_s11 }
 0x17c   :  { %v555_v60 = vld [vmem:[%s6689_s9] sm:$0xff]  ;;  %s6693_s25 = sld [smem:[#allocation63_spill]]  ;;  %s5517_s8 = scalar_lea.hbm %s5516_s11, 2 }
 0x17d   :  { %546 = vmatpush.msra.mxu1 %v518_v11  ;;  %v556_v11 = vld [vmem:[%s6689_s9 + $0x8] sm:$0xff]  ;;  %s6694_s19 = sld [smem:[#allocation65_spill]]  ;;  %p5518_p3 = scmp.ne.s32.totalorder %s5516_s11, %s5517_s8 }
 0x17e   :  { %s6695_s27 = sld [smem:[#allocation67_spill]]  ;;  %s5519_s6 = scalar_lea.hbm %s5817_s24, 2 }
 0x17f   :  { %547 = vmatpush.msra.mxu1 %v517_v12  ;;  %s6696_s14 = sld [smem:[#allocation70_spill]]  ;;  %p5520_p4 = scmp.lt.s32.totalorder %s5516_s11, %s5817_s24 }
 0x180   :  { %p5521_p5 = scmp.lt.s32.totalorder %s5519_s6, %s5517_s8 }
 0x182   :  { %4389 = vmatmul.msk.f32.gmra.mxu0 %vm487_vm0, %v480_v10  ;;  %p5522_p6 = por %p5521_p5, %p5520_p4 }
 0x184   :  { %p5523_p7 = pnand %p5522_p6, %p5518_p3 }
 0x1f7   :  { %v511_v14 = vpop.f32.mrf.mxu0 }
 0x1f8   :  { %v5932_v15 = vadd.f32 %v4593_v13, %v511_v14 }
 0x1fa   :  { %4390 = vmatmul.msk.f32.vlgmr.msra.gmra.mxu1 %vm525_vm1, %v5932_v15 }
 0x1ff   :  { %v514_v16 = vpop.f32.mrf.mxu0 }
 0x200   :  { %v5936_v17 = vadd.f32 %v4593_v13, %v514_v16 }
 0x202   :  { %4391 = vmatmul.msk.f32.gmra.mxu1 %vm525_vm1, %v5936_v17 }
 0x277   :  { %v549_v19 = vpop.f32.mrf.mxu1 }
 0x278   :  { %v5940_v20 = vadd.f32 %v4594_v18, %v549_v19 }
 0x27a   :  { %692 = vrot.lane.b32.xlu1 %v5940_v20, %s5614_s21  ;;  %560 = vrot.lane.b32.xlu0 %v5940_v20, %s5615_s28 }
 0x27f   :  { %v552_v21 = vpop.f32.mrf.mxu1 }
 0x280   :  { %v5946_v22 = vadd.f32 %v4594_v18, %v552_v21 }
 0x282   :  { %690 = vrot.lane.b32.xlu1 %v5940_v20, %s5616_s18  ;;  %588 = vrot.lane.b32.xlu0 %v5946_v22, %s5615_s28 }
 0x28a   :  { %638 = vrot.lane.b32.xlu0 %v5940_v20, %s5617_s3  ;;  %720 = vrot.lane.b32.xlu1 %v5946_v22, %s5614_s21 }
 0x2ec   :  { %v693_v23 = vpop.permute.xlu1 %692  ;;  %v561_v24 = vpop.permute.xlu0 %560 }
 0x2ed   :  { %4392 = vmatpush.xpose.msk.msra.mxu2 %vm562_vm2, %v561_v24  ;;  %4398 = vmatpush.xpose.msk.msrb.mxu0 %vm562_vm2, %v693_v23 }
 0x2f0   :  { %4393 = vmatmul.msk.f32.vlgmr.msra.gmra.mxu2 %vm562_vm2, %v5940_v20 }
 0x2f1   :  { %843 = vmatpush.msra.mxu0 %v556_v11 }
 0x2f4   :  { %v691_v25 = vpop.permute.xlu1 %690  ;;  %v589_v26 = vpop.permute.xlu0 %588 }
 0x2f5   :  { %4394 = vmatpush.xpose.msk.msra.mxu3 %vm562_vm2, %v589_v26  ;;  %4399 = vmatmul.msk.f32.vlgmr.msrb.gmra.mxu0 %vm562_vm2, %v691_v25 }
 0x2f8   :  { %4395 = vmatmul.msk.f32.vlgmr.msra.gmra.mxu3 %vm562_vm2, %v5946_v22 }
 0x2fc   :  { %v639_v27 = vpop.permute.xlu0 %638  ;;  %v721_v34 = vpop.permute.xlu1 %720 }
 0x2fd   :  { %659 = vmatpush.msrb.mxu2 %v639_v27 }
 0x2ff   :  { %4400 = vmatpush.xpose.msk.msra.mxu2 %vm562_vm2, %v721_v34 }
 0x372   :  { %v715_v28 = vpop.f32.mrf.mxu0 }
 0x373   :  { %v746_v29 = vmul.f32 0.35355338, %v715_v28  ;;  %v584_v30 = vpop.f32.mrf.mxu2 }
 0x374   :  { %v614_v31 = vmul.f32 0.35355338, %v584_v30 }
 0x375   :  { %v748_v32 = vsel %vm562_vm2, %v746_v29, -inf }
 0x376   :  { %749 = vmax.xlane.f32.xlu1 %v748_v32  ;;  %v616_v33 = vsel %vm562_vm2, %v614_v31, -inf }
 0x377   :  { %617 = vmax.xlane.f32.xlu2 %v616_v33 }
 0x37b   :  { %v611_v35 = vpop.f32.mrf.mxu3 }
 0x37c   :  { %v615_v36 = vmul.f32 0.35355338, %v611_v35 }
 0x37e   :  { %v619_v37 = vsel %vm562_vm2, %v615_v36, -inf }
 0x37f   :  { %620 = vmax.xlane.f32.xlu0 %v619_v37 }
 0x38f   :  { %664 = vrot.lane.b32.xlu1 %v5946_v22, %s5617_s3 }
 0x397   :  { %880 = vrot.lane.b32.xlu1 %v5940_v20, %s5618_s2 }
 0x3e9   :  { %v750_v38 = vpop.xlane.xlu1 %749 }
 0x3ea   :  { %v754_v39 = vsub.f32 %v746_v29, %v750_v38  ;;  %v618_v40 = vpop.xlane.xlu2 %617 }
 0x3eb   :  { %v622_v41 = vsub.f32 %v614_v31, %v618_v40 }
 0x3ec   :  { %v756_v42 = vmul.f32 1.442695, %v754_v39 }
 0x3ed   :  { %v624_v43 = vmul.f32 1.442695, %v622_v41 }
 0x3ee   :  { %4613 = vpow2.f32 %v756_v42 }
 0x3ef   :  { %4615 = vpow2.f32 %v624_v43 }
 0x3f2   :  { %v621_v49 = vpop.xlane.xlu0 %620 }
 0x3f3   :  { %v623_v50 = vsub.f32 %v615_v36, %v621_v49 }
 0x3f4   :  { %v4614_v44 = vpop.eup %4613 }
 0x3f5   :  { %v4616_v45 = vpop.eup %4615  ;;  %v760_v46 = vsel %vm562_vm2, %v4614_v44, 0.0  ;;  %v626_v51 = vmul.f32 1.442695, %v623_v50 }
 0x3f6   :  { %761 = vadd.xlane.f32.xlu0 %v760_v46  ;;  %v628_v47 = vsel %vm562_vm2, %v4616_v45, 0.0 }
 0x3f7   :  { %629 = vadd.xlane.f32.xlu2 %v628_v47  ;;  %4617 = vpow2.f32 %v626_v51 }
 0x3fd   :  { %v4618_v52 = vpop.eup %4617 }
 0x3fe   :  { %v631_v53 = vsel %vm562_vm2, %v4618_v52, 0.0 }
 0x401   :  { %v665_v48 = vpop.permute.xlu1 %664 }
 0x402   :  { %685 = vmatpush.msrb.mxu3 %v665_v48 }
 0x409   :  { %v881_v5 = vpop.permute.xlu1 %880 }
 0x40a   :  { %770 = vrot.lane.b32.xlu0 %v5940_v20, %s5619_s13 }
 0x40f   :  { %718 = vrot.lane.b32.xlu2 %v5946_v22, %s5616_s18 }
 0x438   :  { %632 = vadd.xlane.f32.xlu2 %v631_v53 }
 0x450   :  { %882 = vrot.lane.b32.xlu2 %v5940_v20, %s5620_s5 }
 0x458   :  { %796 = vrot.lane.b32.xlu2 %v5946_v22, %s5619_s13 }
 0x460   :  { %910 = vrot.lane.b32.xlu2 %v5946_v22, %s5620_s5 }
 0x468   :  { %1045 = vrot.lane.b32.xlu2 %v5940_v20, %s5621_s20 }
 0x469   :  { %v762_v57 = vpop.xlane.xlu0 %761 }
 0x46a   :  { %v630_v54 = vpop.xlane.xlu2 %629 }
 0x46b   :  { %4619 = vrcp.f32 %v630_v54 }
 0x470   :  { %908 = vrot.lane.b32.xlu2 %v5946_v22, %s5618_s2 }
 0x471   :  { %v4620_v55 = vpop.eup %4619 }
 0x472   :  { %v636_v56 = vmul.f32 %v4620_v55, %v4616_v45  ;;  %v719_v58 = vpop.permute.xlu2 %718 }
 0x474   :  { %4396 = vmatmul.msk.f32.vlgmr.msrb.gmra.mxu2 %vm562_vm2, %v636_v56  ;;  %v557_v56 = vld [vmem:[%s6689_s9 + $0x10] sm:$0xff] }
 0x475   :  { %872 = vmatpush.msrb.mxu2 %v555_v60  ;;  %1033 = vmatpush.msrb.mxu0 %v557_v56 }
 0x47c   :  { %4401 = vmatmul.msk.f32.vlgmr.msra.gmra.mxu2 %vm562_vm2, %v719_v58  ;;  %v771_v59 = vpop.permute.xlu0 %770 }
 0x47d   :  { %791 = vmatpush.msra.mxu3 %v771_v59 }
 0x4ab   :  { %v633_v61 = vpop.xlane.xlu2 %632 }
 0x4ac   :  { %4621 = vrcp.f32 %v633_v61 }
 0x4ad   :  { %4623 = vrcp.f32 %v762_v57 }
 0x4b2   :  { %v4622_v62 = vpop.eup %4621 }
 0x4b3   :  { %v883_v63 = vpop.permute.xlu2 %882  ;;  %v637_v0 = vmul.f32 %v4622_v62, %v4618_v52  ;;  %v4624_v1 = vpop.eup %4623 }
 0x4b4   :  { %v768_v2 = vmul.f32 %v4624_v1, %v4614_v44 }
 0x4b5   :  { %4397 = vmatmul.msk.f32.vlgmr.msrb.gmra.mxu3 %vm562_vm2, %v637_v0 }
 0x4b6   :  { %4408 = vmatpush.xpose.msk.msrb.mxu3 %vm562_vm2, %v883_v63 }
 0x4bb   :  { %v797_v3 = vpop.permute.xlu2 %796 }
 0x4bc   :  { %817 = vmatpush.msrb.mxu1 %v797_v3 }
 0x4bd   :  { %4402 = vmatmul.msk.f32.vlgmr.msra.gmra.mxu3 %vm562_vm2, %v768_v2 }
 0x4c3   :  { %v911_v4 = vpop.permute.xlu2 %910 }
 0x4c4   :  { %4410 = vmatpush.xpose.msk.msra.mxu1 %vm562_vm2, %v911_v4 }
 0x4c5   :  { %4409 = vmatmul.msk.f32.vlgmr.msrb.gmra.mxu3 %vm562_vm2, %v881_v5 }
 0x4cb   :  { %v1046_v6 = vpop.permute.xlu2 %1045 }
 0x4cc   :  { %4416 = vmatpush.xpose.msk.msra.mxu2 %vm562_vm2, %v1046_v6 }
 0x4d3   :  { %v909_v27 = vpop.permute.xlu2 %908 }
 0x4f7   :  { %v661_v7 = vpop.f32.mrf.mxu2 }
 0x4f8   :  { %4406 = vmatmul.msk.f32.vlgmr.msrb.gmra.mxu2 %vm562_vm2, %v661_v7 }
 0x4ff   :  { %v743_v8 = vpop.f32.mrf.mxu2 }
 0x500   :  { %v747_v9 = vmul.f32 0.35355338, %v743_v8 }
 0x502   :  { %v751_v10 = vsel %vm562_vm2, %v747_v9, -inf }
 0x503   :  { %752 = vmax.xlane.f32.xlu0 %v751_v10 }
 0x517   :  { %1043 = vrot.lane.b32.xlu0 %v5940_v20, %s5622_s22 }
 0x51f   :  { %1073 = vrot.lane.b32.xlu0 %v5946_v22, %s5621_s20 }
 0x527   :  { %1071 = vrot.lane.b32.xlu0 %v5946_v22, %s5622_s22 }
 0x538   :  { %v687_v12 = vpop.f32.mrf.mxu3 }
 0x539   :  { %4407 = vmatmul.msk.f32.gmra.mxu2 %vm562_vm2, %v687_v12 }
 0x540   :  { %v793_v13 = vpop.f32.mrf.mxu3 }
 0x541   :  { %4404 = vmatmul.msk.f32.vlgmr.msra.gmra.mxu0 %vm562_vm2, %v793_v13 }
 0x548   :  { %v905_v14 = vpop.f32.mrf.mxu3 }
 0x549   :  { %v936_v16 = vmul.f32 0.35355338, %v905_v14 }
 0x54b   :  { %v938_v18 = vsel %vm562_vm2, %v936_v16, -inf }
 0x54c   :  { %939 = vmax.xlane.f32.xlu2 %v938_v18 }
 0x576   :  { %v753_v19 = vpop.xlane.xlu0 %752 }
 0x577   :  { %v755_v21 = vsub.f32 %v747_v9, %v753_v19  ;;  %v558_v19 = vld [vmem:[%s6689_s9 + $0x18] sm:$0xff] }
 0x579   :  { %v758_v23 = vmul.f32 1.442695, %v755_v21 }
 0x57b   :  { %4625 = vpow2.f32 %v758_v23  ;;  %v6015_v35 = vpop.f32.mrf.mxu2 }
 0x581   :  { %v4626_v24 = vpop.eup %4625 }
 0x582   :  { %v763_v25 = vsel %vm562_vm2, %v4626_v24, 0.0 }
 0x583   :  { %764 = vadd.xlane.f32.xlu1 %v763_v25 }
 0x589   :  { %v1044_v26 = vpop.permute.xlu0 %1043 }
 0x58a   :  { %4417 = vmatmul.msk.f32.vlgmr.msra.gmra.mxu2 %vm562_vm2, %v1044_v26 }
 0x591   :  { %v1074_v43 = vpop.permute.xlu0 %1073 }
 0x599   :  { %v1072_v46 = vpop.permute.xlu0 %1071 }
 0x5bc   :  { %v6018_v37 = vpop.f32.mrf.mxu2 }
 0x5be   :  { %v845_v25 = vpop.f32.mrf.mxu0 }
 0x5bf   :  { %v940_v28 = vpop.xlane.xlu2 %939 }
 0x5c0   :  { %v944_v29 = vsub.f32 %v936_v16, %v940_v28  ;;  %v875_v28 = vadd.f32 %v6015_v35, %v845_v25 }
 0x5c2   :  { %v946_v30 = vmul.f32 1.442695, %v944_v29 }
 0x5c4   :  { %4627 = vpow2.f32 %v946_v30  ;;  %v4595_v30 = vld [vmem:[#allocation9] ss:$0 sm:$0xff] }
 0x5ca   :  { %v4628_v31 = vpop.eup %4627 }
 0x5cb   :  { %v950_v32 = vsel %vm562_vm2, %v4628_v31, 0.0 }
 0x5cc   :  { %951 = vadd.xlane.f32.xlu1 %v950_v32 }
 0x5e5   :  { %960 = vrot.lane.b32.xlu1 %v5940_v20, %s5623_s26 }
 0x5f6   :  { %v765_v33 = vpop.xlane.xlu1 %764 }
 0x5f7   :  { %4629 = vrcp.f32 %v765_v33 }
 0x5fd   :  { %v4630_v34 = vpop.eup %4629 }
 0x5fe   :  { %v769_v36 = vmul.f32 %v4630_v34, %v4626_v24 }
 0x600   :  { %4403 = vmatmul.msk.f32.vlgmr.msrb.gmra.mxu1 %vm562_vm2, %v769_v36 }
 0x608   :  { %4411 = vmatmul.msk.f32.vlgmr.msra.gmra.mxu1 %vm562_vm2, %v909_v27 }
 0x60d   :  { %v1068_v38 = vpop.f32.mrf.mxu2 }
 0x60e   :  { %v1099_v39 = vmul.f32 0.35355338, %v1068_v38 }
 0x610   :  { %v1101_v40 = vsel %vm562_vm2, %v1099_v39, -inf }
 0x611   :  { %1102 = vmax.xlane.f32.xlu1 %v1101_v40 }
 0x63f   :  { %v952_v41 = vpop.xlane.xlu1 %951 }
 0x640   :  { %4631 = vrcp.f32 %v952_v41 }
 0x646   :  { %v4632_v42 = vpop.eup %4631 }
 0x647   :  { %v958_v44 = vmul.f32 %v4632_v42, %v4628_v31 }
 0x657   :  { %v961_v45 = vpop.permute.xlu1 %960 }
 0x658   :  { %981 = vmatpush.msra.mxu3 %v961_v45 }
 0x659   :  { %4412 = vmatmul.msk.f32.vlgmr.msra.gmra.mxu3 %vm562_vm2, %v958_v44  ;;  %v5625_v44 = vmov 32.0  }
 0x65a   :  { %4418 = vmatpush.xpose.msk.msrb.mxu3 %vm562_vm2, %v1074_v43 }
 0x65e   :  { %1196 = vmatpush.msra.mxu3 %v558_v19  ;;  %v1320_v19 = vld [vmem:[%s6691_s23 + $0x20] sm:$0xff] }
 0x661   :  { %4419 = vmatmul.msk.f32.vlgmr.msrb.gmra.mxu3 %vm562_vm2, %v1072_v46 }
 0x67d   :  { %v819_v47 = vpop.f32.mrf.mxu1 }
 0x67e   :  { %4405 = vmatmul.msk.f32.gmra.mxu0 %vm562_vm2, %v819_v47 }
 0x684   :  { %v1103_v48 = vpop.xlane.xlu1 %1102 }
 0x685   :  { %v1107_v49 = vsub.f32 %v1099_v39, %v1103_v48  ;;  %v933_v50 = vpop.f32.mrf.mxu1 }
 0x686   :  { %v937_v51 = vmul.f32 0.35355338, %v933_v50 }
 0x687   :  { %v1109_v52 = vmul.f32 1.442695, %v1107_v49 }
 0x688   :  { %v941_v53 = vsel %vm562_vm2, %v937_v51, -inf }
 0x689   :  { %4633 = vpow2.f32 %v1109_v52  ;;  %942 = vmax.xlane.f32.xlu0 %v941_v53 }
 0x68f   :  { %v4634_v54 = vpop.eup %4633 }
 0x690   :  { %v1113_v55 = vsel %vm562_vm2, %v4634_v54, 0.0 }
 0x691   :  { %1114 = vadd.xlane.f32.xlu2 %v1113_v55 }
 0x69d   :  { %1123 = vrot.lane.b32.xlu0 %v5940_v20, %s5624_s0 }
 0x6dc   :  { %v983_v57 = vpop.f32.mrf.mxu3 }
 0x6dd   :  { %4414 = vmatmul.msk.f32.vlgmr.msrb.gmra.mxu0 %vm562_vm2, %v983_v57 }
 0x6e4   :  { %v1096_v58 = vpop.f32.mrf.mxu3 }
 0x6e5   :  { %v1100_v59 = vmul.f32 0.35355338, %v1096_v58 }
 0x6e7   :  { %v1104_v60 = vsel %vm562_vm2, %v1100_v59, -inf }
 0x6e8   :  { %1105 = vmax.xlane.f32.xlu1 %v1104_v60  ;;  %v1279_v60 = vld [vmem:[%s6690_s17 + $0x10] sm:$0xff] }
 0x6fb   :  { %v848_v26 = vpop.f32.mrf.mxu0 }
 0x6fc   :  { %v943_v61 = vpop.xlane.xlu0 %942  ;;  %v878_v39 = vadd.f32 %v6018_v37, %v848_v26 }
 0x6fd   :  { %v945_v62 = vsub.f32 %v937_v51, %v943_v61  ;;  %v1278_v61 = vld [vmem:[%s6690_s17 + $0x8] sm:$0xff] }
 0x6ff   :  { %v948_v63 = vmul.f32 1.442695, %v945_v62  ;;  %v1277_v62 = vld [vmem:[%s6690_s17] sm:$0xff] }
 0x701   :  { %4635 = vpow2.f32 %v948_v63  ;;  %1149 = vrot.lane.b32.xlu1 %v5946_v22, %s5624_s0 }
 0x704   :  { %v1115_v7 = vpop.xlane.xlu2 %1114 }
 0x707   :  { %v4636_v0 = vpop.eup %4635 }
 0x708   :  { %v953_v20 = vsel %vm562_vm2, %v4636_v0, 0.0 }
 0x709   :  { %954 = vadd.xlane.f32.xlu2 %v953_v20 }
 0x721   :  { %986 = vrot.lane.b32.xlu2 %v5946_v22, %s5623_s26  ;;  %v1124_v22 = vpop.permute.xlu0 %1123 }
 0x75a   :  { %v1035_v27 = vpop.f32.mrf.mxu0 }
 0x75b   :  { %v1106_v1 = vpop.xlane.xlu1 %1105  ;;  %v1041_v29 = vadd.f32 %v1035_v27, %v875_v28 }
 0x75c   :  { %v1108_v2 = vsub.f32 %v1100_v59, %v1106_v1  ;;  %v1280_v59 = vld [vmem:[%s6690_s17 + $0x18] sm:$0xff] }
 0x75e   :  { %v1111_v3 = vmul.f32 1.442695, %v1108_v2 }
 0x760   :  { %4637 = vpow2.f32 %v1111_v3 }
 0x766   :  { %v4638_v4 = vpop.eup %4637 }
 0x767   :  { %v1116_v5 = vsel %vm562_vm2, %v4638_v4, 0.0 }
 0x768   :  { %1117 = vadd.xlane.f32.xlu2 %v1116_v5 }
 0x773   :  { %v1150_v6 = vpop.permute.xlu1 %1149 }
 0x774   :  { %1170 = vmatpush.msrb.mxu2 %v1150_v6 }
 0x77c   :  { %v955_v8 = vpop.xlane.xlu2 %954 }
 0x77d   :  { %4639 = vrcp.f32 %v955_v8 }
 0x77e   :  { %4641 = vrcp.f32 %v1115_v7  ;;  %v4596_v7 = vld [vmem:[#allocation11] ss:$0 sm:$0xff] }
 0x783   :  { %v4640_v9 = vpop.eup %4639 }
 0x784   :  { %v959_v10 = vmul.f32 %v4640_v9, %v4636_v0  ;;  %v987_v11 = vpop.permute.xlu2 %986  ;;  %v4642_v12 = vpop.eup %4641 }
 0x785   :  { %1007 = vmatpush.msrb.mxu1 %v987_v11  ;;  %v1121_v13 = vmul.f32 %v4642_v12, %v4634_v54  ;;  %v1323_v12 = vld [vmem:[%s6691_s23 + $0x38] sm:$0xff] }
 0x786   :  { %4413 = vmatmul.msk.f32.vlgmr.msrb.gmra.mxu1 %vm562_vm2, %v959_v10  ;;  %v4597_v10 = vld [vmem:[#allocation12] ss:$0 sm:$0xff]  ;;  %1343 = vmatpush.msra.mxu0 %v1323_v12  ;;  %v4601_v12 = vld [vmem:[#allocation18] ss:$0 sm:$0xff] }
 0x787   :  { %1144 = vmatpush.msra.mxu1 %v1124_v22 }
 0x789   :  { %1303 = vmatpush.msrb.mxu1 %v1280_v59 }
 0x78b   :  { %1304 = vmatpush.msrb.mxu1 %v1279_v60 }
 0x78d   :  { %1305 = vmatpush.msrb.mxu1 %v1278_v61 }
 0x78e   :  { %4420 = vmatmul.msk.f32.vlgmr.msra.gmra.mxu1 %vm562_vm2, %v1121_v13  ;;  %v1322_v13 = vld [vmem:[%s6691_s23 + $0x30] sm:$0xff] }
 0x78f   :  { %1306 = vmatpush.msrb.mxu1 %v1277_v62  ;;  %1344 = vmatpush.msra.mxu0 %v1322_v13  ;;  %v1419_v62 = vld [vmem:[%s6692_s1 + $0x18] sm:$0xff] }
 0x790   :  { %1442 = vmatpush.msra.mxu2 %v1419_v62 }
 0x7db   :  { %v1118_v14 = vpop.xlane.xlu2 %1117 }
 0x7dc   :  { %4643 = vrcp.f32 %v1118_v14  ;;  %v1321_v14 = vld [vmem:[%s6691_s23 + $0x28] sm:$0xff] }
 0x7dd   :  { %4645 = vrcp.f32 %v5625_v44  ;;  %1345 = vmatpush.msra.mxu0 %v1321_v14 }
 0x7df   :  { %1346 = vmatpush.msra.mxu0 %v1320_v19 }
 0x7e2   :  { %v4644_v16 = vpop.eup %4643 }
 0x7e3   :  { %v1122_v18 = vmul.f32 %v4644_v16, %v4638_v4  ;;  %v4646_v46 = vpop.eup %4645 }
 0x7e4   :  { %v1221_v47 = vmul.f32 32.0, %v4646_v46  ;;  %vm1225_vm3 = vweird.f32 %v4646_v46 }
 0x7e5   :  { %4421 = vmatmul.msk.f32.vlgmr.msrb.gmra.mxu2 %vm562_vm2, %v1122_v18 }
 0x803   :  { %v1009_v21 = vpop.f32.mrf.mxu1 }
 0x804   :  { %4415 = vmatmul.msk.f32.gmra.mxu0 %vm562_vm2, %v1009_v21 }
 0x80b   :  { %v1146_v23 = vpop.f32.mrf.mxu1 }
 0x80c   :  { %4422 = vmatmul.msk.f32.vlgmr.msra.gmra.mxu3 %vm562_vm2, %v1146_v23  ;;  %v1319_v23 = vld [vmem:[%s6691_s23 + $0x18] sm:$0xff] }
 0x80d   :  { %1347 = vmatpush.msra.mxu0 %v1319_v23 }
 0x868   :  { %v1172_v24 = vpop.f32.mrf.mxu2 }
 0x869   :  { %4423 = vmatmul.msk.f32.gmra.mxu3 %vm562_vm2, %v1172_v24 }
 0x881   :  { %v1038_v38 = vpop.f32.mrf.mxu0 }
 0x882   :  { %v1042_v40 = vadd.f32 %v1038_v38, %v878_v39  ;;  %v1316_v38 = vld [vmem:[%s6691_s23] sm:$0xff]  ;;  %v4598_v39 = vld [vmem:[#allocation14] ss:$0 sm:$0xff] }
 0x88f   :  { %v1198_v31 = vpop.f32.mrf.mxu3 }
 0x890   :  { %v1204_v32 = vadd.f32 %v1198_v31, %v1041_v29 }
 0x892   :  { %v1210_v33 = vadd.f32 %v4595_v30, %v1204_v32 }
 0x894   :  { %v1212_v34 = vadd.f32 %v1210_v33, %v5932_v15  ;;  %v1222_v15 = vsub.f32 1.0, %v1221_v47 }
 0x896   :  { %v1214_v36 = vsel %vm525_vm1, %v1212_v34, 0.0  ;;  %v1223_v48 = vmul.f32 %v4646_v46, %v1222_v15 }
 0x897   :  { %1215 = vadd.xlane.f32.xlu0 %v1214_v36  ;;  %v1317_v36 = vld [vmem:[%s6691_s23 + $0x8] sm:$0xff] }
 0x898   :  { %v1224_v49 = vadd.f32 %v4646_v46, %v1223_v48 }
 0x89a   :  { %v6052_v37 = vsel %vm1225_vm3, %v4646_v46, %v1224_v49 }
 0x8ec   :  { %v1201_v41 = vpop.f32.mrf.mxu3 }
 0x8ed   :  { %v1205_v42 = vadd.f32 %v1201_v41, %v1042_v40 }
 0x8ef   :  { %v1211_v43 = vadd.f32 %v4595_v30, %v1205_v42 }
 0x8f1   :  { %v1213_v35 = vadd.f32 %v1211_v43, %v5936_v17 }
 0x8f3   :  { %v1217_v45 = vsel %vm525_vm1, %v1213_v35, 0.0 }
 0x8f4   :  { %1218 = vadd.xlane.f32.xlu2 %v1217_v45  ;;  %v4599_v45 = vld [vmem:[#allocation15] ss:$0 sm:$0xff] }
 0x90a   :  { %v1216_v50 = vpop.xlane.xlu0 %1215 }
 0x90b   :  { %v1227_v51 = vmul.f32 %v6052_v37, %v1216_v50 }
 0x90d   :  { %v1229_v52 = vsub.f32 %v1212_v34, %v1227_v51  ;;  %v1318_v34 = vld [vmem:[%s6691_s23 + $0x10] sm:$0xff] }
 0x90e   :  { %1348 = vmatpush.msra.mxu0 %v1318_v34 }
 0x90f   :  { %v1231_v17 = vmul.f32 %v1229_v52, %v1229_v52 }
 0x910   :  { %1349 = vmatpush.msra.mxu0 %v1317_v36 }
 0x911   :  { %v1233_v53 = vsel %vm525_vm1, %v1231_v17, 0.0 }
 0x912   :  { %1234 = vadd.xlane.f32.xlu1 %v1233_v53  ;;  %1350 = vmatpush.msra.mxu0 %v1316_v38 }
 0x967   :  { %v1219_v54 = vpop.xlane.xlu2 %1218 }
 0x968   :  { %v1228_v55 = vmul.f32 %v6052_v37, %v1219_v54 }
 0x96a   :  { %v1230_v56 = vsub.f32 %v1213_v35, %v1228_v55 }
 0x96c   :  { %v1232_v57 = vmul.f32 %v1230_v56, %v1230_v56 }
 0x96e   :  { %v1236_v58 = vsel %vm525_vm1, %v1232_v57, 0.0 }
 0x96f   :  { %1237 = vadd.xlane.f32.xlu2 %v1236_v58 }
 0x985   :  { %v1235_v63 = vpop.xlane.xlu1 %1234 }
 0x986   :  { %v1239_v0 = vmul.f32 %v1235_v63, %v6052_v37  ;;  %v1418_v63 = vld [vmem:[%s6692_s1 + $0x10] sm:$0xff] }
 0x987   :  { %1443 = vmatpush.msra.mxu2 %v1418_v63 }
 0x988   :  { %v1241_v20 = vadd.f32 1e-05, %v1239_v0  ;;  %v1417_v0 = vld [vmem:[%s6692_s1 + $0x8] sm:$0xff] }
 0x989   :  { %1444 = vmatpush.msra.mxu2 %v1417_v0 }
 0x98a   :  { %4647 = vrsqrt.f32 %v1241_v20  ;;  %vm1249_vm5 = vweird.f32 %v1241_v20 }
 0x990   :  { %v4648_v1 = vpop.eup %4647 }
 0x991   :  { %v1244_v2 = vmul.f32 %v4648_v1, %v1241_v20  ;;  %vm1250_vm4 = vweird.f32 %v4648_v1  ;;  %v1416_v20 = vld [vmem:[%s6692_s1] sm:$0xff] }
 0x992   :  { %vm1251_vm6 = vmor %vm1249_vm5, %vm1250_vm4  ;;  %1445 = vmatpush.msra.mxu2 %v1416_v20 }
 0x993   :  { %v1245_v3 = vmul.f32 %v4648_v1, %v1244_v2 }
 0x995   :  { %v1246_v4 = vmul.f32 0.5, %v1245_v3 }
 0x997   :  { %v1247_v5 = vsub.f32 1.5, %v1246_v4 }
 0x999   :  { %v1248_v6 = vmul.f32 %v4648_v1, %v1247_v5 }
 0x99b   :  { %v1252_v8 = vsel %vm1251_vm6, %v4648_v1, %v1248_v6 }
 0x99c   :  { %v1263_v9 = vmul.f32 %v1252_v8, %v1229_v52 }
 0x99e   :  { %v1269_v11 = vmul.f32 %v4596_v7, %v1263_v9 }
 0x9a0   :  { %v1275_v22 = vadd.f32 %v4597_v10, %v1269_v11 }
 0x9a2   :  { %4424 = vmatmul.msk.f32.vlgmr.msrb.gmra.mxu1 %vm525_vm1, %v1275_v22 }
 0x9e2   :  { %v1238_v16 = vpop.xlane.xlu2 %1237 }
 0x9e3   :  { %v1240_v18 = vmul.f32 %v1238_v16, %v6052_v37 }
 0x9e5   :  { %v1242_v21 = vadd.f32 1e-05, %v1240_v18 }
 0x9e7   :  { %4649 = vrsqrt.f32 %v1242_v21  ;;  %vm1259_vm8 = vweird.f32 %v1242_v21 }
 0x9ed   :  { %v4650_v24 = vpop.eup %4649 }
 0x9ee   :  { %v1254_v25 = vmul.f32 %v4650_v24, %v1242_v21  ;;  %vm1260_vm7 = vweird.f32 %v4650_v24 }
 0x9ef   :  { %vm1261_vm9 = vmor %vm1259_vm8, %vm1260_vm7 }
 0x9f0   :  { %v1255_v26 = vmul.f32 %v4650_v24, %v1254_v25 }
 0x9f2   :  { %v1256_v27 = vmul.f32 0.5, %v1255_v26 }
 0x9f4   :  { %v1257_v28 = vsub.f32 1.5, %v1256_v27 }
 0x9f6   :  { %v1258_v29 = vmul.f32 %v4650_v24, %v1257_v28 }
 0x9f8   :  { %v1262_v30 = vsel %vm1261_vm9, %v4650_v24, %v1258_v29 }
 0x9f9   :  { %v1264_v31 = vmul.f32 %v1262_v30, %v1230_v56 }
 0x9fb   :  { %v1270_v32 = vmul.f32 %v4596_v7, %v1264_v31 }
 0x9fd   :  { %v1276_v33 = vadd.f32 %v4597_v10, %v1270_v32  ;;  %v4600_v10 = vld [vmem:[#allocation17] ss:$0 sm:$0xff]  ;;  %v4602_v32 = vld [vmem:[#allocation20] ss:$0 sm:$0xff] }
 0x9ff   :  { %4425 = vmatmul.msk.f32.gmra.mxu1 %vm525_vm1, %v1276_v33 }
 0xa1f   :  { %v1308_v40 = vpop.f32.mrf.mxu1 }
 0xa20   :  { %v1309_v41 = vadd.f32 %v4598_v39, %v1308_v40 }
 0xa22   :  { %v1314_v42 = vmax.f32 %v1309_v41, 0.0 }
 0xa24   :  { %4426 = vmatmul.msk.f32.vlgmr.msra.gmra.mxu0 %vm1328_vm10, %v1314_v42 }
 0xa7c   :  { %v1311_v43 = vpop.f32.mrf.mxu1 }
 0xa7d   :  { %v1312_v44 = vadd.f32 %v4598_v39, %v1311_v43 }
 0xa7f   :  { %v1315_v35 = vmax.f32 %v1312_v44, 0.0 }
 0xa81   :  { %4427 = vmatmul.msk.f32.gmra.mxu0 %vm1328_vm10, %v1315_v35 }
 0xaa1   :  { %v1352_v46 = vpop.f32.mrf.mxu0 }
 0xaa2   :  { %v1353_v47 = vadd.f32 %v4599_v45, %v1352_v46 }
 0xaa4   :  { %v1358_v15 = vadd.f32 %v1353_v47, %v1275_v22 }
 0xaa6   :  { %v1360_v48 = vsel %vm525_vm1, %v1358_v15, 0.0 }
 0xaa7   :  { %1361 = vadd.xlane.f32.xlu2 %v1360_v48 }
 0xafe   :  { %v1355_v49 = vpop.f32.mrf.mxu0 }
 0xaff   :  { %v1356_v50 = vadd.f32 %v4599_v45, %v1355_v49 }
 0xb01   :  { %v1359_v51 = vadd.f32 %v1356_v50, %v1276_v33 }
 0xb03   :  { %v1363_v52 = vsel %vm525_vm1, %v1359_v51, 0.0 }
 0xb04   :  { %1364 = vadd.xlane.f32.xlu2 %v1363_v52 }
 0xb1a   :  { %v1362_v17 = vpop.xlane.xlu2 %1361 }
 0xb1b   :  { %v1366_v53 = vmul.f32 %v1362_v17, %v6052_v37 }
 0xb1d   :  { %v1368_v54 = vsub.f32 %v1358_v15, %v1366_v53 }
 0xb1f   :  { %v1370_v55 = vmul.f32 %v1368_v54, %v1368_v54 }
 0xb21   :  { %v1372_v56 = vsel %vm525_vm1, %v1370_v55, 0.0 }
 0xb22   :  { %1373 = vadd.xlane.f32.xlu0 %v1372_v56 }
 0xb77   :  { %v1365_v57 = vpop.xlane.xlu2 %1364 }
 0xb78   :  { %v1367_v58 = vmul.f32 %v1365_v57, %v6052_v37 }
 0xb7a   :  { %v1369_v59 = vsub.f32 %v1359_v51, %v1367_v58 }
 0xb7c   :  { %v1371_v60 = vmul.f32 %v1369_v59, %v1369_v59 }
 0xb7e   :  { %v1375_v61 = vsel %vm525_vm1, %v1371_v60, 0.0 }
 0xb7f   :  { %1376 = vadd.xlane.f32.xlu0 %v1375_v61 }
 0xb95   :  { %v1374_v1 = vpop.xlane.xlu0 %1373 }
 0xb96   :  { %v1378_v2 = vmul.f32 %v1374_v1, %v6052_v37 }
 0xb98   :  { %v1380_v3 = vadd.f32 1e-05, %v1378_v2 }
 0xb9a   :  { %4651 = vrsqrt.f32 %v1380_v3  ;;  %vm1388_vm12 = vweird.f32 %v1380_v3 }
 0xba0   :  { %v4652_v4 = vpop.eup %4651 }
 0xba1   :  { %v1383_v5 = vmul.f32 %v4652_v4, %v1380_v3  ;;  %vm1389_vm11 = vweird.f32 %v4652_v4 }
 0xba2   :  { %vm1390_vm13 = vmor %vm1388_vm12, %vm1389_vm11 }
 0xba3   :  { %v1384_v6 = vmul.f32 %v4652_v4, %v1383_v5 }
 0xba5   :  { %v1385_v7 = vmul.f32 0.5, %v1384_v6 }
 0xba7   :  { %v1386_v8 = vsub.f32 1.5, %v1385_v7 }
 0xba9   :  { %v1387_v9 = vmul.f32 %v4652_v4, %v1386_v8 }
 0xbab   :  { %v1391_v11 = vsel %vm1390_vm13, %v4652_v4, %v1387_v9 }
 0xbac   :  { %v1402_v22 = vmul.f32 %v1391_v11, %v1368_v54 }
 0xbae   :  { %v1408_v13 = vmul.f32 %v4600_v10, %v1402_v22 }
 0xbb0   :  { %v6087_v14 = vadd.f32 %v4601_v12, %v1408_v13 }
 0xbb2   :  { %4428 = vmatmul.msk.f32.vlgmr.msra.gmra.mxu2 %vm525_vm1, %v6087_v14 }
 0xbf2   :  { %v1377_v16 = vpop.xlane.xlu0 %1376 }
 0xbf3   :  { %v1379_v18 = vmul.f32 %v1377_v16, %v6052_v37 }
 0xbf5   :  { %v1381_v19 = vadd.f32 1e-05, %v1379_v18 }
 0xbf7   :  { %4653 = vrsqrt.f32 %v1381_v19  ;;  %vm1398_vm15 = vweird.f32 %v1381_v19 }
 0xbfd   :  { %v4654_v21 = vpop.eup %4653 }
 0xbfe   :  { %v1393_v23 = vmul.f32 %v4654_v21, %v1381_v19  ;;  %vm1399_vm14 = vweird.f32 %v4654_v21 }
 0xbff   :  { %vm1400_vm0 = vmor %vm1398_vm15, %vm1399_vm14 }
 0xc00   :  { %v1394_v24 = vmul.f32 %v4654_v21, %v1393_v23 }
 0xc02   :  { %v1395_v25 = vmul.f32 0.5, %v1394_v24  ;;  %v1453_v24 = vld [vmem:[%s6693_s25] sm:$0xff] }
 0xc04   :  { %v1396_v26 = vsub.f32 1.5, %v1395_v25  ;;  %v1454_v25 = vld [vmem:[%s6693_s25 + $0x8] sm:$0xff] }
 0xc06   :  { %v1397_v27 = vmul.f32 %v4654_v21, %v1396_v26 }
 0xc08   :  { %v1401_v28 = vsel %vm1400_vm0, %v4654_v21, %v1397_v27 }
 0xc09   :  { %v1403_v29 = vmul.f32 %v1401_v28, %v1369_v59 }
 0xc0b   :  { %v1409_v30 = vmul.f32 %v4600_v10, %v1403_v29 }
 0xc0d   :  { %v6092_v31 = vadd.f32 %v4601_v12, %v1409_v30 }
 0xc0f   :  { %4429 = vmatmul.msk.f32.gmra.mxu2 %vm525_vm1, %v6092_v31 }
 0xc35   :  { %v1447_v33 = vpop.f32.mrf.mxu2 }
 0xc36   :  { %v6096_v34 = vadd.f32 %v4602_v32, %v1447_v33 }
 0xc38   :  { %1589 = vrot.lane.b32.xlu2 %v6096_v34, %s5614_s21  ;;  %1458 = vrot.lane.b32.xlu1 %v6096_v34, %s5615_s28 }
 0xc39   :  { %1587 = vrot.lane.b32.xlu0 %v6096_v34, %s5616_s18 }
 0xc92   :  { %v1450_v36 = vpop.f32.mrf.mxu2  ;;  %v1590_v40 = vpop.permute.xlu2 %1589 }
 0xc93   :  { %v6104_v38 = vadd.f32 %v4602_v32, %v1450_v36 }
 0xc95   :  { %1485 = vrot.lane.b32.xlu0 %v6104_v38, %s5615_s28 }
 0xc9d   :  { %1617 = vrot.lane.b32.xlu0 %v6104_v38, %s5614_s21 }
 0xca5   :  { %1615 = vrot.lane.b32.xlu0 %v6104_v38, %s5616_s18 }
 0xcaa   :  { %v1459_v39 = vpop.permute.xlu1 %1458 }
 0xcab   :  { %4430 = vmatpush.xpose.msk.msrb.mxu3 %vm562_vm2, %v1459_v39  ;;  %v1588_v41 = vpop.permute.xlu0 %1587 }
 0xcae   :  { %4431 = vmatmul.msk.f32.vlgmr.msrb.gmra.mxu3 %vm562_vm2, %v6096_v34 }
 0xcaf   :  { %4436 = vmatpush.xpose.msk.msra.mxu3 %vm562_vm2, %v1590_v40 }
 0xcb3   :  { %1740 = vmatpush.msrb.mxu3 %v1454_v25 }
 0xcb6   :  { %4437 = vmatmul.msk.f32.vlgmr.msra.gmra.mxu3 %vm562_vm2, %v1588_v41 }
 0xd07   :  { %v1486_v42 = vpop.permute.xlu0 %1485 }
 0xd08   :  { %4432 = vmatpush.xpose.msk.msra.mxu1 %vm562_vm2, %v1486_v42 }
 0xd0b   :  { %4433 = vmatmul.msk.f32.vlgmr.msra.gmra.mxu1 %vm562_vm2, %v6104_v38 }
 0xd0f   :  { %v1618_v43 = vpop.permute.xlu0 %1617 }
 0xd10   :  { %4438 = vmatpush.xpose.msk.msrb.mxu1 %vm562_vm2, %v1618_v43 }
 0xd14   :  { %1769 = vmatpush.msra.mxu1 %v1453_v24 }
 0xd17   :  { %v1616_v44 = vpop.permute.xlu0 %1615 }
 0xd18   :  { %4439 = vmatmul.msk.f32.vlgmr.msrb.gmra.mxu1 %vm562_vm2, %v1616_v44 }
 0xd31   :  { %v1481_v35 = vpop.f32.mrf.mxu3 }
 0xd32   :  { %v1511_v45 = vmul.f32 0.35355338, %v1481_v35 }
 0xd34   :  { %v1513_v46 = vsel %vm562_vm2, %v1511_v45, -inf }
 0xd35   :  { %1514 = vmax.xlane.f32.xlu2 %v1513_v46 }
 0xd39   :  { %v1612_v47 = vpop.f32.mrf.mxu3 }
 0xd3a   :  { %v1643_v15 = vmul.f32 0.35355338, %v1612_v47 }
 0xd3c   :  { %v1645_v48 = vsel %vm562_vm2, %v1643_v15, -inf }
 0xd3d   :  { %1646 = vmax.xlane.f32.xlu1 %v1645_v48 }
 0xd56   :  { %1535 = vrot.lane.b32.xlu1 %v6096_v34, %s5617_s3 }
 0xd5e   :  { %1777 = vrot.lane.b32.xlu1 %v6096_v34, %s5618_s2 }
 0xd88   :  { %v1508_v59 = vpop.f32.mrf.mxu1 }
 0xd89   :  { %v1512_v62 = vmul.f32 0.35355338, %v1508_v59 }
 0xd8b   :  { %v1516_v0 = vsel %vm562_vm2, %v1512_v62, -inf }
 0xd95   :  { %v1640_v60 = vpop.f32.mrf.mxu1 }
 0xd96   :  { %v1644_v61 = vmul.f32 0.35355338, %v1640_v60 }
 0xd98   :  { %v1648_v63 = vsel %vm562_vm2, %v1644_v61, -inf }
 0xda8   :  { %v1515_v49 = vpop.xlane.xlu2 %1514 }
 0xda9   :  { %v1519_v50 = vsub.f32 %v1511_v45, %v1515_v49 }
 0xdab   :  { %v1521_v51 = vmul.f32 1.442695, %v1519_v50 }
 0xdad   :  { %4655 = vpow2.f32 %v1521_v51 }
 0xdb0   :  { %v1647_v52 = vpop.xlane.xlu1 %1646 }
 0xdb1   :  { %v1651_v17 = vsub.f32 %v1643_v15, %v1647_v52 }
 0xdb3   :  { %v4656_v53 = vpop.eup %4655  ;;  %v1653_v54 = vmul.f32 1.442695, %v1651_v17 }
 0xdb4   :  { %v1525_v55 = vsel %vm562_vm2, %v4656_v53, 0.0 }
 0xdb5   :  { %4657 = vpow2.f32 %v1653_v54  ;;  %1526 = vadd.xlane.f32.xlu0 %v1525_v55 }
 0xdbb   :  { %v4658_v56 = vpop.eup %4657 }
 0xdbc   :  { %v1657_v57 = vsel %vm562_vm2, %v4658_v56, 0.0 }
 0xdbd   :  { %1658 = vadd.xlane.f32.xlu2 %v1657_v57 }
 0xdc8   :  { %v1536_v58 = vpop.permute.xlu1 %1535 }
 0xdc9   :  { %1556 = vmatpush.msrb.mxu0 %v1536_v58  ;;  %1779 = vrot.lane.b32.xlu0 %v6096_v34, %s5620_s5 }
 0xdd0   :  { %v1778_v8 = vpop.permute.xlu1 %1777 }
 0xdd1   :  { %1561 = vrot.lane.b32.xlu0 %v6104_v38, %s5617_s3 }
 0xdd5   :  { %1667 = vrot.lane.b32.xlu2 %v6096_v34, %s5619_s13 }
 0xdfb   :  { %1649 = vmax.xlane.f32.xlu0 %v1648_v63 }
 0xdfe   :  { %1517 = vmax.xlane.f32.xlu2 %v1516_v0 }
 0xe0f   :  { %1805 = vrot.lane.b32.xlu0 %v6104_v38, %s5618_s2 }
 0xe17   :  { %1940 = vrot.lane.b32.xlu0 %v6096_v34, %s5622_s22 }
 0xe1f   :  { %1970 = vrot.lane.b32.xlu0 %v6104_v38, %s5621_s20 }
 0xe28   :  { %v1527_v20 = vpop.xlane.xlu0 %1526 }
 0xe29   :  { %4659 = vrcp.f32 %v1527_v20  ;;  %v1455_v20 = vld [vmem:[%s6693_s25 + $0x10] sm:$0xff] }
 0xe2a   :  { %1930 = vmatpush.msra.mxu3 %v1455_v20 }
 0xe2f   :  { %v4660_v1 = vpop.eup %4659 }
 0xe30   :  { %v1533_v2 = vmul.f32 %v4660_v1, %v4656_v53  ;;  %v1659_v3 = vpop.xlane.xlu2 %1658 }
 0xe31   :  { %4661 = vrcp.f32 %v1659_v3 }
 0xe32   :  { %4434 = vmatmul.msk.f32.vlgmr.msrb.gmra.mxu0 %vm562_vm2, %v1533_v2 }
 0xe37   :  { %v4662_v4 = vpop.eup %4661 }
 0xe38   :  { %v1665_v5 = vmul.f32 %v4662_v4, %v4658_v56  ;;  %v1668_v6 = vpop.permute.xlu2 %1667 }
 0xe39   :  { %1688 = vmatpush.msra.mxu0 %v1668_v6 }
 0xe3a   :  { %4440 = vmatmul.msk.f32.vlgmr.msra.gmra.mxu0 %vm562_vm2, %v1665_v5 }
 0xe3b   :  { %v1780_v7 = vpop.permute.xlu0 %1779 }
 0xe3c   :  { %4446 = vmatpush.xpose.msk.msrb.mxu0 %vm562_vm2, %v1780_v7 }
 0xe42   :  { %4447 = vmatmul.msk.f32.vlgmr.msrb.gmra.mxu0 %vm562_vm2, %v1778_v8 }
 0xe43   :  { %v1562_v9 = vpop.permute.xlu0 %1561 }
 0xe44   :  { %1582 = vmatpush.msrb.mxu2 %v1562_v9 }
 0xe6e   :  { %v1650_v10 = vpop.xlane.xlu0 %1649 }
 0xe6f   :  { %v1652_v12 = vsub.f32 %v1644_v61, %v1650_v10 }
 0xe71   :  { %v1518_v11 = vpop.xlane.xlu2 %1517  ;;  %v1655_v16 = vmul.f32 1.442695, %v1652_v12 }
 0xe72   :  { %v1520_v22 = vsub.f32 %v1512_v62, %v1518_v11 }
 0xe74   :  { %v1523_v13 = vmul.f32 1.442695, %v1520_v22 }
 0xe76   :  { %4663 = vpow2.f32 %v1523_v13 }
 0xe77   :  { %4665 = vpow2.f32 %v1655_v16 }
 0xe7c   :  { %v4664_v18 = vpop.eup %4663 }
 0xe7d   :  { %v1528_v19 = vsel %vm562_vm2, %v4664_v18, 0.0  ;;  %v4666_v21 = vpop.eup %4665 }
 0xe7e   :  { %1529 = vadd.xlane.f32.xlu1 %v1528_v19  ;;  %v1660_v23 = vsel %vm562_vm2, %v4666_v21, 0.0 }
 0xe81   :  { %v1806_v40 = vpop.permute.xlu0 %1805 }
 0xe86   :  { %1661 = vadd.xlane.f32.xlu1 %v1660_v23 }
 0xe89   :  { %v1941_v42 = vpop.permute.xlu0 %1940 }
 0xe91   :  { %v1971_v35 = vpop.permute.xlu0 %1970 }
 0xe9f   :  { %1807 = vrot.lane.b32.xlu1 %v6104_v38, %s5620_s5 }
 0xea7   :  { %1942 = vrot.lane.b32.xlu1 %v6096_v34, %s5621_s20 }
 0xeaf   :  { %v1558_v26 = vpop.f32.mrf.mxu0  ;;  %1857 = vrot.lane.b32.xlu1 %v6096_v34, %s5623_s26 }
 0xeb0   :  { %4444 = vmatmul.msk.f32.vlgmr.msra.gmra.mxu1 %vm562_vm2, %v1558_v26 }
 0xeb7   :  { %v1690_v27 = vpop.f32.mrf.mxu0  ;;  %1968 = vrot.lane.b32.xlu1 %v6104_v38, %s5622_s22 }
 0xeb8   :  { %4442 = vmatmul.msk.f32.vlgmr.msrb.gmra.mxu3 %vm562_vm2, %v1690_v27 }
 0xebf   :  { %v1802_v28 = vpop.f32.mrf.mxu0 }
 0xec0   :  { %v1833_v29 = vmul.f32 0.35355338, %v1802_v28 }
 0xec2   :  { %v1835_v30 = vsel %vm562_vm2, %v1833_v29, -inf }
 0xec3   :  { %1836 = vmax.xlane.f32.xlu2 %v1835_v30 }
 0xedb   :  { %1693 = vrot.lane.b32.xlu2 %v6104_v38, %s5619_s13 }
 0xef1   :  { %v1530_v32 = vpop.xlane.xlu1 %1529 }
 0xef2   :  { %4667 = vrcp.f32 %v1530_v32 }
 0xef8   :  { %v4668_v33 = vpop.eup %4667 }
 0xef9   :  { %v1534_v36 = vmul.f32 %v4668_v33, %v4664_v18  ;;  %v1662_v39 = vpop.xlane.xlu1 %1661 }
 0xefa   :  { %4669 = vrcp.f32 %v1662_v39 }
 0xefb   :  { %4435 = vmatmul.msk.f32.vlgmr.msrb.gmra.mxu2 %vm562_vm2, %v1534_v36 }
 0xf00   :  { %v4670_v15 = vpop.eup %4669 }
 0xf01   :  { %v1666_v48 = vmul.f32 %v4670_v15, %v4666_v21 }
 0xf11   :  { %v1808_v41 = vpop.permute.xlu1 %1807 }
 0xf19   :  { %v1943_v43 = vpop.permute.xlu1 %1942 }
 0xf1a   :  { %4454 = vmatpush.xpose.msk.msrb.mxu1 %vm562_vm2, %v1943_v43 }
 0xf21   :  { %v1858_v44 = vpop.permute.xlu1 %1857 }
 0xf22   :  { %1878 = vmatpush.msra.mxu0 %v1858_v44 }
 0xf24   :  { %4456 = vmatpush.xpose.msk.msrb.mxu0 %vm562_vm2, %v1971_v35 }
 0xf29   :  { %v1969_v56 = vpop.permute.xlu1 %1968 }
 0xf2d   :  { %v6180_v60 = vpop.f32.mrf.mxu1 }
 0xf36   :  { %v1837_v45 = vpop.xlane.xlu2 %1836 }
 0xf37   :  { %v1841_v46 = vsub.f32 %v1833_v29, %v1837_v45 }
 0xf39   :  { %v1843_v47 = vmul.f32 1.442695, %v1841_v46 }
 0xf3b   :  { %4671 = vpow2.f32 %v1843_v47  ;;  %v1742_v43 = vpop.f32.mrf.mxu3  ;;  %v4603_v47 = vld [vmem:[#allocation21] ss:$0 sm:$0xff] }
 0xf3c   :  { %v1772_v45 = vadd.f32 %v6180_v60, %v1742_v43 }
 0xf3e   :  { %v1694_v49 = vpop.permute.xlu2 %1693 }
 0xf3f   :  { %1714 = vmatpush.msra.mxu2 %v1694_v49 }
 0xf40   :  { %4441 = vmatmul.msk.f32.vlgmr.msra.gmra.mxu2 %vm562_vm2, %v1666_v48 }
 0xf41   :  { %v4672_v50 = vpop.eup %4671  ;;  %4448 = vmatpush.xpose.msk.msrb.mxu2 %vm562_vm2, %v1808_v41 }
 0xf42   :  { %v1847_v51 = vsel %vm562_vm2, %v4672_v50, 0.0 }
 0xf43   :  { %1848 = vadd.xlane.f32.xlu2 %v1847_v51 }
 0xf48   :  { %4449 = vmatmul.msk.f32.vlgmr.msrb.gmra.mxu2 %vm562_vm2, %v1806_v40 }
 0xf7e   :  { %v1584_v52 = vpop.f32.mrf.mxu2 }
 0xf7f   :  { %4445 = vmatmul.msk.f32.gmra.mxu1 %vm562_vm2, %v1584_v52 }
 0xf87   :  { %4455 = vmatmul.msk.f32.vlgmr.msrb.gmra.mxu1 %vm562_vm2, %v1941_v42 }
 0xfb6   :  { %v1849_v17 = vpop.xlane.xlu2 %1848 }
 0xfb7   :  { %4673 = vrcp.f32 %v1849_v17 }
 0xfbd   :  { %v4674_v53 = vpop.eup %4673 }
 0xfbe   :  { %v1855_v54 = vmul.f32 %v4674_v53, %v4672_v50 }
 0xfc0   :  { %4450 = vmatmul.msk.f32.vlgmr.msra.gmra.mxu0 %vm562_vm2, %v1855_v54 }
 0xfc3   :  { %v1716_v55 = vpop.f32.mrf.mxu2 }
 0xfc4   :  { %4443 = vmatmul.msk.f32.gmra.mxu3 %vm562_vm2, %v1716_v55 }
 0xfc8   :  { %4457 = vmatmul.msk.f32.vlgmr.msrb.gmra.mxu0 %vm562_vm2, %v1969_v56 }
 0xfcb   :  { %v1830_v57 = vpop.f32.mrf.mxu2 }
 0xfcc   :  { %v1834_v58 = vmul.f32 0.35355338, %v1830_v57 }
 0xfce   :  { %v1838_v59 = vsel %vm562_vm2, %v1834_v58, -inf }
 0xfcf   :  { %1839 = vmax.xlane.f32.xlu0 %v1838_v59 }
 0xfe3   :  { %1883 = vrot.lane.b32.xlu0 %v6104_v38, %s5623_s26 }
 0xffc   :  { %v6182_v61 = vpop.f32.mrf.mxu1 }
0x1004   :  { %v1965_v62 = vpop.f32.mrf.mxu1 }
0x1005   :  { %v1996_v63 = vmul.f32 0.35355338, %v1965_v62 }
0x1007   :  { %v1998_v0 = vsel %vm562_vm2, %v1996_v63, -inf }
0x1008   :  { %1999 = vmax.xlane.f32.xlu1 %v1998_v0 }
0x103d   :  { %v1880_v1 = vpop.f32.mrf.mxu0 }
0x103e   :  { %4452 = vmatmul.msk.f32.vlgmr.msra.gmra.mxu3 %vm562_vm2, %v1880_v1 }
0x1042   :  { %v1840_v2 = vpop.xlane.xlu0 %1839 }
0x1043   :  { %v1842_v3 = vsub.f32 %v1834_v58, %v1840_v2  ;;  %v2170_v2 = vld [vmem:[%s6694_s19 + $0x18] sm:$0xff] }
0x1045   :  { %v1845_v4 = vmul.f32 1.442695, %v1842_v3  ;;  %v1993_v7 = vpop.f32.mrf.mxu0  ;;  %v2169_v3 = vld [vmem:[%s6694_s19 + $0x10] sm:$0xff] }
0x1046   :  { %v1997_v8 = vmul.f32 0.35355338, %v1993_v7 }
0x1047   :  { %4675 = vpow2.f32 %v1845_v4  ;;  %v1745_v44 = vpop.f32.mrf.mxu3  ;;  %v2168_v4 = vld [vmem:[%s6694_s19 + $0x8] sm:$0xff] }
0x1048   :  { %v2001_v10 = vsel %vm562_vm2, %v1997_v8, -inf  ;;  %v1775_v17 = vadd.f32 %v6182_v61, %v1745_v44 }
0x104d   :  { %v4676_v5 = vpop.eup %4675 }
0x104e   :  { %v1850_v6 = vsel %vm562_vm2, %v4676_v5, 0.0 }
0x104f   :  { %1851 = vadd.xlane.f32.xlu2 %v1850_v6 }
0x1055   :  { %v1884_v9 = vpop.permute.xlu0 %1883 }
0x1056   :  { %1904 = vmatpush.msra.mxu2 %v1884_v9 }
0x1057   :  { %2002 = vmax.xlane.f32.xlu2 %v2001_v10 }
0x107b   :  { %v2000_v11 = vpop.xlane.xlu1 %1999 }
0x107c   :  { %v2004_v22 = vsub.f32 %v1996_v63, %v2000_v11 }
0x107e   :  { %v2006_v12 = vmul.f32 1.442695, %v2004_v22 }
0x1080   :  { %4677 = vpow2.f32 %v2006_v12 }
0x1086   :  { %v4678_v13 = vpop.eup %4677 }
0x1087   :  { %v2010_v16 = vsel %vm562_vm2, %v4678_v13, 0.0 }
0x1088   :  { %2011 = vadd.xlane.f32.xlu2 %v2010_v16  ;;  %v4604_v16 = vld [vmem:[#allocation23] ss:$0 sm:$0xff] }
0x10a0   :  { %2020 = vrot.lane.b32.xlu2 %v6096_v34, %s5624_s0 }
0x10c1   :  { %v1932_v35 = vpop.f32.mrf.mxu3 }
0x10c2   :  { %v1852_v18 = vpop.xlane.xlu2 %1851  ;;  %v1938_v46 = vadd.f32 %v1932_v35, %v1772_v45  ;;  %v2208_v45 = vld [vmem:[%s6695_s27 + $0x10] sm:$0xff] }
0x10c3   :  { %4679 = vrcp.f32 %v1852_v18 }
0x10c9   :  { %v4680_v19 = vpop.eup %4679 }
0x10ca   :  { %v1856_v21 = vmul.f32 %v4680_v19, %v4676_v5  ;;  %v2003_v23 = vpop.xlane.xlu2 %2002  ;;  %v2167_v5 = vld [vmem:[%s6694_s19] sm:$0xff] }
0x10cb   :  { %v2005_v24 = vsub.f32 %v1997_v8, %v2003_v23 }
0x10cc   :  { %4451 = vmatmul.msk.f32.vlgmr.msra.gmra.mxu2 %vm562_vm2, %v1856_v21  ;;  %v4605_v21 = vld [vmem:[#allocation24] ss:$0 sm:$0xff] }
0x10cd   :  { %v2008_v25 = vmul.f32 1.442695, %v2005_v24 }
0x10cf   :  { %4681 = vpow2.f32 %v2008_v25  ;;  %v2213_v25 = vld [vmem:[%s6695_s27 + $0x38] sm:$0xff] }
0x10d0   :  { %2232 = vmatpush.msrb.mxu3 %v2213_v25 }
0x10d5   :  { %v4682_v26 = vpop.eup %4681 }
0x10d6   :  { %v2013_v27 = vsel %vm562_vm2, %v4682_v26, 0.0 }
0x10d7   :  { %2014 = vadd.xlane.f32.xlu1 %v2013_v27  ;;  %v2211_v27 = vld [vmem:[%s6695_s27 + $0x28] sm:$0xff] }
0x10f0   :  { %2046 = vrot.lane.b32.xlu1 %v6104_v38, %s5624_s0  ;;  %v1456_v38 = vld [vmem:[%s6693_s25 + $0x18] sm:$0xff] }
0x10f1   :  { %2093 = vmatpush.msra.mxu0 %v1456_v38 }
0x10fb   :  { %v2012_v28 = vpop.xlane.xlu2 %2011 }
0x10fc   :  { %4683 = vrcp.f32 %v2012_v28 }
0x1102   :  { %v4684_v34 = vpop.eup %4683 }
0x1103   :  { %v2018_v29 = vmul.f32 %v4684_v34, %v4678_v13  ;;  %v2021_v30 = vpop.permute.xlu2 %2020 }
0x1104   :  { %2041 = vmatpush.msrb.mxu2 %v2021_v30 }
0x1105   :  { %4458 = vmatmul.msk.f32.vlgmr.msrb.gmra.mxu2 %vm562_vm2, %v2018_v29  ;;  %v2210_v29 = vld [vmem:[%s6695_s27 + $0x20] sm:$0xff] }
0x1106   :  { %2193 = vmatpush.msra.mxu2 %v2170_v2 }
0x1108   :  { %2194 = vmatpush.msra.mxu2 %v2169_v3 }
0x110a   :  { %2195 = vmatpush.msra.mxu2 %v2168_v4 }
0x110c   :  { %2196 = vmatpush.msra.mxu2 %v2167_v5  ;;  %v2308_v5 = vld [vmem:[#allocation32 + $0x18] sm:$0xff] }
0x114a   :  { %v2015_v33 = vpop.xlane.xlu1 %2014 }
0x114b   :  { %4685 = vrcp.f32 %v2015_v33 }
0x114f   :  { %v1906_v32 = vpop.f32.mrf.mxu2 }
0x1150   :  { %4453 = vmatmul.msk.f32.gmra.mxu3 %vm562_vm2, %v1906_v32  ;;  %v2209_v32 = vld [vmem:[%s6695_s27 + $0x18] sm:$0xff] }
0x1151   :  { %v4686_v36 = vpop.eup %4685 }
0x1152   :  { %v2019_v39 = vmul.f32 %v4686_v36, %v4682_v26  ;;  %v2212_v26 = vld [vmem:[%s6695_s27 + $0x30] sm:$0xff] }
0x1153   :  { %2233 = vmatpush.msrb.mxu3 %v2212_v26 }
0x1155   :  { %2234 = vmatpush.msrb.mxu3 %v2211_v27  ;;  %v4608_v27 = vld [vmem:[#allocation29] ss:$0 sm:$0xff] }
0x1157   :  { %2235 = vmatpush.msrb.mxu3 %v2210_v29  ;;  %v4609_v29 = vld [vmem:[#allocation30] ss:$0 sm:$0xff] }
0x1159   :  { %2236 = vmatpush.msrb.mxu3 %v2209_v32 }
0x115b   :  { %2237 = vmatpush.msrb.mxu3 %v2208_v45 }
0x1162   :  { %v2047_v40 = vpop.permute.xlu1 %2046 }
0x1163   :  { %2067 = vmatpush.msra.mxu1 %v2047_v40 }
0x1164   :  { %4459 = vmatmul.msk.f32.vlgmr.msra.gmra.mxu1 %vm562_vm2, %v2019_v39 }
0x1165   :  { %2331 = vmatpush.msrb.mxu1 %v2308_v5 }
0x1188   :  { %v2043_v41 = vpop.f32.mrf.mxu2 }
0x1189   :  { %4460 = vmatmul.msk.f32.vlgmr.msra.gmra.mxu0 %vm562_vm2, %v2043_v41 }
0x11d3   :  { %v1935_v52 = vpop.f32.mrf.mxu3 }
0x11d4   :  { %v1939_v53 = vadd.f32 %v1935_v52, %v1775_v17 }
0x11e1   :  { %v2069_v42 = vpop.f32.mrf.mxu1 }
0x11e2   :  { %4461 = vmatmul.msk.f32.gmra.mxu0 %vm562_vm2, %v2069_v42 }
0x1206   :  { %v2095_v15 = vpop.f32.mrf.mxu0 }
0x1207   :  { %v2101_v48 = vadd.f32 %v2095_v15, %v1938_v46  ;;  %v2207_v46 = vld [vmem:[%s6695_s27 + $0x8] sm:$0xff] }
0x1208   :  { %2238 = vmatpush.msrb.mxu3 %v2207_v46  ;;  %v4606_v15 = vld [vmem:[#allocation26] ss:$0 sm:$0xff] }
0x1209   :  { %v2107_v49 = vadd.f32 %v4603_v47, %v2101_v48 }
0x120b   :  { %v2109_v50 = vadd.f32 %v2107_v49, %v6087_v14 }
0x120d   :  { %v2111_v51 = vsel %vm525_vm1, %v2109_v50, 0.0 }
0x120e   :  { %2112 = vadd.xlane.f32.xlu0 %v2111_v51 }
0x125f   :  { %v2098_v54 = vpop.f32.mrf.mxu0 }
0x1260   :  { %v2102_v55 = vadd.f32 %v2098_v54, %v1939_v53  ;;  %v4607_v53 = vld [vmem:[#allocation27] ss:$0 sm:$0xff] }
0x1262   :  { %v2108_v56 = vadd.f32 %v4603_v47, %v2102_v55  ;;  %v2206_v47 = vld [vmem:[%s6695_s27] sm:$0xff] }
0x1263   :  { %2239 = vmatpush.msrb.mxu3 %v2206_v47 }
0x1264   :  { %v2110_v57 = vadd.f32 %v2108_v56, %v6092_v31 }
0x1266   :  { %v2114_v58 = vsel %vm525_vm1, %v2110_v57, 0.0 }
0x1267   :  { %2115 = vadd.xlane.f32.xlu2 %v2114_v58 }
0x1281   :  { %v2113_v59 = vpop.xlane.xlu0 %2112 }
0x1282   :  { %v2117_v14 = vmul.f32 %v2113_v59, %v6052_v37 }
0x1284   :  { %v2119_v60 = vsub.f32 %v2109_v50, %v2117_v14 }
0x1286   :  { %v2121_v62 = vmul.f32 %v2119_v60, %v2119_v60 }
0x1288   :  { %v2123_v61 = vsel %vm525_vm1, %v2121_v62, 0.0 }
0x1289   :  { %2124 = vadd.xlane.f32.xlu1 %v2123_v61 }
0x12da   :  { %v2116_v63 = vpop.xlane.xlu2 %2115 }
0x12db   :  { %v2118_v0 = vmul.f32 %v2116_v63, %v6052_v37 }
0x12dd   :  { %v2120_v20 = vsub.f32 %v2110_v57, %v2118_v0 }
0x12df   :  { %v2122_v1 = vmul.f32 %v2120_v20, %v2120_v20 }
0x12e1   :  { %v2126_v31 = vsel %vm525_vm1, %v2122_v1, 0.0 }
0x12e2   :  { %2127 = vadd.xlane.f32.xlu0 %v2126_v31 }
0x12fc   :  { %v2125_v6 = vpop.xlane.xlu1 %2124 }
0x12fd   :  { %v2129_v7 = vmul.f32 %v2125_v6, %v6052_v37  ;;  %v2307_v6 = vld [vmem:[#allocation32 + $0x10] sm:$0xff] }
0x12fe   :  { %2332 = vmatpush.msrb.mxu1 %v2307_v6 }
0x12ff   :  { %v2131_v8 = vadd.f32 1e-05, %v2129_v7  ;;  %v2345_v7 = vld [vmem:[#allocation33 + $0x18] sm:$0xff] }
0x1300   :  { %2361 = vmatpush.msrb.mxu0 %v2345_v7  ;;  %2479 = vmatpush.msrb.mxu2 %v2345_v7 }
0x1301   :  { %4687 = vrsqrt.f32 %v2131_v8  ;;  %vm2139_vm3 = vweird.f32 %v2131_v8  ;;  %2602 = vmatpush.msra.mxu3 %v2345_v7 }
0x1307   :  { %v4688_v9 = vpop.eup %4687 }
0x1308   :  { %v2134_v10 = vmul.f32 %v4688_v9, %v2131_v8  ;;  %vm2140_vm2 = vweird.f32 %v4688_v9  ;;  %v2306_v8 = vld [vmem:[#allocation32 + $0x8] sm:$0xff] }
0x1309   :  { %vm2141_vm4 = vmor %vm2139_vm3, %vm2140_vm2  ;;  %2333 = vmatpush.msrb.mxu1 %v2306_v8 }
0x130a   :  { %v2135_v11 = vmul.f32 %v4688_v9, %v2134_v10  ;;  %v2305_v10 = vld [vmem:[#allocation32] sm:$0xff] }
0x130b   :  { %2334 = vmatpush.msrb.mxu1 %v2305_v10 }
0x130c   :  { %v2136_v22 = vmul.f32 0.5, %v2135_v11  ;;  %v2343_v11 = vld [vmem:[#allocation33 + $0x8] sm:$0xff] }
0x130d   :  { %2727 = vmatpush.msra.mxu1 %v2345_v7 }
0x130e   :  { %v2137_v12 = vsub.f32 1.5, %v2136_v22  ;;  %v2342_v22 = vld [vmem:[#allocation33] sm:$0xff] }
0x1310   :  { %v2138_v13 = vmul.f32 %v4688_v9, %v2137_v12 }
0x1312   :  { %v2142_v18 = vsel %vm2141_vm4, %v4688_v9, %v2138_v13  ;;  %v2344_v9 = vld [vmem:[#allocation33 + $0x10] sm:$0xff]  ;;  %v5626_v13 = vmov 0.0  }
0x1313   :  { %v2153_v19 = vmul.f32 %v2142_v18, %v2119_v60  ;;  %2362 = vmatpush.msrb.mxu0 %v2344_v9  ;;  %2480 = vmatpush.msrb.mxu2 %v2344_v9 }
0x1314   :  { %2603 = vmatpush.msra.mxu3 %v2344_v9  ;;  %2728 = vmatpush.msra.mxu1 %v2344_v9 }
0x1315   :  { %v2159_v23 = vmul.f32 %v4604_v16, %v2153_v19  ;;  %2363 = vmatpush.msrb.mxu0 %v2343_v11  ;;  %2481 = vmatpush.msrb.mxu2 %v2343_v11 }
0x1316   :  { %2604 = vmatpush.msra.mxu3 %v2343_v11  ;;  %2729 = vmatpush.msra.mxu1 %v2343_v11 }
0x1317   :  { %v2165_v24 = vadd.f32 %v4605_v21, %v2159_v23  ;;  %2364 = vmatpush.msrb.mxu0 %v2342_v22  ;;  %2482 = vmatpush.msrb.mxu2 %v2342_v22 }
0x1318   :  { %2365 = vmatmul.f32.vlgmr.msrb.gmra.mxu0 %v5626_v13  ;;  %2605 = vmatpush.msra.mxu3 %v2342_v22 }
0x1319   :  { %4462 = vmatmul.msk.f32.vlgmr.msra.gmra.mxu2 %vm525_vm1, %v2165_v24  ;;  %2852 = vmatpush.msra.mxu0 %v2345_v7 }
0x131a   :  { %2977 = vmatpush.msra.mxu2 %v2345_v7  ;;  %2730 = vmatpush.msra.mxu1 %v2342_v22 }
0x131b   :  { %2853 = vmatpush.msra.mxu0 %v2344_v9 }
0x131c   :  { %2978 = vmatpush.msra.mxu2 %v2344_v9 }
0x131d   :  { %2854 = vmatpush.msra.mxu0 %v2343_v11 }
0x131e   :  { %2979 = vmatpush.msra.mxu2 %v2343_v11 }
0x131f   :  { %2855 = vmatpush.msra.mxu0 %v2342_v22 }
0x1320   :  { %2980 = vmatpush.msra.mxu2 %v2342_v22 }
0x1355   :  { %v2128_v28 = vpop.xlane.xlu0 %2127 }
0x1356   :  { %v2130_v34 = vmul.f32 %v2128_v28, %v6052_v37 }
0x1358   :  { %v2132_v30 = vadd.f32 1e-05, %v2130_v34 }
0x135a   :  { %4689 = vrsqrt.f32 %v2132_v30  ;;  %vm2149_vm6 = vweird.f32 %v2132_v30 }
0x1360   :  { %v4690_v33 = vpop.eup %4689 }
0x1361   :  { %v2144_v36 = vmul.f32 %v4690_v33, %v2132_v30  ;;  %vm2150_vm5 = vweird.f32 %v4690_v33 }
0x1362   :  { %vm2151_vm7 = vmor %vm2149_vm6, %vm2150_vm5 }
0x1363   :  { %v2145_v39 = vmul.f32 %v4690_v33, %v2144_v36 }
0x1365   :  { %v2146_v40 = vmul.f32 0.5, %v2145_v39 }
0x1367   :  { %v2147_v38 = vsub.f32 1.5, %v2146_v40 }
0x1369   :  { %v2148_v41 = vmul.f32 %v4690_v33, %v2147_v38 }
0x136b   :  { %v2152_v42 = vsel %vm2151_vm7, %v4690_v33, %v2148_v41  ;;  %vm2461_vm7 = vcmask 1041409  }
0x136c   :  { %v2154_v43 = vmul.f32 %v2152_v42, %v2120_v20 }
0x136e   :  { %v2160_v44 = vmul.f32 %v4604_v16, %v2154_v43 }
0x1370   :  { %v2166_v35 = vadd.f32 %v4605_v21, %v2160_v44 }
0x1372   :  { %4463 = vmatmul.msk.f32.gmra.mxu2 %vm525_vm1, %v2166_v35 }
0x139c   :  { %v2198_v48 = vpop.f32.mrf.mxu2 }
0x139d   :  { %v2199_v49 = vadd.f32 %v4606_v15, %v2198_v48  ;;  %v2366_v48 = vpop.f32.mrf.mxu0 }
0x139f   :  { %v2204_v50 = vmax.f32 %v2199_v49, 0.0 }
0x13a1   :  { %4464 = vmatmul.msk.f32.vlgmr.msrb.gmra.mxu3 %vm1328_vm10, %v2204_v50 }
0x13a2   :  { %3102 = vmatpush.msrb.mxu3 %v2345_v7 }
0x13a4   :  { %3103 = vmatpush.msrb.mxu3 %v2344_v9 }
0x13a6   :  { %3104 = vmatpush.msrb.mxu3 %v2343_v11 }
0x13a8   :  { %3105 = vmatpush.msrb.mxu3 %v2342_v22 }
0x13f5   :  { %v2201_v51 = vpop.f32.mrf.mxu2 }
0x13f6   :  { %v2202_v52 = vadd.f32 %v4606_v15, %v2201_v51 }
0x13f8   :  { %v2205_v17 = vmax.f32 %v2202_v52, 0.0 }
0x13fa   :  { %4465 = vmatmul.msk.f32.gmra.mxu3 %vm1328_vm10, %v2205_v17 }
0x1424   :  { %v2241_v54 = vpop.f32.mrf.mxu3 }
0x1425   :  { %v2242_v55 = vadd.f32 %v4607_v53, %v2241_v54 }
0x1427   :  { %v2247_v56 = vadd.f32 %v2242_v55, %v2165_v24 }
0x1429   :  { %v2249_v57 = vsel %vm525_vm1, %v2247_v56, 0.0 }
0x142a   :  { %2250 = vadd.xlane.f32.xlu2 %v2249_v57  ;;  %v2370_v57 = vrot.slane %v2366_v48, 1 }
0x147d   :  { %v2244_v58 = vpop.f32.mrf.mxu3 }
0x147e   :  { %v2245_v59 = vadd.f32 %v4607_v53, %v2244_v58 }
0x1480   :  { %v2248_v14 = vadd.f32 %v2245_v59, %v2166_v35 }
0x1482   :  { %v2252_v60 = vsel %vm525_vm1, %v2248_v14, 0.0 }
0x1483   :  { %2253 = vadd.xlane.f32.xlu0 %v2252_v60 }
0x149d   :  { %v2251_v62 = vpop.xlane.xlu2 %2250 }
0x149e   :  { %v2255_v61 = vmul.f32 %v2251_v62, %v6052_v37 }
0x14a0   :  { %v6233_v63 = vsub.f32 %v2247_v56, %v2255_v61 }
0x14a2   :  { %v2259_v0 = vmul.f32 %v6233_v63, %v6233_v63 }
0x14a4   :  { %v2261_v20 = vsel %vm525_vm1, %v2259_v0, 0.0 }
0x14a5   :  { %2262 = vadd.xlane.f32.xlu2 %v2261_v20 }
0x14f6   :  { %v2254_v1 = vpop.xlane.xlu0 %2253 }
0x14f7   :  { %v2256_v31 = vmul.f32 %v2254_v1, %v6052_v37 }
0x14f9   :  { %v6239_v2 = vsub.f32 %v2248_v14, %v2256_v31 }
0x14fb   :  { %v2260_v3 = vmul.f32 %v6239_v2, %v6239_v2 }
0x14fd   :  { %v2264_v4 = vsel %vm525_vm1, %v2260_v3, 0.0 }
0x14fe   :  { %2265 = vadd.xlane.f32.xlu0 %v2264_v4 }
0x1518   :  { %v2263_v12 = vpop.xlane.xlu2 %2262 }
0x1519   :  { %v2267_v16 = vmul.f32 %v2263_v12, %v6052_v37 }
0x151b   :  { %v2269_v18 = vadd.f32 1e-05, %v2267_v16 }
0x151d   :  { %4691 = vrsqrt.f32 %v2269_v18  ;;  %vm2277_vm9 = vweird.f32 %v2269_v18 }
0x1523   :  { %v4692_v19 = vpop.eup %4691 }
0x1524   :  { %v2272_v21 = vmul.f32 %v4692_v19, %v2269_v18  ;;  %vm2278_vm8 = vweird.f32 %v4692_v19 }
0x1525   :  { %vm2279_vm10 = vmor %vm2277_vm9, %vm2278_vm8 }
0x1526   :  { %v2273_v23 = vmul.f32 %v4692_v19, %v2272_v21 }
0x1528   :  { %v2274_v24 = vmul.f32 0.5, %v2273_v23 }
0x152a   :  { %v2275_v25 = vsub.f32 1.5, %v2274_v24 }
0x152c   :  { %v2276_v26 = vmul.f32 %v4692_v19, %v2275_v25 }
0x152e   :  { %v2280_v28 = vsel %vm2279_vm10, %v4692_v19, %v2276_v26 }
0x152f   :  { %v2291_v34 = vmul.f32 %v2280_v28, %v6233_v63 }
0x1531   :  { %v2297_v30 = vmul.f32 %v4608_v27, %v2291_v34 }
0x1533   :  { %v2303_v32 = vadd.f32 %v4609_v29, %v2297_v30 }
0x1535   :  { %4466 = vmatmul.msk.f32.vlgmr.msrb.gmra.mxu1 %vm525_vm1, %v2303_v32 }
0x1536   :  { %3227 = vmatpush.msrb.mxu1 %v2345_v7 }
0x1538   :  { %3228 = vmatpush.msrb.mxu1 %v2344_v9 }
0x153a   :  { %3229 = vmatpush.msrb.mxu1 %v2343_v11 }
0x153c   :  { %3230 = vmatpush.msrb.mxu1 %v2342_v22 }
0x1571   :  { %v2266_v33 = vpop.xlane.xlu0 %2265 }
0x1572   :  { %v2268_v36 = vmul.f32 %v2266_v33, %v6052_v37  ;;  %v4610_v37 = vld [vmem:[%s6696_s14] ss:$0 sm:$0xff] }
0x1574   :  { %v2270_v39 = vadd.f32 1e-05, %v2268_v36 }
0x1576   :  { %4693 = vrsqrt.f32 %v2270_v39  ;;  %vm2287_vm12 = vweird.f32 %v2270_v39 }
0x157c   :  { %v4694_v40 = vpop.eup %4693 }
0x157d   :  { %v2282_v38 = vmul.f32 %v4694_v40, %v2270_v39  ;;  %vm2288_vm11 = vweird.f32 %v4694_v40 }
0x157e   :  { %vm2289_vm13 = vmor %vm2287_vm12, %vm2288_vm11 }
0x157f   :  { %v2283_v41 = vmul.f32 %v4694_v40, %v2282_v38 }
0x1581   :  { %v2284_v42 = vmul.f32 0.5, %v2283_v41 }
0x1583   :  { %v2285_v43 = vsub.f32 1.5, %v2284_v42 }
0x1585   :  { %v2286_v44 = vmul.f32 %v4694_v40, %v2285_v43 }
0x1587   :  { %v2290_v35 = vsel %vm2289_vm13, %v4694_v40, %v2286_v44 }
0x1588   :  { %v2292_v45 = vmul.f32 %v2290_v35, %v6239_v2 }
0x158a   :  { %v2298_v46 = vmul.f32 %v4608_v27, %v2292_v45 }
0x158c   :  { %v2304_v47 = vadd.f32 %v4609_v29, %v2298_v46 }
0x158e   :  { %4467 = vmatmul.msk.f32.gmra.mxu1 %vm525_vm1, %v2304_v47 }
0x15b2   :  { %v2336_v15 = vpop.f32.mrf.mxu1 }
0x15b3   :  { %v6252_v49 = vadd.f32 %v4610_v37, %v2336_v15 }
0x15b5   :  { %v2373_v50 = vadd.f32 %v2366_v48, %v6252_v49 }
0x15b7   :  { %4695 = vtanh.f32 %v2373_v50  ;;  %v4468_v52 = vmul.f32 -1.442695, %v2373_v50 }
0x15b9   :  { %4697 = vpow2.f32 %v4468_v52 }
0x15bd   :  { %v4696_v51 = vpop.eup %4695 }
0x15be   :  { %2419 = vrot.lane.b32.xlu2 %v4696_v51, %s5617_s3 }
0x15bf   :  { %v4698_v17 = vpop.eup %4697 }
0x15c0   :  { %v2381_v53 = vadd.f32 1.0, %v4698_v17 }
0x15c2   :  { %4699 = vrcp.f32 %v2381_v53  ;;  %v2394_v61 = vand.u32 2147483648, %v2381_v53  ;;  %vm2388_vm15 = vweird.f32 %v2381_v53  ;;  %v2392_v63 = vand.u32 2147483647, %v2381_v53 }
0x15c4   :  { %v2395_v1 = vor.u32 1.1754944e-38, %v2394_v61  ;;  %vm2393_vm2 = vcmp.eq.f32.partialorder %v2392_v63, 8.507059e+37 }
0x15c8   :  { %v4700_v54 = vpop.eup %4699 }
0x15c9   :  { %v2384_v55 = vmul.f32 %v4700_v54, %v2381_v53  ;;  %vm2389_vm14 = vweird.f32 %v4700_v54 }
0x15ca   :  { %vm2390_vm0 = vmor %vm2388_vm15, %vm2389_vm14 }
0x15cb   :  { %v2385_v56 = vsub.f32 1.0, %v2384_v55 }
0x15cd   :  { %v2386_v14 = vmul.f32 %v4700_v54, %v2385_v56 }
0x15cf   :  { %v2387_v62 = vadd.f32 %v4700_v54, %v2386_v14 }
0x15d1   :  { %v2391_v0 = vsel %vm2390_vm0, %v4700_v54, %v2387_v62 }
0x15d2   :  { %v2396_v2 = vsel %vm2393_vm2, %v2395_v1, %v2391_v0 }
0x15d3   :  { %v2415_v8 = vmul.f32 0.0, %v2396_v2 }
0x160b   :  { %v2339_v58 = vpop.f32.mrf.mxu1 }
0x160c   :  { %v6256_v59 = vadd.f32 %v4610_v37, %v2339_v58 }
0x160e   :  { %v2374_v60 = vadd.f32 %v2370_v57, %v6256_v59 }
0x1610   :  { %4701 = vtanh.f32 %v2374_v60  ;;  %v4469_v4 = vmul.f32 -1.442695, %v2374_v60 }
0x1612   :  { %4703 = vpow2.f32 %v4469_v4 }
0x1616   :  { %v4702_v20 = vpop.eup %4701 }
0x1617   :  { %2421 = vrot.lane.b32.xlu1 %v4702_v20, %s5617_s3 }
0x1618   :  { %v2420_v31 = vpop.permute.xlu2 %2419  ;;  %v4704_v5 = vpop.eup %4703 }
0x1619   :  { %v2425_v3 = vmul.f32 %v2420_v31, %v2396_v2  ;;  %v2382_v6 = vadd.f32 1.0, %v4704_v5 }
0x161b   :  { %2429 = vrot.lane.b32.xlu2 %v2425_v3, %s5627_s7  ;;  %4705 = vrcp.f32 %v2382_v6  ;;  %v2409_v19 = vand.u32 2147483648, %v2382_v6  ;;  %vm2403_vm4 = vweird.f32 %v2382_v6  ;;  %v2407_v21 = vand.u32 2147483647, %v2382_v6 }
0x161d   :  { %v2410_v24 = vor.u32 1.1754944e-38, %v2409_v19  ;;  %vm2408_vm6 = vcmp.eq.f32.partialorder %v2407_v21, 8.507059e+37 }
0x1621   :  { %v4706_v7 = vpop.eup %4705 }
0x1622   :  { %v2399_v11 = vmul.f32 %v4706_v7, %v2382_v6  ;;  %vm2404_vm3 = vweird.f32 %v4706_v7 }
0x1623   :  { %vm2405_vm5 = vmor %vm2403_vm4, %vm2404_vm3 }
0x1624   :  { %v2400_v22 = vsub.f32 1.0, %v2399_v11 }
0x1626   :  { %v2401_v16 = vmul.f32 %v4706_v7, %v2400_v22 }
0x1628   :  { %v2402_v18 = vadd.f32 %v4706_v7, %v2401_v16 }
0x162a   :  { %v2406_v23 = vsel %vm2405_vm5, %v4706_v7, %v2402_v18 }
0x162b   :  { %v2411_v26 = vsel %vm2408_vm6, %v2410_v24, %v2406_v23 }
0x162c   :  { %v2416_v28 = vmul.f32 0.0, %v2411_v26 }
0x1675   :  { %v2430_v9 = vpop.permute.xlu2 %2429 }
0x1676   :  { %v6261_v10 = vadd.f32 %v2430_v9, %v2415_v8 }
0x1678   :  { %4707 = vtanh.f32 %v6261_v10  ;;  %v2535_v9 = vrot.slane %v6261_v10, 7 }
0x167e   :  { %v4708_v12 = vpop.eup %4707 }
0x167f   :  { %2441 = vrot.lane.b32.xlu1 %v4708_v12, %s5617_s3 }
0x1689   :  { %v2422_v25 = vpop.permute.xlu1 %2421 }
0x168a   :  { %v2426_v27 = vmul.f32 %v2422_v25, %v2411_v26 }
0x168c   :  { %2431 = vrot.lane.b32.xlu0 %v2426_v27, %s5627_s7 }
0x16f1   :  { %v2442_v32 = vpop.permute.xlu1 %2441 }
0x16f2   :  { %v6272_v39 = vmul.f32 %v2442_v32, %v2396_v2 }
0x16fe   :  { %v2432_v34 = vpop.permute.xlu0 %2431 }
0x16ff   :  { %v6266_v29 = vadd.f32 %v2432_v34, %v2416_v28 }
0x1701   :  { %4709 = vtanh.f32 %v6266_v29  ;;  %v2536_v18 = vrot.slane %v6266_v29, 7 }
0x1707   :  { %v4710_v30 = vpop.eup %4709 }
0x1708   :  { %2443 = vrot.lane.b32.xlu0 %v4710_v30, %s5617_s3 }
0x177a   :  { %v2444_v33 = vpop.permute.xlu0 %2443 }
0x177b   :  { %v6270_v36 = vmul.f32 %v2444_v33, %v2411_v26 }
0x177d   :  { %v2460_v40 = vrot.slane %v6270_v36, 7 }
0x177f   :  { %v2462_v38 = vsel %vm2461_vm7, %v2460_v40, %v6272_v39 }
0x1780   :  { %2463 = vrot.lane.b32.xlu2 %v2462_v38, %s5627_s7 }
0x17da   :  { %v2464_v41 = vpop.permute.xlu2 %2463 }
0x17db   :  { %4470 = vmatmul.msk.f32.vlgmr.msrb.gmra.mxu2 %vm525_vm1, %v2464_v41 }
0x185e   :  { %v2484_v42 = vpop.f32.mrf.mxu2 }
0x185f   :  { %v2488_v43 = vrot.slane %v2484_v42, 7  ;;  %v2492_v44 = vadd.f32 %v2484_v42, %v6256_v59 }
0x1861   :  { %v2491_v35 = vadd.f32 %v2488_v43, %v6252_v49  ;;  %4711 = vtanh.f32 %v2492_v44  ;;  %v4472_v47 = vmul.f32 -1.442695, %v2492_v44 }
0x1863   :  { %4713 = vtanh.f32 %v2491_v35  ;;  %v4471_v37 = vmul.f32 -1.442695, %v2491_v35 }
0x1864   :  { %4715 = vpow2.f32 %v4472_v47 }
0x1865   :  { %4717 = vpow2.f32 %v4471_v37 }
0x1867   :  { %v4712_v45 = vpop.eup %4711 }
0x1868   :  { %2545 = vrot.lane.b32.xlu1 %v4712_v45, %s5617_s3 }
0x1869   :  { %v4714_v46 = vpop.eup %4713 }
0x186a   :  { %2543 = vrot.lane.b32.xlu0 %v4714_v46, %s5617_s3  ;;  %v4716_v15 = vpop.eup %4715 }
0x186b   :  { %v4718_v48 = vpop.eup %4717  ;;  %v2500_v50 = vadd.f32 1.0, %v4716_v15 }
0x186c   :  { %v2499_v51 = vadd.f32 1.0, %v4718_v48 }
0x186d   :  { %4719 = vrcp.f32 %v2500_v50  ;;  %v2527_v60 = vand.u32 2147483648, %v2500_v50  ;;  %vm2521_vm9 = vweird.f32 %v2500_v50  ;;  %v2525_v62 = vand.u32 2147483647, %v2500_v50 }
0x186e   :  { %4721 = vrcp.f32 %v2499_v51  ;;  %v2512_v0 = vand.u32 2147483648, %v2499_v51  ;;  %vm2506_vm12 = vweird.f32 %v2499_v51  ;;  %v2510_v1 = vand.u32 2147483647, %v2499_v51 }
0x186f   :  { %v2528_v20 = vor.u32 1.1754944e-38, %v2527_v60  ;;  %vm2526_vm13 = vcmp.eq.f32.partialorder %v2525_v62, 8.507059e+37 }
0x1870   :  { %v2513_v5 = vor.u32 1.1754944e-38, %v2512_v0  ;;  %vm2511_vm15 = vcmp.eq.f32.partialorder %v2510_v1, 8.507059e+37 }
0x1873   :  { %v4720_v52 = vpop.eup %4719 }
0x1874   :  { %v4722_v17 = vpop.eup %4721  ;;  %v2517_v53 = vmul.f32 %v4720_v52, %v2500_v50  ;;  %vm2522_vm8 = vweird.f32 %v4720_v52 }
0x1875   :  { %v2502_v54 = vmul.f32 %v4722_v17, %v2499_v51  ;;  %vm2523_vm10 = vmor %vm2521_vm9, %vm2522_vm8  ;;  %vm2507_vm11 = vweird.f32 %v4722_v17 }
0x1876   :  { %v2518_v55 = vsub.f32 1.0, %v2517_v53  ;;  %vm2508_vm14 = vmor %vm2506_vm12, %vm2507_vm11 }
0x1877   :  { %v2503_v56 = vsub.f32 1.0, %v2502_v54 }
0x1878   :  { %v2519_v57 = vmul.f32 %v4720_v52, %v2518_v55 }
0x1879   :  { %v2504_v58 = vmul.f32 %v4722_v17, %v2503_v56 }
0x187a   :  { %v2520_v14 = vadd.f32 %v4720_v52, %v2519_v57 }
0x187b   :  { %v2505_v61 = vadd.f32 %v4722_v17, %v2504_v58 }
0x187c   :  { %v2524_v63 = vsel %vm2523_vm10, %v4720_v52, %v2520_v14 }
0x187d   :  { %v2529_v2 = vsel %vm2526_vm13, %v2528_v20, %v2524_v63  ;;  %v2509_v3 = vsel %vm2508_vm14, %v4722_v17, %v2505_v61 }
0x187e   :  { %v2514_v7 = vsel %vm2511_vm15, %v2513_v5, %v2509_v3  ;;  %v2540_v19 = vmul.f32 %v2536_v18, %v2529_v2 }
0x187f   :  { %v2539_v11 = vmul.f32 %v2535_v9, %v2514_v7 }
0x18da   :  { %v2546_v31 = vpop.permute.xlu1 %2545 }
0x18db   :  { %v2550_v4 = vmul.f32 %v2546_v31, %v2529_v2 }
0x18dc   :  { %v2544_v6 = vpop.permute.xlu0 %2543 }
0x18dd   :  { %2555 = vrot.lane.b32.xlu0 %v2550_v4, %s5627_s7  ;;  %v2549_v8 = vmul.f32 %v2544_v6, %v2514_v7 }
0x18df   :  { %2553 = vrot.lane.b32.xlu2 %v2549_v8, %s5627_s7 }
0x1939   :  { %v2554_v22 = vpop.permute.xlu2 %2553 }
0x193a   :  { %v6286_v12 = vadd.f32 %v2554_v22, %v2539_v11 }
0x193c   :  { %4723 = vtanh.f32 %v6286_v12  ;;  %v2659_v9 = vrot.slane %v6286_v12, 7 }
0x1942   :  { %v4724_v16 = vpop.eup %4723 }
0x1943   :  { %2565 = vrot.lane.b32.xlu1 %v4724_v16, %s5617_s3 }
0x194f   :  { %v2556_v21 = vpop.permute.xlu0 %2555 }
0x1950   :  { %v6291_v23 = vadd.f32 %v2556_v21, %v2540_v19 }
0x1952   :  { %4725 = vtanh.f32 %v6291_v23  ;;  %v2660_v4 = vrot.slane %v6291_v23, 7 }
0x1958   :  { %v4726_v24 = vpop.eup %4725 }
0x1959   :  { %2567 = vrot.lane.b32.xlu2 %v4726_v24, %s5617_s3 }
0x19b3   :  { %v2568_v10 = vpop.permute.xlu2 %2567 }
0x19b4   :  { %v6297_v27 = vmul.f32 %v2568_v10, %v2529_v2 }
0x19b5   :  { %v2566_v25 = vpop.permute.xlu1 %2565 }
0x19b6   :  { %v6295_v26 = vmul.f32 %v2566_v25, %v2514_v7 }
0x19b8   :  { %v2584_v28 = vrot.slane %v6295_v26, 1 }
0x19ba   :  { %v2585_v34 = vsel %vm2461_vm7, %v6297_v27, %v2584_v28 }
0x19bb   :  { %2586 = vrot.lane.b32.xlu0 %v2585_v34, %s5627_s7 }
0x1a2d   :  { %v2587_v29 = vpop.permute.xlu0 %2586 }
0x1a2e   :  { %4473 = vmatmul.msk.f32.vlgmr.msra.gmra.mxu3 %vm525_vm1, %v2587_v29 }
0x1ab1   :  { %v2607_v30 = vpop.f32.mrf.mxu3 }
0x1ab2   :  { %v2611_v32 = vrot.slane %v2607_v30, 6  ;;  %v2612_v33 = vrot.slane %v2607_v30, 7 }
0x1ab4   :  { %v2615_v40 = vadd.f32 %v2611_v32, %v6252_v49  ;;  %v2616_v38 = vadd.f32 %v2612_v33, %v6256_v59 }
0x1ab6   :  { %4727 = vtanh.f32 %v2615_v40  ;;  %v4475_v43 = vmul.f32 -1.442695, %v2616_v38  ;;  %v4474_v46 = vmul.f32 -1.442695, %v2615_v40 }
0x1ab7   :  { %4729 = vtanh.f32 %v2616_v38 }
0x1ab8   :  { %4731 = vpow2.f32 %v4475_v43 }
0x1abc   :  { %v4728_v41 = vpop.eup %4727 }
0x1abd   :  { %v4730_v42 = vpop.eup %4729  ;;  %2667 = vrot.lane.b32.xlu1 %v4728_v41, %s5617_s3 }
0x1abe   :  { %2669 = vrot.lane.b32.xlu2 %v4730_v42, %s5617_s3  ;;  %v4732_v44 = vpop.eup %4731 }
0x1abf   :  { %v2624_v35 = vadd.f32 1.0, %v4732_v44 }
0x1ac1   :  { %4733 = vrcp.f32 %v2624_v35  ;;  %v2651_v52 = vand.u32 2147483648, %v2624_v35  ;;  %vm2645_vm2 = vweird.f32 %v2624_v35  ;;  %v2649_v17 = vand.u32 2147483647, %v2624_v35 }
0x1ac2   :  { %4735 = vpow2.f32 %v4474_v46 }
0x1ac3   :  { %v2652_v54 = vor.u32 1.1754944e-38, %v2651_v52  ;;  %vm2650_vm4 = vcmp.eq.f32.partialorder %v2649_v17, 8.507059e+37 }
0x1ac7   :  { %v4734_v45 = vpop.eup %4733 }
0x1ac8   :  { %v2641_v47 = vmul.f32 %v4734_v45, %v2624_v35  ;;  %v4736_v15 = vpop.eup %4735  ;;  %vm2646_vm0 = vweird.f32 %v4734_v45 }
0x1ac9   :  { %v2623_v50 = vadd.f32 1.0, %v4736_v15  ;;  %vm2647_vm3 = vmor %vm2645_vm2, %vm2646_vm0 }
0x1aca   :  { %v2642_v37 = vsub.f32 1.0, %v2641_v47 }
0x1acb   :  { %4737 = vrcp.f32 %v2623_v50  ;;  %v2636_v63 = vand.u32 2147483648, %v2623_v50  ;;  %vm2630_vm6 = vweird.f32 %v2623_v50  ;;  %v2634_v0 = vand.u32 2147483647, %v2623_v50 }
0x1acc   :  { %v2643_v48 = vmul.f32 %v4734_v45, %v2642_v37 }
0x1acd   :  { %v2637_v1 = vor.u32 1.1754944e-38, %v2636_v63  ;;  %vm2635_vm9 = vcmp.eq.f32.partialorder %v2634_v0, 8.507059e+37 }
0x1ace   :  { %v2644_v51 = vadd.f32 %v4734_v45, %v2643_v48 }
0x1ad0   :  { %v2648_v53 = vsel %vm2647_vm3, %v4734_v45, %v2644_v51 }
0x1ad1   :  { %v2653_v56 = vsel %vm2650_vm4, %v2652_v54, %v2648_v53  ;;  %v4738_v57 = vpop.eup %4737 }
0x1ad2   :  { %v2626_v14 = vmul.f32 %v4738_v57, %v2623_v50  ;;  %vm2631_vm5 = vweird.f32 %v4738_v57  ;;  %v2664_v5 = vmul.f32 %v2660_v4, %v2653_v56 }
0x1ad3   :  { %vm2632_vm8 = vmor %vm2630_vm6, %vm2631_vm5 }
0x1ad4   :  { %v2627_v60 = vsub.f32 1.0, %v2626_v14 }
0x1ad6   :  { %v2628_v62 = vmul.f32 %v4738_v57, %v2627_v60 }
0x1ad8   :  { %v2629_v61 = vadd.f32 %v4738_v57, %v2628_v62 }
0x1ada   :  { %v2633_v20 = vsel %vm2632_vm8, %v4738_v57, %v2629_v61 }
0x1adb   :  { %v2638_v2 = vsel %vm2635_vm9, %v2637_v1, %v2633_v20 }
0x1adc   :  { %v2663_v11 = vmul.f32 %v2659_v9, %v2638_v2 }
0x1b18   :  { %v2670_v55 = vpop.permute.xlu2 %2669 }
0x1b19   :  { %v2674_v58 = vmul.f32 %v2670_v55, %v2653_v56 }
0x1b1b   :  { %2679 = vrot.lane.b32.xlu1 %v2674_v58, %s5627_s7 }
0x1b2f   :  { %v2668_v31 = vpop.permute.xlu1 %2667 }
0x1b30   :  { %v2673_v3 = vmul.f32 %v2668_v31, %v2638_v2 }
0x1b32   :  { %2677 = vrot.lane.b32.xlu0 %v2673_v3, %s5627_s7 }
0x1b8d   :  { %v2680_v6 = vpop.permute.xlu1 %2679 }
0x1b8e   :  { %v6311_v7 = vadd.f32 %v2680_v6, %v2664_v5 }
0x1b90   :  { %4739 = vtanh.f32 %v6311_v7  ;;  %v2785_v3 = vrot.slane %v6311_v7, 7 }
0x1b96   :  { %v4740_v8 = vpop.eup %4739 }
0x1b97   :  { %2691 = vrot.lane.b32.xlu0 %v4740_v8, %s5617_s3 }
0x1ba4   :  { %v2678_v22 = vpop.permute.xlu0 %2677 }
0x1ba5   :  { %v6316_v16 = vadd.f32 %v2678_v22, %v2663_v11 }
0x1ba7   :  { %4741 = vtanh.f32 %v6316_v16 }
0x1bad   :  { %v4742_v18 = vpop.eup %4741 }
0x1bae   :  { %2689 = vrot.lane.b32.xlu2 %v4742_v18, %s5617_s3 }
0x1c08   :  { %v2690_v19 = vpop.permute.xlu2 %2689 }
0x1c09   :  { %v2692_v21 = vpop.permute.xlu0 %2691  ;;  %v6320_v23 = vmul.f32 %v2690_v19, %v2638_v2  ;;  %v2784_v2 = vrot.slane %v6316_v16, 7 }
0x1c0a   :  { %v6322_v24 = vmul.f32 %v2692_v21, %v2653_v56 }
0x1c0b   :  { %v2708_v10 = vrot.slane %v6320_v23, 2 }
0x1c0c   :  { %v2709_v25 = vrot.slane %v6322_v24, 1 }
0x1c0e   :  { %v2710_v12 = vsel %vm2461_vm7, %v2709_v25, %v2708_v10 }
0x1c0f   :  { %2711 = vrot.lane.b32.xlu1 %v2710_v12, %s5627_s7 }
0x1c81   :  { %v2712_v28 = vpop.permute.xlu1 %2711 }
0x1c82   :  { %4476 = vmatmul.msk.f32.vlgmr.msra.gmra.mxu1 %vm525_vm1, %v2712_v28 }
0x1cff   :  { %v2732_v34 = vpop.f32.mrf.mxu1 }
0x1d00   :  { %v2736_v29 = vrot.slane %v2732_v34, 5  ;;  %v2737_v30 = vrot.slane %v2732_v34, 6 }
0x1d02   :  { %v2740_v32 = vadd.f32 %v2736_v29, %v6252_v49  ;;  %v2741_v33 = vadd.f32 %v2737_v30, %v6256_v59 }
0x1d04   :  { %4743 = vtanh.f32 %v2740_v32  ;;  %v4477_v41 = vmul.f32 -1.442695, %v2740_v32  ;;  %v4478_v35 = vmul.f32 -1.442695, %v2741_v33 }
0x1d05   :  { %4745 = vtanh.f32 %v2741_v33 }
0x1d06   :  { %4747 = vpow2.f32 %v4477_v41 }
0x1d0a   :  { %v4744_v40 = vpop.eup %4743 }
0x1d0b   :  { %v4746_v38 = vpop.eup %4745  ;;  %2792 = vrot.lane.b32.xlu2 %v4744_v40, %s5617_s3 }
0x1d0c   :  { %2794 = vrot.lane.b32.xlu0 %v4746_v38, %s5617_s3  ;;  %v4748_v42 = vpop.eup %4747 }
0x1d0d   :  { %v2748_v43 = vadd.f32 1.0, %v4748_v42 }
0x1d0f   :  { %4749 = vrcp.f32 %v2748_v43  ;;  %v2761_v50 = vand.u32 2147483648, %v2748_v43  ;;  %vm2755_vm11 = vweird.f32 %v2748_v43  ;;  %v2759_v51 = vand.u32 2147483647, %v2748_v43 }
0x1d10   :  { %4751 = vpow2.f32 %v4478_v35 }
0x1d11   :  { %v2762_v17 = vor.u32 1.1754944e-38, %v2761_v50  ;;  %vm2760_vm13 = vcmp.eq.f32.partialorder %v2759_v51, 8.507059e+37 }
0x1d15   :  { %v4750_v44 = vpop.eup %4749 }
0x1d16   :  { %v2751_v45 = vmul.f32 %v4750_v44, %v2748_v43  ;;  %v4752_v37 = vpop.eup %4751  ;;  %vm2756_vm10 = vweird.f32 %v4750_v44 }
0x1d17   :  { %v2749_v15 = vadd.f32 1.0, %v4752_v37  ;;  %vm2757_vm12 = vmor %vm2755_vm11, %vm2756_vm10 }
0x1d18   :  { %v2752_v46 = vsub.f32 1.0, %v2751_v45 }
0x1d19   :  { %4753 = vrcp.f32 %v2749_v15  ;;  %v2776_v62 = vand.u32 2147483648, %v2749_v15  ;;  %vm2770_vm15 = vweird.f32 %v2749_v15  ;;  %v2774_v61 = vand.u32 2147483647, %v2749_v15 }
0x1d1a   :  { %v2753_v47 = vmul.f32 %v4750_v44, %v2752_v46 }
0x1d1b   :  { %v2777_v0 = vor.u32 1.1754944e-38, %v2776_v62  ;;  %vm2775_vm2 = vcmp.eq.f32.partialorder %v2774_v61, 8.507059e+37 }
0x1d1c   :  { %v2754_v48 = vadd.f32 %v4750_v44, %v2753_v47 }
0x1d1e   :  { %v2758_v52 = vsel %vm2757_vm12, %v4750_v44, %v2754_v48 }
0x1d1f   :  { %v2763_v54 = vsel %vm2760_vm13, %v2762_v17, %v2758_v52  ;;  %v4754_v56 = vpop.eup %4753 }
0x1d20   :  { %v2766_v57 = vmul.f32 %v4754_v56, %v2749_v15  ;;  %vm2771_vm14 = vweird.f32 %v4754_v56  ;;  %v2788_v4 = vmul.f32 %v2784_v2, %v2763_v54 }
0x1d21   :  { %vm2772_vm0 = vmor %vm2770_vm15, %vm2771_vm14 }
0x1d22   :  { %v2767_v58 = vsub.f32 1.0, %v2766_v57 }
0x1d24   :  { %v2768_v14 = vmul.f32 %v4754_v56, %v2767_v58 }
0x1d26   :  { %v2769_v60 = vadd.f32 %v4754_v56, %v2768_v14 }
0x1d28   :  { %v2773_v63 = vsel %vm2772_vm0, %v4754_v56, %v2769_v60 }
0x1d29   :  { %v2778_v1 = vsel %vm2775_vm2, %v2777_v0, %v2773_v63 }
0x1d2a   :  { %v2789_v5 = vmul.f32 %v2785_v3, %v2778_v1 }
0x1d65   :  { %v2793_v53 = vpop.permute.xlu2 %2792 }
0x1d66   :  { %v2798_v55 = vmul.f32 %v2793_v53, %v2763_v54 }
0x1d68   :  { %2802 = vrot.lane.b32.xlu1 %v2798_v55, %s5627_s7 }
0x1d7e   :  { %v2795_v20 = vpop.permute.xlu0 %2794 }
0x1d7f   :  { %v2799_v31 = vmul.f32 %v2795_v20, %v2778_v1 }
0x1d81   :  { %2804 = vrot.lane.b32.xlu2 %v2799_v31, %s5627_s7 }
0x1dda   :  { %v2803_v6 = vpop.permute.xlu1 %2802 }
0x1ddb   :  { %v2805_v8 = vpop.permute.xlu2 %2804  ;;  %v6337_v9 = vadd.f32 %v2803_v6, %v2788_v4 }
0x1ddc   :  { %v6339_v11 = vadd.f32 %v2805_v8, %v2789_v5 }
0x1ddd   :  { %4755 = vtanh.f32 %v6337_v9  ;;  %v2909_v2 = vrot.slane %v6337_v9, 7 }
0x1dde   :  { %4757 = vtanh.f32 %v6339_v11  ;;  %v2910_v8 = vrot.slane %v6339_v11, 7 }
0x1de3   :  { %v4756_v22 = vpop.eup %4755 }
0x1de4   :  { %v4758_v18 = vpop.eup %4757  ;;  %2814 = vrot.lane.b32.xlu0 %v4756_v22, %s5617_s3 }
0x1de5   :  { %2816 = vrot.lane.b32.xlu1 %v4758_v18, %s5617_s3 }
0x1e56   :  { %v2815_v16 = vpop.permute.xlu0 %2814 }
0x1e57   :  { %v2817_v7 = vpop.permute.xlu1 %2816  ;;  %v6345_v19 = vmul.f32 %v2815_v16, %v2763_v54 }
0x1e58   :  { %v6347_v21 = vmul.f32 %v2817_v7, %v2778_v1 }
0x1e59   :  { %v2833_v10 = vrot.slane %v6345_v19, 3 }
0x1e5a   :  { %v2834_v25 = vrot.slane %v6347_v21, 2 }
0x1e5c   :  { %v2835_v12 = vsel %vm2461_vm7, %v2834_v25, %v2833_v10 }
0x1e5d   :  { %2836 = vrot.lane.b32.xlu2 %v2835_v12, %s5627_s7 }
0x1eb7   :  { %v2837_v28 = vpop.permute.xlu2 %2836 }
0x1eb8   :  { %4479 = vmatmul.msk.f32.vlgmr.msra.gmra.mxu0 %vm525_vm1, %v2837_v28 }
0x1f35   :  { %v2857_v34 = vpop.f32.mrf.mxu0 }
0x1f36   :  { %v2861_v29 = vrot.slane %v2857_v34, 4  ;;  %v2862_v30 = vrot.slane %v2857_v34, 5 }
0x1f38   :  { %v2865_v32 = vadd.f32 %v2861_v29, %v6252_v49  ;;  %v2866_v33 = vadd.f32 %v2862_v30, %v6256_v59 }
0x1f3a   :  { %4759 = vtanh.f32 %v2865_v32  ;;  %v4480_v41 = vmul.f32 -1.442695, %v2865_v32  ;;  %v4481_v42 = vmul.f32 -1.442695, %v2866_v33 }
0x1f3b   :  { %4761 = vtanh.f32 %v2866_v33 }
0x1f3c   :  { %4763 = vpow2.f32 %v4480_v41 }
0x1f3d   :  { %4765 = vpow2.f32 %v4481_v42 }
0x1f40   :  { %v4760_v40 = vpop.eup %4759 }
0x1f41   :  { %v4762_v38 = vpop.eup %4761  ;;  %2917 = vrot.lane.b32.xlu0 %v4760_v40, %s5617_s3 }
0x1f42   :  { %2919 = vrot.lane.b32.xlu1 %v4762_v38, %s5617_s3  ;;  %v4764_v43 = vpop.eup %4763 }
0x1f43   :  { %v4766_v44 = vpop.eup %4765  ;;  %v2873_v35 = vadd.f32 1.0, %v4764_v43 }
0x1f44   :  { %v2874_v45 = vadd.f32 1.0, %v4766_v44 }
0x1f45   :  { %4767 = vrcp.f32 %v2873_v35  ;;  %v2886_v54 = vand.u32 2147483648, %v2873_v35  ;;  %vm2880_vm5 = vweird.f32 %v2873_v35  ;;  %v2884_v56 = vand.u32 2147483647, %v2873_v35 }
0x1f46   :  { %4769 = vrcp.f32 %v2874_v45  ;;  %v2901_v55 = vand.u32 2147483648, %v2874_v45  ;;  %vm2895_vm6 = vweird.f32 %v2874_v45  ;;  %v2899_v57 = vand.u32 2147483647, %v2874_v45 }
0x1f47   :  { %v2887_v60 = vor.u32 1.1754944e-38, %v2886_v54  ;;  %vm2885_vm10 = vcmp.eq.f32.partialorder %v2884_v56, 8.507059e+37 }
0x1f48   :  { %v2902_v62 = vor.u32 1.1754944e-38, %v2901_v55  ;;  %vm2900_vm11 = vcmp.eq.f32.partialorder %v2899_v57, 8.507059e+37 }
0x1f4b   :  { %v4768_v46 = vpop.eup %4767 }
0x1f4c   :  { %v4770_v47 = vpop.eup %4769  ;;  %v2876_v37 = vmul.f32 %v4768_v46, %v2873_v35  ;;  %vm2881_vm3 = vweird.f32 %v4768_v46 }
0x1f4d   :  { %v2891_v15 = vmul.f32 %v4770_v47, %v2874_v45  ;;  %vm2896_vm4 = vweird.f32 %v4770_v47  ;;  %vm2882_vm8 = vmor %vm2880_vm5, %vm2881_vm3 }
0x1f4e   :  { %v2877_v48 = vsub.f32 1.0, %v2876_v37  ;;  %vm2897_vm9 = vmor %vm2895_vm6, %vm2896_vm4 }
0x1f4f   :  { %v2892_v50 = vsub.f32 1.0, %v2891_v15 }
0x1f50   :  { %v2878_v51 = vmul.f32 %v4768_v46, %v2877_v48 }
0x1f51   :  { %v2893_v52 = vmul.f32 %v4770_v47, %v2892_v50 }
0x1f52   :  { %v2879_v17 = vadd.f32 %v4768_v46, %v2878_v51 }
0x1f53   :  { %v2894_v53 = vadd.f32 %v4770_v47, %v2893_v52 }
0x1f54   :  { %v2883_v58 = vsel %vm2882_vm8, %v4768_v46, %v2879_v17 }
0x1f55   :  { %v2898_v14 = vsel %vm2897_vm9, %v4770_v47, %v2894_v53  ;;  %v2888_v63 = vsel %vm2885_vm10, %v2887_v60, %v2883_v58 }
0x1f56   :  { %v2903_v20 = vsel %vm2900_vm11, %v2902_v62, %v2898_v14  ;;  %v2913_v3 = vmul.f32 %v2909_v2, %v2888_v63 }
0x1f57   :  { %v2914_v22 = vmul.f32 %v2910_v8, %v2903_v20 }
0x1fb3   :  { %v2918_v61 = vpop.permute.xlu0 %2917 }
0x1fb4   :  { %v2920_v0 = vpop.permute.xlu1 %2919  ;;  %v2923_v1 = vmul.f32 %v2918_v61, %v2888_v63 }
0x1fb5   :  { %v2924_v31 = vmul.f32 %v2920_v0, %v2903_v20 }
0x1fb6   :  { %2927 = vrot.lane.b32.xlu2 %v2923_v1, %s5627_s7 }
0x1fb7   :  { %2929 = vrot.lane.b32.xlu0 %v2924_v31, %s5627_s7 }
0x2010   :  { %v2928_v4 = vpop.permute.xlu2 %2927 }
0x2011   :  { %v6361_v5 = vadd.f32 %v2928_v4, %v2913_v3 }
0x2013   :  { %4771 = vtanh.f32 %v6361_v5 }
0x2019   :  { %v4772_v6 = vpop.eup %4771 }
0x201a   :  { %2939 = vrot.lane.b32.xlu1 %v4772_v6, %s5617_s3 }
0x2029   :  { %v2930_v18 = vpop.permute.xlu0 %2929 }
0x202a   :  { %v6366_v16 = vadd.f32 %v2930_v18, %v2914_v22 }
0x202c   :  { %4773 = vtanh.f32 %v6366_v16  ;;  %v3035_v4 = vrot.slane %v6366_v16, 7 }
0x2032   :  { %v4774_v7 = vpop.eup %4773 }
0x2033   :  { %2941 = vrot.lane.b32.xlu2 %v4774_v7, %s5617_s3  ;;  %v3034_v7 = vrot.slane %v6361_v5, 7 }
0x208c   :  { %v2940_v9 = vpop.permute.xlu1 %2939 }
0x208d   :  { %v2942_v10 = vpop.permute.xlu2 %2941  ;;  %v6370_v25 = vmul.f32 %v2940_v9, %v2888_v63 }
0x208e   :  { %v6372_v12 = vmul.f32 %v2942_v10, %v2903_v20 }
0x208f   :  { %v2958_v28 = vrot.slane %v6370_v25, 4 }
0x2090   :  { %v2959_v34 = vrot.slane %v6372_v12, 3 }
0x2092   :  { %v2960_v11 = vsel %vm2461_vm7, %v2959_v34, %v2958_v28 }
0x2093   :  { %2961 = vrot.lane.b32.xlu0 %v2960_v11, %s5627_s7 }
0x2105   :  { %v2962_v29 = vpop.permute.xlu0 %2961 }
0x2106   :  { %4482 = vmatmul.msk.f32.vlgmr.msra.gmra.mxu2 %vm525_vm1, %v2962_v29 }
0x2189   :  { %v2982_v30 = vpop.f32.mrf.mxu2 }
0x218a   :  { %v2986_v32 = vrot.slane %v2982_v30, 3  ;;  %v2987_v33 = vrot.slane %v2982_v30, 4 }
0x218c   :  { %v2990_v40 = vadd.f32 %v2986_v32, %v6252_v49  ;;  %v2991_v38 = vadd.f32 %v2987_v33, %v6256_v59 }
0x218e   :  { %4775 = vtanh.f32 %v2990_v40  ;;  %v4484_v43 = vmul.f32 -1.442695, %v2991_v38  ;;  %v4483_v46 = vmul.f32 -1.442695, %v2990_v40 }
0x218f   :  { %4777 = vtanh.f32 %v2991_v38 }
0x2190   :  { %4779 = vpow2.f32 %v4484_v43 }
0x2194   :  { %v4776_v41 = vpop.eup %4775 }
0x2195   :  { %v4778_v42 = vpop.eup %4777  ;;  %3042 = vrot.lane.b32.xlu1 %v4776_v41, %s5617_s3 }
0x2196   :  { %3044 = vrot.lane.b32.xlu2 %v4778_v42, %s5617_s3  ;;  %v4780_v44 = vpop.eup %4779 }
0x2197   :  { %v2999_v35 = vadd.f32 1.0, %v4780_v44 }
0x2199   :  { %4781 = vrcp.f32 %v2999_v35  ;;  %v3026_v52 = vand.u32 2147483648, %v2999_v35  ;;  %vm3020_vm13 = vweird.f32 %v2999_v35  ;;  %v3024_v17 = vand.u32 2147483647, %v2999_v35 }
0x219a   :  { %4783 = vpow2.f32 %v4483_v46 }
0x219b   :  { %v3027_v54 = vor.u32 1.1754944e-38, %v3026_v52  ;;  %vm3025_vm15 = vcmp.eq.f32.partialorder %v3024_v17, 8.507059e+37 }
0x219f   :  { %v4782_v45 = vpop.eup %4781 }
0x21a0   :  { %v3016_v47 = vmul.f32 %v4782_v45, %v2999_v35  ;;  %v4784_v15 = vpop.eup %4783  ;;  %vm3021_vm12 = vweird.f32 %v4782_v45 }
0x21a1   :  { %v2998_v50 = vadd.f32 1.0, %v4784_v15  ;;  %vm3022_vm14 = vmor %vm3020_vm13, %vm3021_vm12 }
0x21a2   :  { %v3017_v37 = vsub.f32 1.0, %v3016_v47 }
0x21a3   :  { %4785 = vrcp.f32 %v2998_v50  ;;  %v3011_v63 = vand.u32 2147483648, %v2998_v50  ;;  %vm3005_vm2 = vweird.f32 %v2998_v50  ;;  %v3009_v0 = vand.u32 2147483647, %v2998_v50 }
0x21a4   :  { %v3018_v48 = vmul.f32 %v4782_v45, %v3017_v37 }
0x21a5   :  { %v3012_v1 = vor.u32 1.1754944e-38, %v3011_v63  ;;  %vm3010_vm4 = vcmp.eq.f32.partialorder %v3009_v0, 8.507059e+37 }
0x21a6   :  { %v3019_v51 = vadd.f32 %v4782_v45, %v3018_v48 }
0x21a8   :  { %v3023_v53 = vsel %vm3022_vm14, %v4782_v45, %v3019_v51 }
0x21a9   :  { %v3028_v56 = vsel %vm3025_vm15, %v3027_v54, %v3023_v53  ;;  %v4786_v57 = vpop.eup %4785 }
0x21aa   :  { %v3001_v14 = vmul.f32 %v4786_v57, %v2998_v50  ;;  %vm3006_vm0 = vweird.f32 %v4786_v57  ;;  %v3039_v6 = vmul.f32 %v3035_v4, %v3028_v56 }
0x21ab   :  { %vm3007_vm3 = vmor %vm3005_vm2, %vm3006_vm0 }
0x21ac   :  { %v3002_v60 = vsub.f32 1.0, %v3001_v14 }
0x21ae   :  { %v3003_v62 = vmul.f32 %v4786_v57, %v3002_v60 }
0x21b0   :  { %v3004_v61 = vadd.f32 %v4786_v57, %v3003_v62 }
0x21b2   :  { %v3008_v20 = vsel %vm3007_vm3, %v4786_v57, %v3004_v61 }
0x21b3   :  { %v3013_v2 = vsel %vm3010_vm4, %v3012_v1, %v3008_v20 }
0x21b4   :  { %v3038_v9 = vmul.f32 %v3034_v7, %v3013_v2 }
0x21f0   :  { %v3045_v55 = vpop.permute.xlu2 %3044 }
0x21f1   :  { %v3049_v58 = vmul.f32 %v3045_v55, %v3028_v56 }
0x21f3   :  { %3054 = vrot.lane.b32.xlu1 %v3049_v58, %s5627_s7 }
0x2207   :  { %v3043_v31 = vpop.permute.xlu1 %3042 }
0x2208   :  { %v3048_v3 = vmul.f32 %v3043_v31, %v3013_v2 }
0x220a   :  { %3052 = vrot.lane.b32.xlu0 %v3048_v3, %s5627_s7 }
0x2265   :  { %v3055_v8 = vpop.permute.xlu1 %3054 }
0x2266   :  { %v6386_v22 = vadd.f32 %v3055_v8, %v3039_v6 }
0x2268   :  { %4787 = vtanh.f32 %v6386_v22 }
0x226e   :  { %v4788_v18 = vpop.eup %4787 }
0x226f   :  { %3066 = vrot.lane.b32.xlu0 %v4788_v18, %s5617_s3 }
0x227c   :  { %v3053_v10 = vpop.permute.xlu0 %3052 }
0x227d   :  { %v6391_v28 = vadd.f32 %v3053_v10, %v3038_v9  ;;  %v3160_v9 = vrot.slane %v6386_v22, 7 }
0x227f   :  { %4789 = vtanh.f32 %v6391_v28  ;;  %v3159_v7 = vrot.slane %v6391_v28, 7 }
0x2285   :  { %v4790_v34 = vpop.eup %4789 }
0x2286   :  { %3064 = vrot.lane.b32.xlu2 %v4790_v34, %s5617_s3 }
0x22e0   :  { %v3065_v16 = vpop.permute.xlu2 %3064 }
0x22e1   :  { %v3067_v11 = vpop.permute.xlu0 %3066  ;;  %v6395_v29 = vmul.f32 %v3065_v16, %v3013_v2 }
0x22e2   :  { %v6397_v30 = vmul.f32 %v3067_v11, %v3028_v56 }
0x22e3   :  { %v3083_v32 = vrot.slane %v6395_v29, 5 }
0x22e4   :  { %v3084_v33 = vrot.slane %v6397_v30, 4 }
0x22e6   :  { %v3085_v5 = vsel %vm2461_vm7, %v3084_v33, %v3083_v32 }
0x22e7   :  { %3086 = vrot.lane.b32.xlu1 %v3085_v5, %s5627_s7 }
0x2359   :  { %v3087_v40 = vpop.permute.xlu1 %3086 }
0x235a   :  { %4485 = vmatmul.msk.f32.vlgmr.msrb.gmra.mxu3 %vm525_vm1, %v3087_v40 }
0x23dd   :  { %v3107_v38 = vpop.f32.mrf.mxu3 }
0x23de   :  { %v3111_v41 = vrot.slane %v3107_v38, 2  ;;  %v3112_v42 = vrot.slane %v3107_v38, 3 }
0x23e0   :  { %v3115_v43 = vadd.f32 %v3111_v41, %v6252_v49  ;;  %v3116_v44 = vadd.f32 %v3112_v42, %v6256_v59 }
0x23e2   :  { %4791 = vtanh.f32 %v3115_v43  ;;  %v4486_v46 = vmul.f32 -1.442695, %v3115_v43  ;;  %v4487_v48 = vmul.f32 -1.442695, %v3116_v44 }
0x23e3   :  { %4793 = vtanh.f32 %v3116_v44 }
0x23e4   :  { %4795 = vpow2.f32 %v4486_v46 }
0x23e8   :  { %v4792_v35 = vpop.eup %4791 }
0x23e9   :  { %v4794_v45 = vpop.eup %4793  ;;  %3167 = vrot.lane.b32.xlu2 %v4792_v35, %s5617_s3 }
0x23ea   :  { %3169 = vrot.lane.b32.xlu0 %v4794_v45, %s5617_s3  ;;  %v4796_v47 = vpop.eup %4795 }
0x23eb   :  { %v3123_v37 = vadd.f32 1.0, %v4796_v47 }
0x23ed   :  { %4797 = vrcp.f32 %v3123_v37  ;;  %v3136_v55 = vand.u32 2147483648, %v3123_v37  ;;  %vm3130_vm6 = vweird.f32 %v3123_v37  ;;  %v3134_v56 = vand.u32 2147483647, %v3123_v37 }
0x23ee   :  { %4799 = vpow2.f32 %v4487_v48 }
0x23ef   :  { %v3137_v58 = vor.u32 1.1754944e-38, %v3136_v55  ;;  %vm3135_vm9 = vcmp.eq.f32.partialorder %v3134_v56, 8.507059e+37 }
0x23f3   :  { %v4798_v15 = vpop.eup %4797 }
0x23f4   :  { %v3126_v50 = vmul.f32 %v4798_v15, %v3123_v37  ;;  %v4800_v17 = vpop.eup %4799  ;;  %vm3131_vm5 = vweird.f32 %v4798_v15 }
0x23f5   :  { %v3124_v53 = vadd.f32 1.0, %v4800_v17  ;;  %vm3132_vm8 = vmor %vm3130_vm6, %vm3131_vm5 }
0x23f6   :  { %v3127_v51 = vsub.f32 1.0, %v3126_v50 }
0x23f7   :  { %4801 = vrcp.f32 %v3124_v53  ;;  %v3151_v31 = vand.u32 2147483648, %v3124_v53  ;;  %vm3145_vm11 = vweird.f32 %v3124_v53  ;;  %v3149_v2 = vand.u32 2147483647, %v3124_v53 }
0x23f8   :  { %v3128_v52 = vmul.f32 %v4798_v15, %v3127_v51 }
0x23f9   :  { %v3152_v4 = vor.u32 1.1754944e-38, %v3151_v31  ;;  %vm3150_vm13 = vcmp.eq.f32.partialorder %v3149_v2, 8.507059e+37 }
0x23fa   :  { %v3129_v54 = vadd.f32 %v4798_v15, %v3128_v52 }
0x23fc   :  { %v3133_v57 = vsel %vm3132_vm8, %v4798_v15, %v3129_v54  ;;  %vm2457_vm8 = vcmask 253952  }
0x23fd   :  { %v3138_v60 = vsel %vm3135_vm9, %v3137_v58, %v3133_v57  ;;  %v4802_v61 = vpop.eup %4801  ;;  %vm2830_vm9 = vcmask 257027  }
0x23fe   :  { %v3141_v63 = vmul.f32 %v4802_v61, %v3124_v53  ;;  %vm3146_vm10 = vweird.f32 %v4802_v61  ;;  %v3163_v10 = vmul.f32 %v3159_v7, %v3138_v60 }
0x23ff   :  { %vm3147_vm12 = vmor %vm3145_vm11, %vm3146_vm10  ;;  %vm3205_vm10 = vcmask 260102   ;;  %vm2581_vm11 = vcmask 254977  }
0x2400   :  { %v3142_v0 = vsub.f32 1.0, %v3141_v63 }
0x2402   :  { %v3143_v20 = vmul.f32 %v4802_v61, %v3142_v0 }
0x2404   :  { %v3144_v1 = vadd.f32 %v4802_v61, %v3143_v20 }
0x2406   :  { %v3148_v3 = vsel %vm3147_vm12, %v4802_v61, %v3144_v1  ;;  %vm2955_vm12 = vcmask 258052  }
0x2407   :  { %v3153_v8 = vsel %vm3150_vm13, %v3152_v4, %v3148_v3  ;;  %vm2705_vm13 = vcmask 256002  }
0x2408   :  { %v3164_v34 = vmul.f32 %v3160_v9, %v3153_v8 }
0x2443   :  { %v3168_v14 = vpop.permute.xlu2 %3167 }
0x2444   :  { %v3173_v62 = vmul.f32 %v3168_v14, %v3138_v60 }
0x2446   :  { %3177 = vrot.lane.b32.xlu1 %v3173_v62, %s5627_s7 }
0x245c   :  { %v3170_v6 = vpop.permute.xlu0 %3169 }
0x245d   :  { %v3174_v18 = vmul.f32 %v3170_v6, %v3153_v8 }
0x245f   :  { %3179 = vrot.lane.b32.xlu2 %v3174_v18, %s5627_s7 }
0x24b8   :  { %v3178_v16 = vpop.permute.xlu1 %3177 }
0x24b9   :  { %v3180_v11 = vpop.permute.xlu2 %3179  ;;  %v6412_v32 = vadd.f32 %v3178_v16, %v3163_v10 }
0x24ba   :  { %v6414_v33 = vadd.f32 %v3180_v11, %v3164_v34 }
0x24bb   :  { %4803 = vtanh.f32 %v6412_v32  ;;  %v3284_v16 = vrot.slane %v6412_v32, 7 }
0x24bc   :  { %4805 = vtanh.f32 %v6414_v33 }
0x24c1   :  { %v4804_v5 = vpop.eup %4803 }
0x24c2   :  { %v4806_v40 = vpop.eup %4805  ;;  %3189 = vrot.lane.b32.xlu0 %v4804_v5, %s5617_s3 }
0x24c3   :  { %3191 = vrot.lane.b32.xlu1 %v4806_v40, %s5617_s3 }
0x2534   :  { %v3190_v28 = vpop.permute.xlu0 %3189 }
0x2535   :  { %v3192_v22 = vpop.permute.xlu1 %3191  ;;  %v6420_v38 = vmul.f32 %v3190_v28, %v3138_v60 }
0x2536   :  { %v6422_v41 = vmul.f32 %v3192_v22, %v3153_v8 }
0x2537   :  { %v3208_v42 = vrot.slane %v6420_v38, 6 }
0x2538   :  { %v3209_v43 = vrot.slane %v6422_v41, 5 }
0x253a   :  { %v3210_v44 = vsel %vm2461_vm7, %v3209_v43, %v3208_v42 }
0x253b   :  { %3211 = vrot.lane.b32.xlu2 %v3210_v44, %s5627_s7  ;;  %v3375_v44 = vld [vmem:[#allocation36 + $0x18] sm:$0xff] }
0x253c   :  { %3388 = vmatpush.msrb.mxu2 %v3375_v44  ;;  %3496 = vmatpush.msra.mxu3 %v3375_v44 }
0x253d   :  { %3610 = vmatpush.msra.mxu1 %v3375_v44 }
0x2595   :  { %v3212_v35 = vpop.permute.xlu2 %3211 }
0x2596   :  { %4488 = vmatmul.msk.f32.vlgmr.msrb.gmra.mxu1 %vm525_vm1, %v3212_v35 }
0x2613   :  { %v3232_v45 = vpop.f32.mrf.mxu1 }
0x2614   :  { %v3236_v46 = vrot.slane %v3232_v45, 1  ;;  %v3237_v47 = vrot.slane %v3232_v45, 2 }
0x2616   :  { %v3240_v37 = vadd.f32 %v3236_v46, %v6252_v49  ;;  %v3241_v15 = vadd.f32 %v3237_v47, %v6256_v59 }
0x2618   :  { %4807 = vtanh.f32 %v3240_v37  ;;  %v4489_v51 = vmul.f32 -1.442695, %v3240_v37  ;;  %v4490_v52 = vmul.f32 -1.442695, %v3241_v15  ;;  %v3338_v37 = vld [vmem:[#allocation35 + $0x18] sm:$0xff] }
0x2619   :  { %4809 = vtanh.f32 %v3241_v15  ;;  %v3373_v15 = vld [vmem:[#allocation36 + $0x8] sm:$0xff]  ;;  %3361 = vmatpush.msrb.mxu0 %v3338_v37 }
0x261a   :  { %4811 = vpow2.f32 %v4489_v51  ;;  %v3336_v51 = vld [vmem:[#allocation35 + $0x8] sm:$0xff] }
0x261b   :  { %4813 = vpow2.f32 %v4490_v52  ;;  %v3335_v52 = vld [vmem:[#allocation35] sm:$0xff] }
0x261e   :  { %v4808_v48 = vpop.eup %4807 }
0x261f   :  { %v4810_v50 = vpop.eup %4809  ;;  %3292 = vrot.lane.b32.xlu0 %v4808_v48, %s5617_s3  ;;  %v3337_v48 = vld [vmem:[#allocation35 + $0x10] sm:$0xff] }
0x2620   :  { %3294 = vrot.lane.b32.xlu1 %v4810_v50, %s5617_s3  ;;  %v4812_v17 = vpop.eup %4811  ;;  %v3372_v50 = vld [vmem:[#allocation36] sm:$0xff]  ;;  %3362 = vmatpush.msrb.mxu0 %v3337_v48 }
0x2621   :  { %v4814_v53 = vpop.eup %4813  ;;  %v3248_v54 = vadd.f32 1.0, %v4812_v17 }
0x2622   :  { %v3249_v55 = vadd.f32 1.0, %v4814_v53  ;;  %3363 = vmatpush.msrb.mxu0 %v3336_v51 }
0x2623   :  { %4815 = vrcp.f32 %v3248_v54  ;;  %v3261_v0 = vand.u32 2147483648, %v3248_v54  ;;  %vm3255_vm0 = vweird.f32 %v3248_v54  ;;  %v3259_v1 = vand.u32 2147483647, %v3248_v54 }
0x2624   :  { %4817 = vrcp.f32 %v3249_v55  ;;  %v3276_v20 = vand.u32 2147483648, %v3249_v55  ;;  %vm3270_vm2 = vweird.f32 %v3249_v55  ;;  %v3274_v31 = vand.u32 2147483647, %v3249_v55  ;;  %3364 = vmatpush.msrb.mxu0 %v3335_v52 }
0x2625   :  { %v3262_v4 = vor.u32 1.1754944e-38, %v3261_v0  ;;  %vm3260_vm5 = vcmp.eq.f32.partialorder %v3259_v1, 8.507059e+37 }
0x2626   :  { %v3277_v6 = vor.u32 1.1754944e-38, %v3276_v20  ;;  %vm3275_vm6 = vcmp.eq.f32.partialorder %v3274_v31, 8.507059e+37  ;;  %4074 = vmatpush.msra.mxu0 %v3375_v44 }
0x2629   :  { %v4816_v49 = vpop.eup %4815 }
0x262a   :  { %v4818_v59 = vpop.eup %4817  ;;  %v3251_v56 = vmul.f32 %v4816_v49, %v3248_v54  ;;  %vm3256_vm14 = vweird.f32 %v4816_v49 }
0x262b   :  { %v3266_v57 = vmul.f32 %v4818_v59, %v3249_v55  ;;  %vm3271_vm15 = vweird.f32 %v4818_v59  ;;  %vm3257_vm3 = vmor %vm3255_vm0, %vm3256_vm14  ;;  %vm3080_vm14 = vcmask 259077  }
0x262c   :  { %v3252_v58 = vsub.f32 1.0, %v3251_v56  ;;  %vm3272_vm4 = vmor %vm3270_vm2, %vm3271_vm15  ;;  %vm3330_vm15 = vcmask 261127  }
0x262d   :  { %v3267_v14 = vsub.f32 1.0, %v3266_v57 }
0x262e   :  { %v3253_v60 = vmul.f32 %v4816_v49, %v3252_v58 }
0x262f   :  { %v3268_v62 = vmul.f32 %v4818_v59, %v3267_v14 }
0x2630   :  { %v3254_v61 = vadd.f32 %v4816_v49, %v3253_v60 }
0x2631   :  { %v3269_v63 = vadd.f32 %v4818_v59, %v3268_v62 }
0x2632   :  { %v3258_v2 = vsel %vm3257_vm3, %v4816_v49, %v3254_v61  ;;  %v4611_v49 = vld [vmem:[%s5802_s12] ss:$0 sm:$0xff] }
0x2633   :  { %v3273_v3 = vsel %vm3272_vm4, %v4818_v59, %v3269_v63  ;;  %v3263_v18 = vsel %vm3260_vm5, %v3262_v4, %v3258_v2 }
0x2634   :  { %v3278_v9 = vsel %vm3275_vm6, %v3277_v6, %v3273_v3  ;;  %v3288_v11 = vmul.f32 %v3284_v16, %v3263_v18 }
0x2691   :  { %v3293_v8 = vpop.permute.xlu0 %3292 }
0x2692   :  { %v3295_v7 = vpop.permute.xlu1 %3294  ;;  %v3298_v10 = vmul.f32 %v3293_v8, %v3263_v18 }
0x2693   :  { %v3299_v34 = vmul.f32 %v3295_v7, %v3278_v9 }
0x2694   :  { %3302 = vrot.lane.b32.xlu2 %v3298_v10, %s5627_s7 }
0x2695   :  { %3304 = vrot.lane.b32.xlu0 %v3299_v34, %s5627_s7 }
0x269d   :  { %2451 = vrot.lane.b32.xlu0 %v6272_v39, %s5627_s7  ;;  %v3285_v39 = vrot.slane %v6414_v33, 7 }
0x26a5   :  { %2824 = vrot.lane.b32.xlu0 %v6345_v19, %s5627_s7  ;;  %v3289_v19 = vmul.f32 %v3285_v39, %v3278_v9 }
0x26ad   :  { %3199 = vrot.lane.b32.xlu0 %v6420_v38, %s5627_s7 }
0x26b5   :  { %2577 = vrot.lane.b32.xlu0 %v6297_v27, %s5627_s7 }
0x26bd   :  { %2951 = vrot.lane.b32.xlu0 %v6372_v12, %s5627_s7 }
0x26ee   :  { %v3303_v5 = vpop.permute.xlu2 %3302 }
0x26ef   :  { %v3308_v40 = vadd.f32 %v3303_v5, %v3288_v11 }
0x26f1   :  { %4819 = vtanh.f32 %v3308_v40 }
0x26f7   :  { %v4820_v28 = vpop.eup %4819 }
0x26f8   :  { %3314 = vrot.lane.b32.xlu1 %v4820_v28, %s5617_s3 }
0x2700   :  { %2575 = vrot.lane.b32.xlu1 %v6295_v26, %s5627_s7 }
0x2707   :  { %v3305_v22 = vpop.permute.xlu0 %3304 }
0x2708   :  { %v3309_v27 = vadd.f32 %v3305_v22, %v3289_v19  ;;  %2949 = vrot.lane.b32.xlu1 %v6370_v25, %s5627_s7 }
0x270a   :  { %4821 = vtanh.f32 %v3309_v27 }
0x270f   :  { %v2452_v12 = vpop.permute.xlu0 %2451 }
0x2710   :  { %v4822_v32 = vpop.eup %4821  ;;  %2458 = vst.msk [vmem:[#allocation2] sm:$0x1] %vm2457_vm8, %v2452_v12  ;;  %2701 = vrot.lane.b32.xlu1 %v6322_v24, %s5627_s7 }
0x2711   :  { %3316 = vrot.lane.b32.xlu2 %v4822_v32, %s5617_s3 }
0x2717   :  { %v2825_v26 = vpop.permute.xlu0 %2824 }
0x2718   :  { %2831 = vst.msk [vmem:[#allocation2] sm:$0x8] %vm2830_vm9, %v2825_v26 }
0x2719   :  { %2699 = vrot.lane.b32.xlu2 %v6320_v23, %s5627_s7 }
0x271f   :  { %v3200_v25 = vpop.permute.xlu0 %3199 }
0x2720   :  { %3206 = vst.msk [vmem:[#allocation2] sm:$0x40] %vm3205_vm10, %v3200_v25 }
0x2721   :  { %3074 = vrot.lane.b32.xlu2 %v6395_v29, %s5627_s7 }
0x2727   :  { %v2578_v33 = vpop.permute.xlu0 %2577 }
0x2728   :  { %2583 = vst.msk [vmem:[#allocation2 + $0x8] sm:$0x2] %vm2581_vm11, %v2578_v33 }
0x2729   :  { %2453 = vrot.lane.b32.xlu2 %v6270_v36, %s5627_s7 }
0x272f   :  { %v2952_v24 = vpop.permute.xlu0 %2951 }
0x2730   :  { %2957 = vst.msk [vmem:[#allocation2 + $0x8] sm:$0x10] %vm2955_vm12, %v2952_v24 }
0x2731   :  { %2826 = vrot.lane.b32.xlu2 %v6347_v21, %s5627_s7  ;;  %v3374_v21 = vld [vmem:[#allocation36 + $0x10] sm:$0xff] }
0x2732   :  { %3389 = vmatpush.msrb.mxu2 %v3374_v21  ;;  %3497 = vmatpush.msra.mxu3 %v3374_v21 }
0x2733   :  { %3611 = vmatpush.msra.mxu1 %v3374_v21  ;;  %4075 = vmatpush.msra.mxu0 %v3374_v21 }
0x2734   :  { %3390 = vmatpush.msrb.mxu2 %v3373_v15  ;;  %3498 = vmatpush.msra.mxu3 %v3373_v15 }
0x2735   :  { %3612 = vmatpush.msra.mxu1 %v3373_v15  ;;  %4076 = vmatpush.msra.mxu0 %v3373_v15 }
0x2736   :  { %3391 = vmatpush.msrb.mxu2 %v3372_v50  ;;  %3499 = vmatpush.msra.mxu3 %v3372_v50 }
0x2737   :  { %3392 = vmatmul.f32.vlgmr.msrb.gmra.mxu2 %v5626_v13  ;;  %3613 = vmatpush.msra.mxu1 %v3372_v50 }
0x2738   :  { %3726 = vmatpush.msra.mxu2 %v3375_v44  ;;  %3842 = vmatpush.msrb.mxu3 %v3375_v44 }
0x2739   :  { %3201 = vrot.lane.b32.xlu2 %v6422_v41, %s5627_s7  ;;  %3958 = vmatpush.msrb.mxu1 %v3375_v44 }
0x273a   :  { %3727 = vmatpush.msra.mxu2 %v3374_v21  ;;  %3843 = vmatpush.msrb.mxu3 %v3374_v21 }
0x273b   :  { %3959 = vmatpush.msrb.mxu1 %v3374_v21  ;;  %4077 = vmatpush.msra.mxu0 %v3372_v50 }
0x273c   :  { %3728 = vmatpush.msra.mxu2 %v3373_v15  ;;  %3844 = vmatpush.msrb.mxu3 %v3373_v15 }
0x273d   :  { %3960 = vmatpush.msrb.mxu1 %v3373_v15 }
0x273e   :  { %3729 = vmatpush.msra.mxu2 %v3372_v50  ;;  %3845 = vmatpush.msrb.mxu3 %v3372_v50 }
0x273f   :  { %3961 = vmatpush.msrb.mxu1 %v3372_v50 }
0x2740   :  { %4190 = vmatpush.msrb.mxu2 %v3375_v44 }
0x2742   :  { %4191 = vmatpush.msrb.mxu2 %v3374_v21 }
0x2744   :  { %4192 = vmatpush.msrb.mxu2 %v3373_v15 }
0x2746   :  { %4193 = vmatpush.msrb.mxu2 %v3372_v50 }
0x276a   :  { %v3315_v23 = vpop.permute.xlu1 %3314 }
0x276b   :  { %v3317_v38 = vpop.permute.xlu2 %3316  ;;  %v3320_v29 = vmul.f32 %v3315_v23, %v3263_v18 }
0x276c   :  { %v3321_v42 = vmul.f32 %v3317_v38, %v3278_v9 }
0x276d   :  { %3324 = vrot.lane.b32.xlu1 %v3320_v29, %s5627_s7 }
0x276e   :  { %3326 = vrot.lane.b32.xlu0 %v3321_v42, %s5627_s7 }
0x2772   :  { %v2576_v36 = vpop.permute.xlu1 %2575 }
0x2773   :  { %v2700_v43 = vpop.permute.xlu2 %2699  ;;  %2582 = vst.msk [vmem:[#allocation2] sm:$0x2] %vm2581_vm11, %v2576_v36 }
0x2774   :  { %2706 = vst.msk [vmem:[#allocation2] sm:$0x4] %vm2705_vm13, %v2700_v43 }
0x2775   :  { %3076 = vrot.lane.b32.xlu1 %v6397_v30, %s5627_s7 }
0x277a   :  { %v2950_v41 = vpop.permute.xlu1 %2949 }
0x277b   :  { %v3075_v35 = vpop.permute.xlu2 %3074  ;;  %2956 = vst.msk [vmem:[#allocation2] sm:$0x10] %vm2955_vm12, %v2950_v41 }
0x277c   :  { %3081 = vst.msk [vmem:[#allocation2] sm:$0x20] %vm3080_vm14, %v3075_v35 }
0x2782   :  { %v2702_v45 = vpop.permute.xlu1 %2701 }
0x2783   :  { %v2454_v46 = vpop.permute.xlu2 %2453  ;;  %2707 = vst.msk [vmem:[#allocation2 + $0x8] sm:$0x4] %vm2705_vm13, %v2702_v45 }
0x2784   :  { %2459 = vst.msk [vmem:[#allocation2 + $0x8] sm:$0x1] %vm2457_vm8, %v2454_v46 }
0x278b   :  { %v2827_v30 = vpop.permute.xlu2 %2826 }
0x278c   :  { %2832 = vst.msk [vmem:[#allocation2 + $0x8] sm:$0x8] %vm2830_vm9, %v2827_v30 }
0x2793   :  { %v3202_v47 = vpop.permute.xlu2 %3201 }
0x2794   :  { %3207 = vst.msk [vmem:[#allocation2 + $0x8] sm:$0x40] %vm3205_vm10, %v3202_v47 }
0x27ba   :  { %v3393_v56 = vpop.f32.mrf.mxu2 }
0x27bb   :  { %v3397_v14 = vrot.slane %v3393_v56, 1 }
0x27df   :  { %v3325_v13 = vpop.permute.xlu1 %3324 }
0x27e0   :  { %v3327_v17 = vpop.permute.xlu0 %3326  ;;  %3331 = vst.msk [vmem:[#allocation2] sm:$0x80] %vm3330_vm15, %v3325_v13 }
0x27e1   :  { %3332 = vst.msk [vmem:[#allocation2 + $0x8] sm:$0x80] %vm3330_vm15, %v3327_v17 }
0x27e7   :  { %v3077_v53 = vpop.permute.xlu1 %3076  ;;  %v3333_v54 = vld [vmem:[#allocation2] sm:$0xff] }
0x27e8   :  { %3082 = vst.msk [vmem:[#allocation2 + $0x8] sm:$0x20] %vm3080_vm14, %v3077_v53  ;;  %4491 = vmatmul.msk.f32.vlgmr.msrb.gmra.mxu0 %vm525_vm1, %v3333_v54 }
0x27ef   :  { %v3334_v55 = vld [vmem:[#allocation2 + $0x8] sm:$0xff] }
0x27f0   :  { %4492 = vmatmul.msk.f32.gmra.mxu0 %vm525_vm1, %v3334_v55 }
0x2865   :  { %v3366_v59 = vpop.f32.mrf.mxu0 }
0x2866   :  { %v6487_v57 = vadd.f32 %v4611_v49, %v3366_v59 }
0x2868   :  { %v3400_v58 = vadd.f32 %v3393_v56, %v6487_v57 }
0x286a   :  { %4823 = vtanh.f32 %v3400_v58  ;;  %v4493_v20 = vmul.f32 -1.442695, %v3400_v58 }
0x286d   :  { %v3369_v60 = vpop.f32.mrf.mxu0 }
0x286e   :  { %v6490_v62 = vadd.f32 %v4611_v49, %v3369_v60 }
0x2870   :  { %v4824_v61 = vpop.eup %4823  ;;  %v3401_v63 = vadd.f32 %v3397_v14, %v6490_v62 }
0x2871   :  { %3446 = vrot.lane.b32.xlu2 %v4824_v61, %s5617_s3 }
0x2872   :  { %4825 = vtanh.f32 %v3401_v63  ;;  %v4494_v6 = vmul.f32 -1.442695, %v3401_v63 }
0x2873   :  { %4827 = vpow2.f32 %v4493_v20 }
0x2878   :  { %v4826_v0 = vpop.eup %4825 }
0x2879   :  { %3448 = vrot.lane.b32.xlu1 %v4826_v0, %s5617_s3  ;;  %v4828_v1 = vpop.eup %4827 }
0x287a   :  { %v3408_v31 = vadd.f32 1.0, %v4828_v1 }
0x287c   :  { %4829 = vrcp.f32 %v3408_v31  ;;  %v3421_v7 = vand.u32 2147483648, %v3408_v31  ;;  %vm3415_vm2 = vweird.f32 %v3408_v31  ;;  %v3419_v9 = vand.u32 2147483647, %v3408_v31 }
0x287d   :  { %4831 = vpow2.f32 %v4494_v6 }
0x287e   :  { %v3422_v16 = vor.u32 1.1754944e-38, %v3421_v7  ;;  %vm3420_vm4 = vcmp.eq.f32.partialorder %v3419_v9, 8.507059e+37 }
0x2882   :  { %v4830_v2 = vpop.eup %4829 }
0x2883   :  { %v3411_v3 = vmul.f32 %v4830_v2, %v3408_v31  ;;  %vm3416_vm0 = vweird.f32 %v4830_v2  ;;  %v4832_v10 = vpop.eup %4831 }
0x2884   :  { %vm3417_vm3 = vmor %vm3415_vm2, %vm3416_vm0  ;;  %v3409_v40 = vadd.f32 1.0, %v4832_v10 }
0x2885   :  { %v3412_v4 = vsub.f32 1.0, %v3411_v3 }
0x2886   :  { %4833 = vrcp.f32 %v3409_v40  ;;  %v3436_v32 = vand.u32 2147483648, %v3409_v40  ;;  %vm3430_vm6 = vweird.f32 %v3409_v40  ;;  %v3434_v26 = vand.u32 2147483647, %v3409_v40 }
0x2887   :  { %v3413_v8 = vmul.f32 %v4830_v2, %v3412_v4 }
0x2888   :  { %v3437_v33 = vor.u32 1.1754944e-38, %v3436_v32  ;;  %vm3435_vm9 = vcmp.eq.f32.partialorder %v3434_v26, 8.507059e+37 }
0x2889   :  { %v3414_v18 = vadd.f32 %v4830_v2, %v3413_v8 }
0x288b   :  { %v3418_v34 = vsel %vm3417_vm3, %v4830_v2, %v3414_v18 }
0x288c   :  { %v3423_v5 = vsel %vm3420_vm4, %v3422_v16, %v3418_v34  ;;  %v4834_v39 = vpop.eup %4833 }
0x288d   :  { %v3426_v19 = vmul.f32 %v4834_v39, %v3409_v40  ;;  %vm3431_vm5 = vweird.f32 %v4834_v39  ;;  %v3442_v29 = vmul.f32 0.0, %v3423_v5 }
0x288e   :  { %vm3432_vm8 = vmor %vm3430_vm6, %vm3431_vm5 }
0x288f   :  { %v3427_v22 = vsub.f32 1.0, %v3426_v19 }
0x2891   :  { %v3428_v27 = vmul.f32 %v4834_v39, %v3427_v22 }
0x2893   :  { %v3429_v12 = vadd.f32 %v4834_v39, %v3428_v27 }
0x2895   :  { %v3433_v25 = vsel %vm3432_vm8, %v4834_v39, %v3429_v12 }
0x2896   :  { %v3438_v23 = vsel %vm3435_vm9, %v3437_v33, %v3433_v25 }
0x2897   :  { %v3443_v44 = vmul.f32 0.0, %v3438_v23 }
0x28cb   :  { %v3447_v11 = vpop.permute.xlu2 %3446 }
0x28cc   :  { %v3452_v28 = vmul.f32 %v3447_v11, %v3423_v5 }
0x28ce   :  { %3456 = vrot.lane.b32.xlu1 %v3452_v28, %s5627_s7 }
0x28eb   :  { %v3449_v24 = vpop.permute.xlu1 %3448 }
0x28ec   :  { %v3453_v38 = vmul.f32 %v3449_v24, %v3438_v23 }
0x28ee   :  { %3458 = vrot.lane.b32.xlu0 %v3453_v38, %s5627_s7 }
0x2940   :  { %v3457_v42 = vpop.permute.xlu1 %3456 }
0x2941   :  { %v6497_v36 = vadd.f32 %v3457_v42, %v3442_v29 }
0x2943   :  { %4835 = vtanh.f32 %v6497_v36  ;;  %v3552_v27 = vrot.slane %v6497_v36, 7 }
0x2949   :  { %v4836_v43 = vpop.eup %4835 }
0x294a   :  { %3468 = vrot.lane.b32.xlu0 %v4836_v43, %s5617_s3 }
0x2960   :  { %v3459_v21 = vpop.permute.xlu0 %3458 }
0x2961   :  { %v6501_v41 = vadd.f32 %v3459_v21, %v3443_v44 }
0x2963   :  { %4837 = vtanh.f32 %v6501_v41  ;;  %v3553_v19 = vrot.slane %v6501_v41, 7 }
0x2969   :  { %v4838_v35 = vpop.eup %4837 }
0x296a   :  { %3470 = vrot.lane.b32.xlu2 %v4838_v35, %s5617_s3 }
0x29bc   :  { %v3469_v45 = vpop.permute.xlu0 %3468 }
0x29bd   :  { %v3474_v47 = vmul.f32 %v3469_v45, %v3423_v5 }
0x29c4   :  { %v3471_v46 = vpop.permute.xlu2 %3470 }
0x29c5   :  { %v3475_v30 = vmul.f32 %v3471_v46, %v3438_v23 }
0x29c7   :  { %v3478_v37 = vrot.slane %v3475_v30, 7 }
0x29c9   :  { %v3479_v15 = vsel %vm2461_vm7, %v3478_v37, %v3474_v47 }
0x29ca   :  { %3480 = vrot.lane.b32.xlu1 %v3479_v15, %s5627_s7 }
0x2a3c   :  { %v3481_v48 = vpop.permute.xlu1 %3480 }
0x2a3d   :  { %4495 = vmatmul.msk.f32.vlgmr.msra.gmra.mxu3 %vm525_vm1, %v3481_v48 }
0x2ac0   :  { %v3501_v50 = vpop.f32.mrf.mxu3 }
0x2ac1   :  { %v3505_v51 = vrot.slane %v3501_v50, 7  ;;  %v3509_v52 = vadd.f32 %v3501_v50, %v6490_v62 }
0x2ac3   :  { %v3508_v13 = vadd.f32 %v3505_v51, %v6487_v57  ;;  %4839 = vtanh.f32 %v3509_v52  ;;  %v4497_v59 = vmul.f32 -1.442695, %v3509_v52 }
0x2ac5   :  { %4841 = vtanh.f32 %v3508_v13  ;;  %v4496_v54 = vmul.f32 -1.442695, %v3508_v13 }
0x2ac7   :  { %4843 = vpow2.f32 %v4496_v54 }
0x2ac9   :  { %v4840_v17 = vpop.eup %4839 }
0x2aca   :  { %3562 = vrot.lane.b32.xlu0 %v4840_v17, %s5617_s3 }
0x2acb   :  { %v4842_v53 = vpop.eup %4841 }
0x2acc   :  { %3560 = vrot.lane.b32.xlu2 %v4842_v53, %s5617_s3 }
0x2acd   :  { %v4844_v55 = vpop.eup %4843 }
0x2ace   :  { %v3516_v49 = vadd.f32 1.0, %v4844_v55 }
0x2ad0   :  { %4845 = vrcp.f32 %v3516_v49  ;;  %v3529_v20 = vand.u32 2147483648, %v3516_v49  ;;  %vm3523_vm11 = vweird.f32 %v3516_v49  ;;  %v3527_v1 = vand.u32 2147483647, %v3516_v49 }
0x2ad1   :  { %4847 = vpow2.f32 %v4497_v59 }
0x2ad2   :  { %v3530_v2 = vor.u32 1.1754944e-38, %v3529_v20  ;;  %vm3528_vm13 = vcmp.eq.f32.partialorder %v3527_v1, 8.507059e+37 }
0x2ad6   :  { %v4846_v56 = vpop.eup %4845 }
0x2ad7   :  { %v3519_v58 = vmul.f32 %v4846_v56, %v3516_v49  ;;  %v4848_v60 = vpop.eup %4847  ;;  %vm3524_vm10 = vweird.f32 %v4846_v56 }
0x2ad8   :  { %v3517_v61 = vadd.f32 1.0, %v4848_v60  ;;  %vm3525_vm12 = vmor %vm3523_vm11, %vm3524_vm10 }
0x2ad9   :  { %v3520_v14 = vsub.f32 1.0, %v3519_v58 }
0x2ada   :  { %4849 = vrcp.f32 %v3517_v61  ;;  %v3544_v34 = vand.u32 2147483648, %v3517_v61  ;;  %vm3538_vm15 = vweird.f32 %v3517_v61  ;;  %v3542_v16 = vand.u32 2147483647, %v3517_v61 }
0x2adb   :  { %v3521_v63 = vmul.f32 %v4846_v56, %v3520_v14 }
0x2adc   :  { %v3545_v5 = vor.u32 1.1754944e-38, %v3544_v34  ;;  %vm3543_vm2 = vcmp.eq.f32.partialorder %v3542_v16, 8.507059e+37 }
0x2add   :  { %v3522_v0 = vadd.f32 %v4846_v56, %v3521_v63 }
0x2adf   :  { %v3526_v31 = vsel %vm3525_vm12, %v4846_v56, %v3522_v0 }
0x2ae0   :  { %v4850_v3 = vpop.eup %4849  ;;  %v3531_v6 = vsel %vm3528_vm13, %v3530_v2, %v3526_v31 }
0x2ae1   :  { %v3534_v18 = vmul.f32 %v4850_v3, %v3517_v61  ;;  %vm3539_vm14 = vweird.f32 %v4850_v3  ;;  %v3556_v26 = vmul.f32 %v3552_v27, %v3531_v6 }
0x2ae2   :  { %vm3540_vm0 = vmor %vm3538_vm15, %vm3539_vm14 }
0x2ae3   :  { %v3535_v7 = vsub.f32 1.0, %v3534_v18 }
0x2ae5   :  { %v3536_v9 = vmul.f32 %v4850_v3, %v3535_v7 }
0x2ae7   :  { %v3537_v10 = vadd.f32 %v4850_v3, %v3536_v9 }
0x2ae9   :  { %v3541_v11 = vsel %vm3540_vm0, %v4850_v3, %v3537_v10 }
0x2aea   :  { %v3546_v28 = vsel %vm3543_vm2, %v3545_v5, %v3541_v11 }
0x2aeb   :  { %v3557_v22 = vmul.f32 %v3553_v19, %v3546_v28 }
0x2b26   :  { %v3561_v4 = vpop.permute.xlu2 %3560 }
0x2b27   :  { %v3566_v8 = vmul.f32 %v3561_v4, %v3531_v6 }
0x2b29   :  { %3570 = vrot.lane.b32.xlu1 %v3566_v8, %s5627_s7 }
0x2b3c   :  { %v3563_v40 = vpop.permute.xlu0 %3562 }
0x2b3d   :  { %v3567_v39 = vmul.f32 %v3563_v40, %v3546_v28 }
0x2b3f   :  { %3572 = vrot.lane.b32.xlu2 %v3567_v39, %s5627_s7 }
0x2b99   :  { %v3573_v12 = vpop.permute.xlu2 %3572 }
0x2b9a   :  { %v6516_v32 = vadd.f32 %v3573_v12, %v3557_v22 }
0x2b9b   :  { %v3571_v25 = vpop.permute.xlu1 %3570 }
0x2b9c   :  { %4851 = vtanh.f32 %v6516_v32  ;;  %v6519_v33 = vadd.f32 %v3571_v25, %v3556_v26  ;;  %v3668_v40 = vrot.slane %v6516_v32, 7 }
0x2b9e   :  { %4853 = vtanh.f32 %v6519_v33  ;;  %v3667_v10 = vrot.slane %v6519_v33, 7 }
0x2ba2   :  { %v4852_v24 = vpop.eup %4851 }
0x2ba3   :  { %3584 = vrot.lane.b32.xlu1 %v4852_v24, %s5617_s3 }
0x2ba4   :  { %v4854_v23 = vpop.eup %4853 }
0x2ba5   :  { %3582 = vrot.lane.b32.xlu0 %v4854_v23, %s5617_s3 }
0x2c15   :  { %v3585_v38 = vpop.permute.xlu1 %3584 }
0x2c16   :  { %v3589_v36 = vmul.f32 %v3585_v38, %v3546_v28 }
0x2c17   :  { %v3583_v29 = vpop.permute.xlu0 %3582 }
0x2c18   :  { %v3588_v42 = vmul.f32 %v3583_v29, %v3531_v6 }
0x2c1a   :  { %v3592_v43 = vrot.slane %v3588_v42, 1 }
0x2c1c   :  { %v3593_v44 = vsel %vm2461_vm7, %v3589_v36, %v3592_v43 }
0x2c1d   :  { %3594 = vrot.lane.b32.xlu2 %v3593_v44, %s5627_s7 }
0x2c77   :  { %v3595_v21 = vpop.permute.xlu2 %3594 }
0x2c78   :  { %4498 = vmatmul.msk.f32.vlgmr.msra.gmra.mxu1 %vm525_vm1, %v3595_v21 }
0x2cf5   :  { %v3615_v41 = vpop.f32.mrf.mxu1 }
0x2cf6   :  { %v3619_v35 = vrot.slane %v3615_v41, 6  ;;  %v3620_v45 = vrot.slane %v3615_v41, 7 }
0x2cf8   :  { %v3623_v46 = vadd.f32 %v3619_v35, %v6487_v57  ;;  %v3624_v30 = vadd.f32 %v3620_v45, %v6490_v62 }
0x2cfa   :  { %4855 = vtanh.f32 %v3623_v46  ;;  %v4499_v15 = vmul.f32 -1.442695, %v3623_v46  ;;  %v4500_v48 = vmul.f32 -1.442695, %v3624_v30 }
0x2cfb   :  { %4857 = vtanh.f32 %v3624_v30 }
0x2cfc   :  { %4859 = vpow2.f32 %v4499_v15 }
0x2cfd   :  { %4861 = vpow2.f32 %v4500_v48 }
0x2d00   :  { %v4856_v47 = vpop.eup %4855 }
0x2d01   :  { %v4858_v37 = vpop.eup %4857  ;;  %3675 = vrot.lane.b32.xlu0 %v4856_v47, %s5617_s3 }
0x2d02   :  { %3677 = vrot.lane.b32.xlu1 %v4858_v37, %s5617_s3  ;;  %v4860_v50 = vpop.eup %4859 }
0x2d03   :  { %v4862_v51 = vpop.eup %4861  ;;  %v3631_v52 = vadd.f32 1.0, %v4860_v50 }
0x2d04   :  { %v3632_v13 = vadd.f32 1.0, %v4862_v51 }
0x2d05   :  { %4863 = vrcp.f32 %v3631_v52  ;;  %v3644_v61 = vand.u32 2147483648, %v3631_v52  ;;  %vm3638_vm5 = vweird.f32 %v3631_v52  ;;  %v3642_v0 = vand.u32 2147483647, %v3631_v52 }
0x2d06   :  { %4865 = vrcp.f32 %v3632_v13  ;;  %v3659_v63 = vand.u32 2147483648, %v3632_v13  ;;  %vm3653_vm6 = vweird.f32 %v3632_v13  ;;  %v3657_v20 = vand.u32 2147483647, %v3632_v13 }
0x2d07   :  { %v3645_v2 = vor.u32 1.1754944e-38, %v3644_v61  ;;  %vm3643_vm10 = vcmp.eq.f32.partialorder %v3642_v0, 8.507059e+37 }
0x2d08   :  { %v3660_v3 = vor.u32 1.1754944e-38, %v3659_v63  ;;  %vm3658_vm11 = vcmp.eq.f32.partialorder %v3657_v20, 8.507059e+37 }
0x2d0b   :  { %v4864_v17 = vpop.eup %4863 }
0x2d0c   :  { %v4866_v53 = vpop.eup %4865  ;;  %v3634_v54 = vmul.f32 %v4864_v17, %v3631_v52  ;;  %vm3639_vm3 = vweird.f32 %v4864_v17 }
0x2d0d   :  { %v3649_v55 = vmul.f32 %v4866_v53, %v3632_v13  ;;  %vm3654_vm4 = vweird.f32 %v4866_v53  ;;  %vm3640_vm8 = vmor %vm3638_vm5, %vm3639_vm3 }
0x2d0e   :  { %v3635_v49 = vsub.f32 1.0, %v3634_v54  ;;  %vm3655_vm9 = vmor %vm3653_vm6, %vm3654_vm4 }
0x2d0f   :  { %v3650_v59 = vsub.f32 1.0, %v3649_v55 }
0x2d10   :  { %v3636_v56 = vmul.f32 %v4864_v17, %v3635_v49 }
0x2d11   :  { %v3651_v58 = vmul.f32 %v4866_v53, %v3650_v59 }
0x2d12   :  { %v3637_v14 = vadd.f32 %v4864_v17, %v3636_v56 }
0x2d13   :  { %v3652_v60 = vadd.f32 %v4866_v53, %v3651_v58 }
0x2d14   :  { %v3641_v1 = vsel %vm3640_vm8, %v4864_v17, %v3637_v14 }
0x2d15   :  { %v3656_v31 = vsel %vm3655_vm9, %v4866_v53, %v3652_v60  ;;  %v3646_v6 = vsel %vm3643_vm10, %v3645_v2, %v3641_v1 }
0x2d16   :  { %v3661_v18 = vsel %vm3658_vm11, %v3660_v3, %v3656_v31  ;;  %v3671_v34 = vmul.f32 %v3667_v10, %v3646_v6 }
0x2d17   :  { %v3672_v28 = vmul.f32 %v3668_v40, %v3661_v18 }
0x2d73   :  { %v3676_v4 = vpop.permute.xlu0 %3675 }
0x2d74   :  { %v3678_v8 = vpop.permute.xlu1 %3677  ;;  %v3681_v7 = vmul.f32 %v3676_v4, %v3646_v6 }
0x2d75   :  { %v3682_v9 = vmul.f32 %v3678_v8, %v3661_v18 }
0x2d76   :  { %3685 = vrot.lane.b32.xlu2 %v3681_v7, %s5627_s7 }
0x2d77   :  { %3687 = vrot.lane.b32.xlu0 %v3682_v9, %s5627_s7 }
0x2dd0   :  { %v3686_v16 = vpop.permute.xlu2 %3685 }
0x2dd1   :  { %v6534_v11 = vadd.f32 %v3686_v16, %v3671_v34 }
0x2dd3   :  { %4867 = vtanh.f32 %v6534_v11  ;;  %v3783_v7 = vrot.slane %v6534_v11, 7 }
0x2dd9   :  { %v4868_v5 = vpop.eup %4867 }
0x2dda   :  { %3697 = vrot.lane.b32.xlu1 %v4868_v5, %s5617_s3 }
0x2de9   :  { %v3688_v39 = vpop.permute.xlu0 %3687 }
0x2dea   :  { %v6539_v19 = vadd.f32 %v3688_v39, %v3672_v28 }
0x2dec   :  { %4869 = vtanh.f32 %v6539_v19  ;;  %v3784_v3 = vrot.slane %v6539_v19, 7 }
0x2df2   :  { %v4870_v22 = vpop.eup %4869 }
0x2df3   :  { %3699 = vrot.lane.b32.xlu2 %v4870_v22, %s5617_s3 }
0x2e4c   :  { %v3698_v27 = vpop.permute.xlu1 %3697 }
0x2e4d   :  { %v3700_v12 = vpop.permute.xlu2 %3699  ;;  %v3703_v26 = vmul.f32 %v3698_v27, %v3646_v6 }
0x2e4e   :  { %v3704_v25 = vmul.f32 %v3700_v12, %v3661_v18 }
0x2e4f   :  { %v3707_v33 = vrot.slane %v3703_v26, 2 }
0x2e50   :  { %v3708_v24 = vrot.slane %v3704_v25, 1 }
0x2e52   :  { %v3709_v23 = vsel %vm2461_vm7, %v3708_v24, %v3707_v33 }
0x2e53   :  { %3710 = vrot.lane.b32.xlu0 %v3709_v23, %s5627_s7 }
0x2ec5   :  { %v3711_v32 = vpop.permute.xlu0 %3710 }
0x2ec6   :  { %4501 = vmatmul.msk.f32.vlgmr.msra.gmra.mxu2 %vm525_vm1, %v3711_v32 }
0x2f49   :  { %v3731_v38 = vpop.f32.mrf.mxu2 }
0x2f4a   :  { %v3735_v29 = vrot.slane %v3731_v38, 5  ;;  %v3736_v42 = vrot.slane %v3731_v38, 6 }
0x2f4c   :  { %v3739_v36 = vadd.f32 %v3735_v29, %v6487_v57  ;;  %v3740_v43 = vadd.f32 %v3736_v42, %v6490_v62 }
0x2f4e   :  { %4871 = vtanh.f32 %v3739_v36  ;;  %v4503_v41 = vmul.f32 -1.442695, %v3740_v43  ;;  %v4502_v30 = vmul.f32 -1.442695, %v3739_v36 }
0x2f4f   :  { %4873 = vtanh.f32 %v3740_v43 }
0x2f50   :  { %4875 = vpow2.f32 %v4503_v41 }
0x2f54   :  { %v4872_v44 = vpop.eup %4871 }
0x2f55   :  { %v4874_v21 = vpop.eup %4873  ;;  %3791 = vrot.lane.b32.xlu1 %v4872_v44, %s5617_s3 }
0x2f56   :  { %3793 = vrot.lane.b32.xlu2 %v4874_v21, %s5617_s3  ;;  %v4876_v35 = vpop.eup %4875 }
0x2f57   :  { %v3748_v45 = vadd.f32 1.0, %v4876_v35 }
0x2f59   :  { %4877 = vrcp.f32 %v3748_v45  ;;  %v3775_v52 = vand.u32 2147483648, %v3748_v45  ;;  %vm3769_vm13 = vweird.f32 %v3748_v45  ;;  %v3773_v13 = vand.u32 2147483647, %v3748_v45 }
0x2f5a   :  { %4879 = vpow2.f32 %v4502_v30 }
0x2f5b   :  { %v3776_v53 = vor.u32 1.1754944e-38, %v3775_v52  ;;  %vm3774_vm15 = vcmp.eq.f32.partialorder %v3773_v13, 8.507059e+37 }
0x2f5f   :  { %v4878_v46 = vpop.eup %4877 }
0x2f60   :  { %v3765_v47 = vmul.f32 %v4878_v46, %v3748_v45  ;;  %v4880_v15 = vpop.eup %4879  ;;  %vm3770_vm12 = vweird.f32 %v4878_v46 }
0x2f61   :  { %v3747_v50 = vadd.f32 1.0, %v4880_v15  ;;  %vm3771_vm14 = vmor %vm3769_vm13, %vm3770_vm12 }
0x2f62   :  { %v3766_v37 = vsub.f32 1.0, %v3765_v47 }
0x2f63   :  { %4881 = vrcp.f32 %v3747_v50  ;;  %v3760_v61 = vand.u32 2147483648, %v3747_v50  ;;  %vm3754_vm2 = vweird.f32 %v3747_v50  ;;  %v3758_v63 = vand.u32 2147483647, %v3747_v50 }
0x2f64   :  { %v3767_v48 = vmul.f32 %v4878_v46, %v3766_v37 }
0x2f65   :  { %v3761_v20 = vor.u32 1.1754944e-38, %v3760_v61  ;;  %vm3759_vm4 = vcmp.eq.f32.partialorder %v3758_v63, 8.507059e+37 }
0x2f66   :  { %v3768_v51 = vadd.f32 %v4878_v46, %v3767_v48 }
0x2f68   :  { %v3772_v17 = vsel %vm3771_vm14, %v4878_v46, %v3768_v51 }
0x2f69   :  { %v3777_v55 = vsel %vm3774_vm15, %v3776_v53, %v3772_v17  ;;  %v4882_v49 = vpop.eup %4881 }
0x2f6a   :  { %v3750_v56 = vmul.f32 %v4882_v49, %v3747_v50  ;;  %vm3755_vm0 = vweird.f32 %v4882_v49  ;;  %v3788_v4 = vmul.f32 %v3784_v3, %v3777_v55 }
0x2f6b   :  { %vm3756_vm3 = vmor %vm3754_vm2, %vm3755_vm0 }
0x2f6c   :  { %v3751_v58 = vsub.f32 1.0, %v3750_v56 }
0x2f6e   :  { %v3752_v14 = vmul.f32 %v4882_v49, %v3751_v58 }
0x2f70   :  { %v3753_v60 = vadd.f32 %v4882_v49, %v3752_v14 }
0x2f72   :  { %v3757_v0 = vsel %vm3756_vm3, %v4882_v49, %v3753_v60 }
0x2f73   :  { %v3762_v31 = vsel %vm3759_vm4, %v3761_v20, %v3757_v0 }
0x2f74   :  { %v3787_v9 = vmul.f32 %v3783_v7, %v3762_v31 }
0x2fb0   :  { %v3794_v54 = vpop.permute.xlu2 %3793 }
0x2fb1   :  { %v3798_v59 = vmul.f32 %v3794_v54, %v3777_v55 }
0x2fb3   :  { %3803 = vrot.lane.b32.xlu1 %v3798_v59, %s5627_s7 }
0x2fc7   :  { %v3792_v1 = vpop.permute.xlu1 %3791 }
0x2fc8   :  { %v3797_v2 = vmul.f32 %v3792_v1, %v3762_v31 }
0x2fca   :  { %3801 = vrot.lane.b32.xlu0 %v3797_v2, %s5627_s7 }
0x3025   :  { %v3804_v6 = vpop.permute.xlu1 %3803 }
0x3026   :  { %v6553_v8 = vadd.f32 %v3804_v6, %v3788_v4 }
0x3028   :  { %4883 = vtanh.f32 %v6553_v8  ;;  %v3900_v63 = vrot.slane %v6553_v8, 7 }
0x302e   :  { %v4884_v18 = vpop.eup %4883 }
0x302f   :  { %3815 = vrot.lane.b32.xlu0 %v4884_v18, %s5617_s3 }
0x303c   :  { %v3802_v10 = vpop.permute.xlu0 %3801 }
0x303d   :  { %v6558_v34 = vadd.f32 %v3802_v10, %v3787_v9 }
0x303f   :  { %4885 = vtanh.f32 %v6558_v34  ;;  %v3899_v61 = vrot.slane %v6558_v34, 7 }
0x3045   :  { %v4886_v16 = vpop.eup %4885 }
0x3046   :  { %3813 = vrot.lane.b32.xlu2 %v4886_v16, %s5617_s3 }
0x30a0   :  { %v3814_v5 = vpop.permute.xlu2 %3813 }
0x30a1   :  { %v3816_v40 = vpop.permute.xlu0 %3815  ;;  %v3819_v28 = vmul.f32 %v3814_v5, %v3762_v31 }
0x30a2   :  { %v3820_v39 = vmul.f32 %v3816_v40, %v3777_v55 }
0x30a3   :  { %v3823_v19 = vrot.slane %v3819_v28, 3 }
0x30a4   :  { %v3824_v22 = vrot.slane %v3820_v39, 2 }
0x30a6   :  { %v3825_v27 = vsel %vm2461_vm7, %v3824_v22, %v3823_v19 }
0x30a7   :  { %3826 = vrot.lane.b32.xlu1 %v3825_v27, %s5627_s7 }
0x3119   :  { %v3827_v11 = vpop.permute.xlu1 %3826 }
0x311a   :  { %4504 = vmatmul.msk.f32.vlgmr.msrb.gmra.mxu3 %vm525_vm1, %v3827_v11 }
0x319d   :  { %v3847_v12 = vpop.f32.mrf.mxu3 }
0x319e   :  { %v3851_v26 = vrot.slane %v3847_v12, 4  ;;  %v3852_v25 = vrot.slane %v3847_v12, 5 }
0x31a0   :  { %v3855_v33 = vadd.f32 %v3851_v26, %v6487_v57  ;;  %v3856_v24 = vadd.f32 %v3852_v25, %v6490_v62 }
0x31a2   :  { %4887 = vtanh.f32 %v3855_v33  ;;  %v4505_v38 = vmul.f32 -1.442695, %v3855_v33  ;;  %v4506_v43 = vmul.f32 -1.442695, %v3856_v24 }
0x31a3   :  { %4889 = vtanh.f32 %v3856_v24 }
0x31a4   :  { %4891 = vpow2.f32 %v4505_v38 }
0x31a8   :  { %v4888_v23 = vpop.eup %4887 }
0x31a9   :  { %v4890_v32 = vpop.eup %4889  ;;  %3907 = vrot.lane.b32.xlu2 %v4888_v23, %s5617_s3 }
0x31aa   :  { %3909 = vrot.lane.b32.xlu0 %v4890_v32, %s5617_s3  ;;  %v4892_v29 = vpop.eup %4891 }
0x31ab   :  { %v3863_v42 = vadd.f32 1.0, %v4892_v29 }
0x31ad   :  { %4893 = vrcp.f32 %v3863_v42  ;;  %v3876_v30 = vand.u32 2147483648, %v3863_v42  ;;  %vm3870_vm6 = vweird.f32 %v3863_v42  ;;  %v3874_v47 = vand.u32 2147483647, %v3863_v42 }
0x31ae   :  { %4895 = vpow2.f32 %v4506_v43 }
0x31af   :  { %v3877_v15 = vor.u32 1.1754944e-38, %v3876_v30  ;;  %vm3875_vm9 = vcmp.eq.f32.partialorder %v3874_v47, 8.507059e+37 }
0x31b3   :  { %v4894_v36 = vpop.eup %4893 }
0x31b4   :  { %v3866_v44 = vmul.f32 %v4894_v36, %v3863_v42  ;;  %v4896_v35 = vpop.eup %4895  ;;  %vm3871_vm5 = vweird.f32 %v4894_v36 }
0x31b5   :  { %v3864_v45 = vadd.f32 1.0, %v4896_v35  ;;  %vm3872_vm8 = vmor %vm3870_vm6, %vm3871_vm5 }
0x31b6   :  { %v3867_v21 = vsub.f32 1.0, %v3866_v44 }
0x31b7   :  { %4897 = vrcp.f32 %v3864_v45  ;;  %v3891_v55 = vand.u32 2147483648, %v3864_v45  ;;  %vm3885_vm11 = vweird.f32 %v3864_v45  ;;  %v3889_v49 = vand.u32 2147483647, %v3864_v45 }
0x31b8   :  { %v3868_v41 = vmul.f32 %v4894_v36, %v3867_v21 }
0x31b9   :  { %v3892_v56 = vor.u32 1.1754944e-38, %v3891_v55  ;;  %vm3890_vm13 = vcmp.eq.f32.partialorder %v3889_v49, 8.507059e+37 }
0x31ba   :  { %v3869_v46 = vadd.f32 %v4894_v36, %v3868_v41 }
0x31bc   :  { %v3873_v37 = vsel %vm3872_vm8, %v4894_v36, %v3869_v46 }
0x31bd   :  { %v3878_v50 = vsel %vm3875_vm9, %v3877_v15, %v3873_v37  ;;  %v4898_v52 = vpop.eup %4897 }
0x31be   :  { %v3881_v13 = vmul.f32 %v4898_v52, %v3864_v45  ;;  %vm3886_vm10 = vweird.f32 %v4898_v52  ;;  %v3903_v0 = vmul.f32 %v3899_v61, %v3878_v50 }
0x31bf   :  { %vm3887_vm12 = vmor %vm3885_vm11, %vm3886_vm10 }
0x31c0   :  { %v3882_v17 = vsub.f32 1.0, %v3881_v13 }
0x31c2   :  { %v3883_v53 = vmul.f32 %v4898_v52, %v3882_v17 }
0x31c4   :  { %v3884_v54 = vadd.f32 %v4898_v52, %v3883_v53 }
0x31c6   :  { %v3888_v59 = vsel %vm3887_vm12, %v4898_v52, %v3884_v54 }
0x31c7   :  { %v3893_v14 = vsel %vm3890_vm13, %v3892_v56, %v3888_v59 }
0x31c8   :  { %v3904_v20 = vmul.f32 %v3900_v63, %v3893_v14 }
0x3203   :  { %v3908_v48 = vpop.permute.xlu2 %3907 }
0x3204   :  { %v3913_v51 = vmul.f32 %v3908_v48, %v3878_v50 }
0x3206   :  { %3917 = vrot.lane.b32.xlu1 %v3913_v51, %s5627_s7 }
0x321c   :  { %v3910_v58 = vpop.permute.xlu0 %3909 }
0x321d   :  { %v3914_v60 = vmul.f32 %v3910_v58, %v3893_v14 }
0x321f   :  { %3919 = vrot.lane.b32.xlu2 %v3914_v60, %s5627_s7 }
0x3278   :  { %v3918_v1 = vpop.permute.xlu1 %3917 }
0x3279   :  { %v3920_v31 = vpop.permute.xlu2 %3919  ;;  %v6573_v2 = vadd.f32 %v3918_v1, %v3903_v0 }
0x327a   :  { %v6575_v3 = vadd.f32 %v3920_v31, %v3904_v20 }
0x327b   :  { %4899 = vtanh.f32 %v6573_v2  ;;  %v4015_v55 = vrot.slane %v6573_v2, 7 }
0x327c   :  { %4901 = vtanh.f32 %v6575_v3 }
0x3281   :  { %v4900_v4 = vpop.eup %4899 }
0x3282   :  { %v4902_v6 = vpop.eup %4901  ;;  %3929 = vrot.lane.b32.xlu0 %v4900_v4, %s5617_s3 }
0x3283   :  { %3931 = vrot.lane.b32.xlu1 %v4902_v6, %s5617_s3 }
0x32f4   :  { %v3930_v18 = vpop.permute.xlu0 %3929 }
0x32f5   :  { %v3932_v8 = vpop.permute.xlu1 %3931  ;;  %v3935_v7 = vmul.f32 %v3930_v18, %v3878_v50 }
0x32f6   :  { %v3936_v9 = vmul.f32 %v3932_v8, %v3893_v14  ;;  %v4016_v14 = vrot.slane %v6575_v3, 7 }
0x32f7   :  { %v3939_v10 = vrot.slane %v3935_v7, 4 }
0x32f8   :  { %v3940_v34 = vrot.slane %v3936_v9, 3 }
0x32fa   :  { %v3941_v16 = vsel %vm2461_vm7, %v3940_v34, %v3939_v10 }
0x32fb   :  { %3942 = vrot.lane.b32.xlu2 %v3941_v16, %s5627_s7 }
0x3355   :  { %v3943_v5 = vpop.permute.xlu2 %3942 }
0x3356   :  { %4507 = vmatmul.msk.f32.vlgmr.msrb.gmra.mxu1 %vm525_vm1, %v3943_v5 }
0x33d3   :  { %v3963_v40 = vpop.f32.mrf.mxu1 }
0x33d4   :  { %v3967_v28 = vrot.slane %v3963_v40, 3  ;;  %v3968_v39 = vrot.slane %v3963_v40, 4 }
0x33d6   :  { %v3971_v19 = vadd.f32 %v3967_v28, %v6487_v57  ;;  %v3972_v22 = vadd.f32 %v3968_v39, %v6490_v62 }
0x33d8   :  { %4903 = vtanh.f32 %v3971_v19  ;;  %v4508_v12 = vmul.f32 -1.442695, %v3971_v19  ;;  %v4509_v26 = vmul.f32 -1.442695, %v3972_v22 }
0x33d9   :  { %4905 = vtanh.f32 %v3972_v22 }
0x33da   :  { %4907 = vpow2.f32 %v4508_v12 }
0x33db   :  { %4909 = vpow2.f32 %v4509_v26 }
0x33de   :  { %v4904_v27 = vpop.eup %4903 }
0x33df   :  { %v4906_v11 = vpop.eup %4905  ;;  %4023 = vrot.lane.b32.xlu0 %v4904_v27, %s5617_s3 }
0x33e0   :  { %4025 = vrot.lane.b32.xlu1 %v4906_v11, %s5617_s3  ;;  %v4908_v25 = vpop.eup %4907 }
0x33e1   :  { %v4910_v33 = vpop.eup %4909  ;;  %v3979_v24 = vadd.f32 1.0, %v4908_v25 }
0x33e2   :  { %v3980_v23 = vadd.f32 1.0, %v4910_v33 }
0x33e3   :  { %4911 = vrcp.f32 %v3979_v24  ;;  %v3992_v45 = vand.u32 2147483648, %v3979_v24  ;;  %vm3986_vm0 = vweird.f32 %v3979_v24  ;;  %v3990_v30 = vand.u32 2147483647, %v3979_v24 }
0x33e4   :  { %4913 = vrcp.f32 %v3980_v23  ;;  %v4007_v46 = vand.u32 2147483648, %v3980_v23  ;;  %vm4001_vm2 = vweird.f32 %v3980_v23  ;;  %v4005_v47 = vand.u32 2147483647, %v3980_v23 }
0x33e5   :  { %v3993_v48 = vor.u32 1.1754944e-38, %v3992_v45  ;;  %vm3991_vm5 = vcmp.eq.f32.partialorder %v3990_v30, 8.507059e+37 }
0x33e6   :  { %v4008_v50 = vor.u32 1.1754944e-38, %v4007_v46  ;;  %vm4006_vm6 = vcmp.eq.f32.partialorder %v4005_v47, 8.507059e+37 }
0x33e9   :  { %v4912_v32 = vpop.eup %4911 }
0x33ea   :  { %v4914_v38 = vpop.eup %4913  ;;  %v3982_v29 = vmul.f32 %v4912_v32, %v3979_v24  ;;  %vm3987_vm14 = vweird.f32 %v4912_v32 }
0x33eb   :  { %v3997_v42 = vmul.f32 %v4914_v38, %v3980_v23  ;;  %vm4002_vm15 = vweird.f32 %v4914_v38  ;;  %vm3988_vm3 = vmor %vm3986_vm0, %vm3987_vm14 }
0x33ec   :  { %v3983_v36 = vsub.f32 1.0, %v3982_v29  ;;  %vm4003_vm4 = vmor %vm4001_vm2, %vm4002_vm15 }
0x33ed   :  { %v3998_v43 = vsub.f32 1.0, %v3997_v42 }
0x33ee   :  { %v3984_v44 = vmul.f32 %v4912_v32, %v3983_v36 }
0x33ef   :  { %v3999_v21 = vmul.f32 %v4914_v38, %v3998_v43 }
0x33f0   :  { %v3985_v41 = vadd.f32 %v4912_v32, %v3984_v44 }
0x33f1   :  { %v4000_v35 = vadd.f32 %v4914_v38, %v3999_v21 }
0x33f2   :  { %v3989_v37 = vsel %vm3988_vm3, %v4912_v32, %v3985_v41 }
0x33f3   :  { %v4004_v15 = vsel %vm4003_vm4, %v4914_v38, %v4000_v35  ;;  %v3994_v52 = vsel %vm3991_vm5, %v3993_v48, %v3989_v37 }
0x33f4   :  { %v4009_v17 = vsel %vm4006_vm6, %v4008_v50, %v4004_v15  ;;  %v4019_v49 = vmul.f32 %v4015_v55, %v3994_v52 }
0x33f5   :  { %v4020_v60 = vmul.f32 %v4016_v14, %v4009_v17 }
0x3451   :  { %v4024_v51 = vpop.permute.xlu0 %4023 }
0x3452   :  { %v4026_v13 = vpop.permute.xlu1 %4025  ;;  %v4029_v53 = vmul.f32 %v4024_v51, %v3994_v52 }
0x3453   :  { %v4030_v54 = vmul.f32 %v4026_v13, %v4009_v17 }
0x3454   :  { %4033 = vrot.lane.b32.xlu2 %v4029_v53, %s5627_s7 }
0x3455   :  { %4035 = vrot.lane.b32.xlu0 %v4030_v54, %s5627_s7 }
0x34ae   :  { %v4034_v59 = vpop.permute.xlu2 %4033 }
0x34af   :  { %v6591_v56 = vadd.f32 %v4034_v59, %v4019_v49 }
0x34b1   :  { %4915 = vtanh.f32 %v6591_v56  ;;  %v4131_v53 = vrot.slane %v6591_v56, 7 }
0x34b7   :  { %v4916_v58 = vpop.eup %4915 }
0x34b8   :  { %4045 = vrot.lane.b32.xlu1 %v4916_v58, %s5617_s3 }
0x34c7   :  { %v4036_v61 = vpop.permute.xlu0 %4035 }
0x34c8   :  { %v6596_v63 = vadd.f32 %v4036_v61, %v4020_v60 }
0x34ca   :  { %4917 = vtanh.f32 %v6596_v63  ;;  %v4132_v50 = vrot.slane %v6596_v63, 7 }
0x34d0   :  { %v4918_v0 = vpop.eup %4917 }
0x34d1   :  { %4047 = vrot.lane.b32.xlu2 %v4918_v0, %s5617_s3 }
0x352a   :  { %v4046_v20 = vpop.permute.xlu1 %4045 }
0x352b   :  { %v4048_v1 = vpop.permute.xlu2 %4047  ;;  %v4051_v31 = vmul.f32 %v4046_v20, %v3994_v52 }
0x352c   :  { %v4052_v2 = vmul.f32 %v4048_v1, %v4009_v17 }
0x352d   :  { %v4055_v4 = vrot.slane %v4051_v31, 5 }
0x352e   :  { %v4056_v6 = vrot.slane %v4052_v2, 4 }
0x3530   :  { %v4057_v18 = vsel %vm2461_vm7, %v4056_v6, %v4055_v4 }
0x3531   :  { %4058 = vrot.lane.b32.xlu0 %v4057_v18, %s5627_s7 }
0x35a3   :  { %v4059_v3 = vpop.permute.xlu0 %4058 }
0x35a4   :  { %4510 = vmatmul.msk.f32.vlgmr.msra.gmra.mxu0 %vm525_vm1, %v4059_v3 }
0x3621   :  { %v4079_v8 = vpop.f32.mrf.mxu0 }
0x3622   :  { %v4083_v7 = vrot.slane %v4079_v8, 2  ;;  %v4084_v9 = vrot.slane %v4079_v8, 3 }
0x3624   :  { %v4087_v10 = vadd.f32 %v4083_v7, %v6487_v57  ;;  %v4088_v34 = vadd.f32 %v4084_v9, %v6490_v62 }
0x3626   :  { %4919 = vtanh.f32 %v4087_v10  ;;  %v4512_v40 = vmul.f32 -1.442695, %v4088_v34  ;;  %v4511_v22 = vmul.f32 -1.442695, %v4087_v10 }
0x3627   :  { %4921 = vtanh.f32 %v4088_v34 }
0x3628   :  { %4923 = vpow2.f32 %v4512_v40 }
0x362c   :  { %v4920_v16 = vpop.eup %4919 }
0x362d   :  { %v4922_v5 = vpop.eup %4921  ;;  %4139 = vrot.lane.b32.xlu1 %v4920_v16, %s5617_s3 }
0x362e   :  { %4141 = vrot.lane.b32.xlu2 %v4922_v5, %s5617_s3  ;;  %v4924_v28 = vpop.eup %4923 }
0x362f   :  { %v4096_v39 = vadd.f32 1.0, %v4924_v28 }
0x3631   :  { %4925 = vrcp.f32 %v4096_v39  ;;  %v4123_v24 = vand.u32 2147483648, %v4096_v39  ;;  %vm4117_vm9 = vweird.f32 %v4096_v39  ;;  %v4121_v23 = vand.u32 2147483647, %v4096_v39 }
0x3632   :  { %4927 = vpow2.f32 %v4511_v22 }
0x3633   :  { %v4124_v38 = vor.u32 1.1754944e-38, %v4123_v24  ;;  %vm4122_vm11 = vcmp.eq.f32.partialorder %v4121_v23, 8.507059e+37 }
0x3637   :  { %v4926_v19 = vpop.eup %4925 }
0x3638   :  { %v4113_v27 = vmul.f32 %v4926_v19, %v4096_v39  ;;  %v4928_v12 = vpop.eup %4927  ;;  %vm4118_vm8 = vweird.f32 %v4926_v19 }
0x3639   :  { %v4095_v25 = vadd.f32 1.0, %v4928_v12  ;;  %vm4119_vm10 = vmor %vm4117_vm9, %vm4118_vm8 }
0x363a   :  { %v4114_v11 = vsub.f32 1.0, %v4113_v27 }
0x363b   :  { %4929 = vrcp.f32 %v4095_v25  ;;  %v4108_v45 = vand.u32 2147483648, %v4095_v25  ;;  %vm4102_vm13 = vweird.f32 %v4095_v25  ;;  %v4106_v46 = vand.u32 2147483647, %v4095_v25 }
0x363c   :  { %v4115_v26 = vmul.f32 %v4926_v19, %v4114_v11 }
0x363d   :  { %v4109_v47 = vor.u32 1.1754944e-38, %v4108_v45  ;;  %vm4107_vm15 = vcmp.eq.f32.partialorder %v4106_v46, 8.507059e+37 }
0x363e   :  { %v4116_v33 = vadd.f32 %v4926_v19, %v4115_v26 }
0x3640   :  { %v4120_v32 = vsel %vm4119_vm10, %v4926_v19, %v4116_v33  ;;  %vm4322_vm10 = vcmask 33792  }
0x3641   :  { %v4125_v42 = vsel %vm4122_vm11, %v4124_v38, %v4120_v32  ;;  %v4930_v36 = vpop.eup %4929 }
0x3642   :  { %v4098_v44 = vmul.f32 %v4930_v36, %v4095_v25  ;;  %vm4103_vm12 = vweird.f32 %v4930_v36  ;;  %v4136_v51 = vmul.f32 %v4132_v50, %v4125_v42 }
0x3643   :  { %vm4104_vm14 = vmor %vm4102_vm13, %vm4103_vm12 }
0x3644   :  { %v4099_v21 = vsub.f32 1.0, %v4098_v44 }
0x3646   :  { %v4100_v41 = vmul.f32 %v4930_v36, %v4099_v21 }
0x3648   :  { %v4101_v35 = vadd.f32 %v4930_v36, %v4100_v41 }
0x364a   :  { %v4105_v30 = vsel %vm4104_vm14, %v4930_v36, %v4101_v35 }
0x364b   :  { %v4110_v15 = vsel %vm4107_vm15, %v4109_v47, %v4105_v30 }
0x364c   :  { %v4135_v54 = vmul.f32 %v4131_v53, %v4110_v15 }
0x3688   :  { %v4142_v29 = vpop.permute.xlu2 %4141 }
0x3689   :  { %v4146_v43 = vmul.f32 %v4142_v29, %v4125_v42 }
0x368b   :  { %4151 = vrot.lane.b32.xlu1 %v4146_v43, %s5627_s7 }
0x369f   :  { %v4140_v37 = vpop.permute.xlu1 %4139 }
0x36a0   :  { %v4145_v48 = vmul.f32 %v4140_v37, %v4110_v15 }
0x36a2   :  { %4149 = vrot.lane.b32.xlu0 %v4145_v48, %s5627_s7 }
0x36fd   :  { %v4152_v52 = vpop.permute.xlu1 %4151 }
0x36fe   :  { %v6610_v13 = vadd.f32 %v4152_v52, %v4136_v51  ;;  %v4288_v51 = vld [vmem:[%s5807_s30 + $0x18] sm:$0xff]  ;;  %v4287_v52 = vld [vmem:[%s5807_s30 + $0x10] sm:$0xff] }
0x36ff   :  { %4314 = vmatpush.msra.mxu3 %v4288_v51 }
0x3700   :  { %4931 = vtanh.f32 %v6610_v13  ;;  %v4248_v35 = vrot.slane %v6610_v13, 7  ;;  %v4286_v13 = vld [vmem:[%s5807_s30 + $0x8] sm:$0xff] }
0x3701   :  { %4315 = vmatpush.msra.mxu3 %v4287_v52 }
0x3703   :  { %4316 = vmatpush.msra.mxu3 %v4286_v13 }
0x3706   :  { %v4932_v17 = vpop.eup %4931 }
0x3707   :  { %4163 = vrot.lane.b32.xlu0 %v4932_v17, %s5617_s3  ;;  %v4285_v17 = vld [vmem:[%s5807_s30] sm:$0xff]  ;;  %s5628_s30 = smov [#allocation39]  }
0x3708   :  { %4317 = vmatpush.msra.mxu3 %v4285_v17  ;;  %s4329_s12 = sshll.u32 %s5628_s30, 4  ;;  %s4330_s12 = int_to_ptr.vmem [resolvable:$true] %s4329_s12 }
0x3714   :  { %v4150_v55 = vpop.permute.xlu0 %4149 }
0x3715   :  { %v6615_v49 = vadd.f32 %v4150_v55, %v4135_v54 }
0x3717   :  { %4933 = vtanh.f32 %v6615_v49  ;;  %v4247_v41 = vrot.slane %v6615_v49, 7 }
0x371d   :  { %v4934_v59 = vpop.eup %4933 }
0x371e   :  { %4161 = vrot.lane.b32.xlu2 %v4934_v59, %s5617_s3 }
0x3778   :  { %v4162_v58 = vpop.permute.xlu2 %4161 }
0x3779   :  { %v4164_v14 = vpop.permute.xlu0 %4163  ;;  %v4167_v60 = vmul.f32 %v4162_v58, %v4110_v15 }
0x377a   :  { %v4168_v61 = vmul.f32 %v4164_v14, %v4125_v42 }
0x377b   :  { %v4171_v63 = vrot.slane %v4167_v60, 6 }
0x377c   :  { %v4172_v0 = vrot.slane %v4168_v61, 5  ;;  %v4612_v61 = vld [vmem:[#allocation38] ss:$0 sm:$0xff] }
0x377e   :  { %v4173_v20 = vsel %vm2461_vm7, %v4172_v0, %v4171_v63 }
0x377f   :  { %4174 = vrot.lane.b32.xlu1 %v4173_v20, %s5627_s7 }
0x37f1   :  { %v4175_v56 = vpop.permute.xlu1 %4174 }
0x37f2   :  { %4513 = vmatmul.msk.f32.vlgmr.msrb.gmra.mxu2 %vm525_vm1, %v4175_v56 }
0x3875   :  { %v4195_v1 = vpop.f32.mrf.mxu2 }
0x3876   :  { %v4199_v31 = vrot.slane %v4195_v1, 1  ;;  %v4200_v2 = vrot.slane %v4195_v1, 2 }
0x3878   :  { %v4203_v4 = vadd.f32 %v4199_v31, %v6487_v57  ;;  %v4204_v6 = vadd.f32 %v4200_v2, %v6490_v62 }
0x387a   :  { %4935 = vtanh.f32 %v4203_v4  ;;  %v4514_v8 = vmul.f32 -1.442695, %v4203_v4  ;;  %v4515_v34 = vmul.f32 -1.442695, %v4204_v6 }
0x387b   :  { %4937 = vtanh.f32 %v4204_v6 }
0x387c   :  { %4939 = vpow2.f32 %v4514_v8 }
0x3880   :  { %v4936_v18 = vpop.eup %4935 }
0x3881   :  { %v4938_v3 = vpop.eup %4937  ;;  %4255 = vrot.lane.b32.xlu2 %v4936_v18, %s5617_s3 }
0x3882   :  { %4257 = vrot.lane.b32.xlu0 %v4938_v3, %s5617_s3  ;;  %v4940_v7 = vpop.eup %4939 }
0x3883   :  { %v4211_v9 = vadd.f32 1.0, %v4940_v7 }
0x3885   :  { %4941 = vrcp.f32 %v4211_v9  ;;  %v4224_v39 = vand.u32 2147483648, %v4211_v9  ;;  %vm4218_vm2 = vweird.f32 %v4211_v9  ;;  %v4222_v19 = vand.u32 2147483647, %v4211_v9 }
0x3886   :  { %4943 = vpow2.f32 %v4515_v34 }
0x3887   :  { %v4225_v27 = vor.u32 1.1754944e-38, %v4224_v39  ;;  %vm4223_vm4 = vcmp.eq.f32.partialorder %v4222_v19, 8.507059e+37 }
0x388b   :  { %v4942_v10 = vpop.eup %4941 }
0x388c   :  { %v4214_v16 = vmul.f32 %v4942_v10, %v4211_v9  ;;  %v4944_v62 = vpop.eup %4943  ;;  %vm4219_vm0 = vweird.f32 %v4942_v10 }
0x388d   :  { %v4212_v40 = vadd.f32 1.0, %v4944_v62  ;;  %vm4220_vm3 = vmor %vm4218_vm2, %vm4219_vm0 }
0x388e   :  { %v4215_v57 = vsub.f32 1.0, %v4214_v16 }
0x388f   :  { %4945 = vrcp.f32 %v4212_v40  ;;  %v4239_v38 = vand.u32 2147483648, %v4212_v40  ;;  %vm4233_vm6 = vweird.f32 %v4212_v40  ;;  %v4237_v29 = vand.u32 2147483647, %v4212_v40 }
0x3890   :  { %v4216_v5 = vmul.f32 %v4942_v10, %v4215_v57 }
0x3891   :  { %v4240_v36 = vor.u32 1.1754944e-38, %v4239_v38  ;;  %vm4238_vm9 = vcmp.eq.f32.partialorder %v4237_v29, 8.507059e+37 }
0x3892   :  { %v4217_v28 = vadd.f32 %v4942_v10, %v4216_v5 }
0x3894   :  { %v4221_v22 = vsel %vm4220_vm3, %v4942_v10, %v4217_v28 }
0x3895   :  { %v4226_v12 = vsel %vm4223_vm4, %v4225_v27, %v4221_v22  ;;  %v4946_v25 = vpop.eup %4945 }
0x3896   :  { %v4229_v33 = vmul.f32 %v4946_v25, %v4212_v40  ;;  %vm4234_vm5 = vweird.f32 %v4946_v25  ;;  %v4251_v45 = vmul.f32 %v4247_v41, %v4226_v12 }
0x3897   :  { %vm4235_vm8 = vmor %vm4233_vm6, %vm4234_vm5 }
0x3898   :  { %v4230_v24 = vsub.f32 1.0, %v4229_v33 }
0x389a   :  { %v4231_v23 = vmul.f32 %v4946_v25, %v4230_v24 }
0x389c   :  { %v4232_v32 = vadd.f32 %v4946_v25, %v4231_v23 }
0x389e   :  { %v4236_v42 = vsel %vm4235_vm8, %v4946_v25, %v4232_v32 }
0x389f   :  { %v4241_v44 = vsel %vm4238_vm9, %v4240_v36, %v4236_v42 }
0x38a0   :  { %v4252_v46 = vmul.f32 %v4248_v35, %v4241_v44 }
0x38db   :  { %v4256_v11 = vpop.permute.xlu2 %4255 }
0x38dc   :  { %v4261_v26 = vmul.f32 %v4256_v11, %v4226_v12 }
0x38de   :  { %4265 = vrot.lane.b32.xlu1 %v4261_v26, %s5627_s7 }
0x38f4   :  { %v4258_v43 = vpop.permute.xlu0 %4257 }
0x38f5   :  { %v4262_v21 = vmul.f32 %v4258_v43, %v4241_v44 }
0x38f7   :  { %4267 = vrot.lane.b32.xlu2 %v4262_v21, %s5627_s7 }
0x3950   :  { %v4266_v30 = vpop.permute.xlu1 %4265 }
0x3951   :  { %v4268_v47 = vpop.permute.xlu2 %4267  ;;  %v4271_v37 = vadd.f32 %v4266_v30, %v4251_v45 }
0x3952   :  { %v4272_v15 = vadd.f32 %v4268_v47, %v4252_v46 }
0x3953   :  { %4947 = vtanh.f32 %v4271_v37 }
0x3954   :  { %4949 = vtanh.f32 %v4272_v15 }
0x3959   :  { %v4948_v48 = vpop.eup %4947 }
0x395a   :  { %v4950_v50 = vpop.eup %4949  ;;  %4277 = vrot.lane.b32.xlu0 %v4948_v48, %s5617_s3 }
0x395b   :  { %4279 = vrot.lane.b32.xlu1 %v4950_v50, %s5617_s3 }
0x39cc   :  { %v4278_v53 = vpop.permute.xlu0 %4277 }
0x39cd   :  { %v4280_v54 = vpop.permute.xlu1 %4279  ;;  %v4283_v55 = vmul.f32 %v4278_v53, %v4226_v12 }
0x39ce   :  { %v4284_v49 = vmul.f32 %v4280_v54, %v4241_v44 }
0x39cf   :  { %v4295_v59 = vrot.slane %v4283_v55, 7 }
0x39d0   :  { %v4296_v58 = vrot.slane %v4284_v49, 6 }
0x39d2   :  { %v4297_v14 = vsel %vm2461_vm7, %v4296_v58, %v4295_v59 }
0x39d3   :  { %4298 = vrot.lane.b32.xlu2 %v4297_v14, %s5627_s7 }
0x3a2d   :  { %v4299_v60 = vpop.permute.xlu2 %4298 }
0x3a2e   :  { %4516 = vmatmul.msk.f32.vlgmr.msra.gmra.mxu3 %vm525_vm1, %v4299_v60 }
0x3ab1   :  { %v4319_v63 = vpop.f32.mrf.mxu3 }
0x3ab2   :  { %v4320_v0 = vadd.f32 %v4612_v61, %v4319_v63 }
0x3ab4   :  { %4323 = vst.msk [vmem:[#allocation39] sm:$0x3] %vm4322_vm10, %v4320_v0 }
0x3ab5   :  { %5526 = shalt.err (!%p5523_p7)
}
0x3ab6   :  { %4334 = dma.vmem_to_hbm [thread:$0]  %s4330_s12, 32, %s4332_s10, [#allocation5]  }
0x3ab7   :  { %5551 = dma.done.wait [#allocation5], 32  }
0x3ab8   :  { %5552 = vsyncadd [#allocation5], 4294967264 }
0x3ab9   :  { %4339 = vsyncpa [#allocation4], 1 }
0x3aba   :  { %4340 = vsyncpa [#allocation7], 1 }
0x3abb   :  { %4341 = vsyncpa [#allocation10], 1 }
0x3abc   :  { %4342 = vsyncpa [#allocation13], 1 }
0x3abd   :  { %4343 = vsyncpa [#allocation16], 1 }
0x3abe   :  { %4344 = vsyncpa [#allocation19], 1 }
0x3abf   :  { %4345 = vsyncpa [#allocation22], 1 }
0x3ac0   :  { %4346 = vsyncpa [#allocation25], 1 }
0x3ac1   :  { %4347 = vsyncpa [#allocation28], 1 }
0x3ac2   :  { %4348 = vsyncpa [#allocation31], 1 }
0x3ac3   :  { %4349 = vsyncpa [#allocation34], 1 }
0x3ac4   :  { %4350 = vsyncpa [#allocation37], 1 }
0x3ac5   :  { %4351 = vsyncpa [#allocation5], 1 }

</bundles_post_ra>
